<compile_context>
chip_gen: v7x
topology: tpu7x:2x2x1
jax: 0.10.0
libtpu: 0.0.40
codegen_flags: <defaults>
</compile_context>

<pallas_src>
import math

import jax
import jax.numpy as jnp
from jax import lax
from jax.experimental import pallas as pl
from jax.experimental.pallas import tpu as pltpu


# ---------------------------------------------------------------------------
# Fully fused RDG kernel
# ---------------------------------------------------------------------------
def _make_rdg_kernel(H, W, G0, G, C, n_RDB):
    Wp = W + 2                 # padded width (1-px halo on each side)
    HWp = H * Wp               # flattened padded-row window length
    Ctot = G0 + C * G
    WIN = Wp + 1               # flat offset of interior pixel (1, 1)

    def kernel(*refs):
        x_ref = refs[0]                                   # (1, G0, HWp)
        pos = 1
        rdbs = []
        for _ in range(n_RDB):
            convs = [(refs[pos + 2 * i], refs[pos + 2 * i + 1])  # (G,9cin),(G,1)
                     for i in range(C)]
            pos += 2 * C
            rdbs.append((convs, refs[pos], refs[pos + 1]))        # (G0,Ctot),(G0,1)
            pos += 2
        fw_refs = [refs[pos + r] for r in range(n_RDB)]           # (G0, G0) chunks
        pos += n_RDB
        fb_ref = refs[pos]                                        # (G0, 1)
        o_ref = refs[pos + 1]                                     # (1, G0, HWp)
        feat = refs[pos + 2]                                      # VMEM scratch

        # Lane mask: 1 at real pixels (x < W), 0 at the 2 fake columns per row.
        lane = lax.broadcasted_iota(jnp.int32, (1, HWp), 1)
        mask = ((lane % Wp) < W).astype(jnp.float32)

        # Zero halo (and slack) built once; masked stores keep it zero forever.
        feat[...] = jnp.zeros_like(feat)
        feat[0:G0, WIN:WIN + HWp] = x_ref[0].astype(jnp.float32)

        acc = None
        for r in range(n_RDB):
            convs, lff_w_ref, lff_b_ref = rdbs[r]
            cin = G0
            for i in range(C):
                w_ref, b_ref = convs[i]
                # Nine shifted windows of the padded grid -> one (9*cin, HWp)
                # im2col operand; the shifts are static lane-offset ref slices.
                taps = [feat[0:cin, kh * Wp + kw: kh * Wp + kw + HWp]
                        for kh in range(3) for kw in range(3)]
                patch = jnp.concatenate(taps, axis=0)             # (9*cin, HWp)
                out = jnp.dot(w_ref[...], patch,
                              preferred_element_type=jnp.float32) + b_ref[...]
                out = jnp.where(out >= 0, out, 0.1 * out)         # LeakyReLU(0.1)
                # Append G new channels to the dense buffer; masking restores
                # the zero halo at the fake columns it writes into.
                feat[cin:cin + G, WIN:WIN + HWp] = out * mask
                cin += G

            # LFF 1x1 over all Ctot channels + residual, all in VMEM.
            dense = feat[0:Ctot, WIN:WIN + HWp]                   # (Ctot, HWp)
            resid = dense[0:G0, :]
            lff = jnp.dot(lff_w_ref[...], dense,
                          preferred_element_type=jnp.float32) + lff_b_ref[...]
            newbuf = (lff + resid) * mask                         # RDB output
            feat[0:G0, WIN:WIN + HWp] = newbuf

            # Final "concat + 1x1 conv" folded into accumulated per-RDB dots.
            contrib = jnp.dot(fw_refs[r][...], newbuf,
                              preferred_element_type=jnp.float32)
            acc = contrib if acc is None else acc + contrib

        o_ref[0] = (acc + fb_ref[...]).astype(o_ref.dtype)

    return kernel


def rdg_forward(x, params):
    """x: (N, G0, H, W) NCHW -> (N, G0, H, W); one fused pallas_call."""
    N, G0, H, W = x.shape
    rdbs = params["RDBs"]
    n_RDB = len(rdbs)
    C = len(rdbs[0]["convs"])
    G = rdbs[0]["convs"][0][0].shape[0]
    Ctot = G0 + C * G
    Wp = W + 2
    HWp = H * Wp

    # Window layout: 2 zero columns appended per row double as the left/right
    # halo once the padded grid is flattened; flatten (H, Wp) -> lane axis.
    xw = jnp.pad(x, ((0, 0), (0, 0), (0, 0), (0, 2))).reshape(N, G0, HWp)

    args = [xw]
    in_specs = [pl.BlockSpec((1, G0, HWp), lambda n: (n, 0, 0))]

    def const2d(shape):
        return pl.BlockSpec(shape, lambda n: (0, 0))

    # Pre-flatten all weights once, in exactly the layout the kernel consumes.
    for rdb_p in rdbs:
        for (w, b) in rdb_p["convs"]:
            cin = w.shape[1]
            # OIHW (G, cin, 3, 3) -> (G, 9*cin), tap-major: row = (kh*3+kw)*cin + c
            wT = jnp.transpose(w, (0, 2, 3, 1)).reshape(G, 9 * cin)
            args += [wT, b.reshape(G, 1)]
            in_specs += [const2d((G, 9 * cin)), const2d((G, 1))]
        args += [rdb_p["lff_w"], rdb_p["lff_b"].reshape(G0, 1)]
        in_specs += [const2d((G0, Ctot)), const2d((G0, 1))]
    for r in range(n_RDB):     # pre-split final 1x1 weight into per-RDB chunks
        args.append(params["final_w"][:, r * G0:(r + 1) * G0])
        in_specs.append(const2d((G0, G0)))
    args.append(params["final_b"].reshape(G0, 1))
    in_specs.append(const2d((G0, 1)))

    kernel = _make_rdg_kernel(H, W, G0, G, C, n_RDB)
    out = pl.pallas_call(
        kernel,
        out_shape=jax.ShapeDtypeStruct((N, G0, HWp), x.dtype),
        grid=(N,),
        in_specs=in_specs,
        out_specs=pl.BlockSpec((1, G0, HWp), lambda n: (n, 0, 0)),
        # (H+3)*Wp lanes: (H+2)*Wp padded grid + slack so the bottom-right
        # im2col taps of the (masked) fake columns stay in-bounds and zero.
        scratch_shapes=[pltpu.VMEM((Ctot, (H + 3) * Wp), jnp.float32)],
        compiler_params=pltpu.CompilerParams(
            dimension_semantics=("parallel",)),   # batch -> both v7x TCs
    )(*args)
    # Drop the 2 fake columns per row -> NCHW output.
    return out.reshape(N, G0, H, Wp)[:, :, :, :W]


# ---------------------------------------------------------------------------
# Parameter construction (deterministic, PyTorch Conv2d-like init bounds)
# ---------------------------------------------------------------------------
def _conv_params(key, cout, cin, kh, kw):
    wk, bk = jax.random.split(key)
    bound = 1.0 / math.sqrt(cin * kh * kw)
    w = jax.random.uniform(wk, (cout, cin, kh, kw), jnp.float32, -bound, bound)
    b = jax.random.uniform(bk, (cout,), jnp.float32, -bound, bound)
    return w, b


def make_rdg_params(key, G0, C, G, n_RDB):
    params = {"RDBs": []}
    for _ in range(n_RDB):
        key, *sub = jax.random.split(key, C + 2)
        convs = [_conv_params(sub[i], G, G0 + i * G, 3, 3) for i in range(C)]
        lw, lb = _conv_params(sub[C], G0, G0 + C * G, 1, 1)
        params["RDBs"].append(
            {"convs": convs, "lff_w": lw[:, :, 0, 0], "lff_b": lb})
    key, fk = jax.random.split(key)
    fw, fb = _conv_params(fk, G0, G0 * n_RDB, 1, 1)
    params["final_w"] = fw[:, :, 0, 0]
    params["final_b"] = fb
    return params


# ---------------------------------------------------------------------------
# Pure-JAX reference (lax conv, NCHW) for correctness check
# ---------------------------------------------------------------------------
def _ref_conv(x, w, b):
    pad = "SAME" if w.shape[-1] == 3 else "VALID"
    y = lax.conv_general_dilated(x, w, (1, 1), pad,
                                 dimension_numbers=("NCHW", "OIHW", "NCHW"))
    return y + b.reshape(1, -1, 1, 1)


def rdg_reference(x, params):
    buf = x
    temp = []
    for rdb_p in params["RDBs"]:
        inner = buf
        for (w, b) in rdb_p["convs"]:
            out = _ref_conv(inner, w, b)
            out = jnp.where(out >= 0, out, 0.1 * out)
            inner = jnp.concatenate([inner, out], axis=1)
        lff = _ref_conv(inner, rdb_p["lff_w"][:, :, None, None], rdb_p["lff_b"])
        buf = lff + buf
        temp.append(buf)
    cat = jnp.concatenate(temp, axis=1)
    return _ref_conv(cat, params["final_w"][:, :, None, None],
                     params["final_b"])


# ---------------------------------------------------------------------------
if __name__ == "__main__":
    # RDG(G0, C, G, n_RDB) hyper-parameters, small test shapes.
    G0, C, G, n_RDB = 8, 3, 8, 2
    N, H, W = 2, 16, 16

    key = jax.random.PRNGKey(0)
    pkey, xkey = jax.random.split(key)
    params = make_rdg_params(pkey, G0, C, G, n_RDB)

    # PyTorch-native NCHW input.
    x = jax.random.normal(xkey, (N, G0, H, W), jnp.float32)

    out = jax.jit(lambda xx: rdg_forward(xx, params))(x)
    out = jax.block_until_ready(out)

    ref = jax.block_until_ready(rdg_reference(x, params))
    assert out.shape == (N, G0, H, W)
    assert jnp.allclose(out, ref, atol=1e-4, rtol=1e-4), "mismatch vs reference"

    print("KERNEL_OK")
</pallas_src>

<mosaic_0001>
module attributes {stable_mosaic.version = 11 : i64} {
  func.func @kernel(%arg0: i32, %arg1: memref<1x8x288xf32, #tpu.memory_space<vmem>>, %arg2: memref<8x72xf32, #tpu.memory_space<vmem>>, %arg3: memref<8x1xf32, #tpu.memory_space<vmem>>, %arg4: memref<8x144xf32, #tpu.memory_space<vmem>>, %arg5: memref<8x1xf32, #tpu.memory_space<vmem>>, %arg6: memref<8x216xf32, #tpu.memory_space<vmem>>, %arg7: memref<8x1xf32, #tpu.memory_space<vmem>>, %arg8: memref<8x32xf32, #tpu.memory_space<vmem>>, %arg9: memref<8x1xf32, #tpu.memory_space<vmem>>, %arg10: memref<8x72xf32, #tpu.memory_space<vmem>>, %arg11: memref<8x1xf32, #tpu.memory_space<vmem>>, %arg12: memref<8x144xf32, #tpu.memory_space<vmem>>, %arg13: memref<8x1xf32, #tpu.memory_space<vmem>>, %arg14: memref<8x216xf32, #tpu.memory_space<vmem>>, %arg15: memref<8x1xf32, #tpu.memory_space<vmem>>, %arg16: memref<8x32xf32, #tpu.memory_space<vmem>>, %arg17: memref<8x1xf32, #tpu.memory_space<vmem>>, %arg18: memref<8x8xf32, #tpu.memory_space<vmem>>, %arg19: memref<8x8xf32, #tpu.memory_space<vmem>>, %arg20: memref<8x1xf32, #tpu.memory_space<vmem>>, %arg21: memref<1x8x288xf32, #tpu.memory_space<vmem>>, %arg22: memref<32x342xf32, #tpu.memory_space<vmem>>) attributes {dimension_semantics = [#tpu.dimension_semantics<parallel>], iteration_bounds = array<i64: 2>, scalar_prefetch = 0 : i64, scratch_operands = 1 : i64, tpu.core_type = #tpu.core_type<tc>, window_params = [{transform_indices = @transform_0, window_bounds = array<i64: 1, 8, 288>}, {pipeline_mode = #tpu.pipeline_mode<synchronous>, transform_indices = @transform_1, window_bounds = array<i64: 8, 72>}, {pipeline_mode = #tpu.pipeline_mode<synchronous>, transform_indices = @transform_2, window_bounds = array<i64: 8, 1>}, {pipeline_mode = #tpu.pipeline_mode<synchronous>, transform_indices = @transform_3, window_bounds = array<i64: 8, 144>}, {pipeline_mode = #tpu.pipeline_mode<synchronous>, transform_indices = @transform_4, window_bounds = array<i64: 8, 1>}, {pipeline_mode = #tpu.pipeline_mode<synchronous>, transform_indices = @transform_5, window_bounds = array<i64: 8, 216>}, {pipeline_mode = #tpu.pipeline_mode<synchronous>, transform_indices = @transform_6, window_bounds = array<i64: 8, 1>}, {pipeline_mode = #tpu.pipeline_mode<synchronous>, transform_indices = @transform_7, window_bounds = array<i64: 8, 32>}, {pipeline_mode = #tpu.pipeline_mode<synchronous>, transform_indices = @transform_8, window_bounds = array<i64: 8, 1>}, {pipeline_mode = #tpu.pipeline_mode<synchronous>, transform_indices = @transform_9, window_bounds = array<i64: 8, 72>}, {pipeline_mode = #tpu.pipeline_mode<synchronous>, transform_indices = @transform_10, window_bounds = array<i64: 8, 1>}, {pipeline_mode = #tpu.pipeline_mode<synchronous>, transform_indices = @transform_11, window_bounds = array<i64: 8, 144>}, {pipeline_mode = #tpu.pipeline_mode<synchronous>, transform_indices = @transform_12, window_bounds = array<i64: 8, 1>}, {pipeline_mode = #tpu.pipeline_mode<synchronous>, transform_indices = @transform_13, window_bounds = array<i64: 8, 216>}, {pipeline_mode = #tpu.pipeline_mode<synchronous>, transform_indices = @transform_14, window_bounds = array<i64: 8, 1>}, {pipeline_mode = #tpu.pipeline_mode<synchronous>, transform_indices = @transform_15, window_bounds = array<i64: 8, 32>}, {pipeline_mode = #tpu.pipeline_mode<synchronous>, transform_indices = @transform_16, window_bounds = array<i64: 8, 1>}, {pipeline_mode = #tpu.pipeline_mode<synchronous>, transform_indices = @transform_17, window_bounds = array<i64: 8, 8>}, {pipeline_mode = #tpu.pipeline_mode<synchronous>, transform_indices = @transform_18, window_bounds = array<i64: 8, 8>}, {pipeline_mode = #tpu.pipeline_mode<synchronous>, transform_indices = @transform_19, window_bounds = array<i64: 8, 1>}, {transform_indices = @transform_20, window_bounds = array<i64: 1, 8, 288>}]} {
    %0 = tpu.iota {dimensions = array<i32: 1>} : vector<1x288xi32>
    %c18_i32 = arith.constant 18 : i32
    %c0_i32 = arith.constant 0 : i32
    %1 = arith.cmpi eq, %c18_i32, %c0_i32 : i32
    %c1_i32 = arith.constant 1 : i32
    %2 = arith.select %1, %c1_i32, %c18_i32 : i32
    %3 = vector.broadcast %2 : i32 to vector<1x288xi32>
    %4 = arith.remsi %0, %3 : vector<1x288xi32>
    %c0_i32_0 = arith.constant 0 : i32
    %5 = vector.broadcast %c0_i32_0 : i32 to vector<1x288xi32>
    %6 = arith.cmpi ne, %4, %5 : vector<1x288xi32>
    %c0_i32_1 = arith.constant 0 : i32
    %7 = vector.broadcast %c0_i32_1 : i32 to vector<1x288xi32>
    %8 = arith.cmpi slt, %4, %7 : vector<1x288xi32>
    %c0_i32_2 = arith.constant 0 : i32
    %9 = arith.cmpi slt, %2, %c0_i32_2 : i32
    %10 = vector.broadcast %9 : i1 to vector<1x288xi1>
    %11 = vector.broadcast %10 : vector<1x288xi1> to vector<1x288xi1>
    %12 = arith.xori %8, %11 : vector<1x288xi1>
    %13 = arith.andi %12, %6 : vector<1x288xi1>
    %14 = vector.broadcast %2 : i32 to vector<1x288xi32>
    %15 = arith.addi %4, %14 : vector<1x288xi32>
    %16 = arith.select %13, %15, %4 : vector<1x288xi1>, vector<1x288xi32>
    %c16_i32 = arith.constant 16 : i32
    %17 = vector.broadcast %c16_i32 : i32 to vector<1x288xi32>
    %18 = arith.cmpi slt, %16, %17 : vector<1x288xi32>
    %19 = arith.extui %18 : vector<1x288xi1> to vector<1x288xi32>
    %20 = arith.sitofp %19 : vector<1x288xi32> to vector<1x288xf32>
    %cst = arith.constant 0.000000e+00 : f32
    %21 = vector.broadcast %cst : f32 to vector<32x342xf32>
    %c0 = arith.constant 0 : index
    %c0_3 = arith.constant 0 : index
    %22 = vector.load %arg22[%c0, %c0_3] : memref<32x342xf32, #tpu.memory_space<vmem>>, vector<32x342xf32>
    tpu.vector_store %arg22[%c0, %c0_3], %21 {strides = array<i32>} : memref<32x342xf32, #tpu.memory_space<vmem>>, vector<32x342xf32>,
    %c0_4 = arith.constant 0 : index
    %c0_5 = arith.constant 0 : index
    %c0_6 = arith.constant 0 : index
    %23 = vector.load %arg1[%c0_4, %c0_5, %c0_6] : memref<1x8x288xf32, #tpu.memory_space<vmem>>, vector<1x8x288xf32>
    %24 = vector.shape_cast %23 : vector<1x8x288xf32> to vector<8x288xf32>
    %c0_7 = arith.constant 0 : index
    %c19 = arith.constant 19 : index
    %25 = vector.load %arg22[%c0_7, %c19] : memref<32x342xf32, #tpu.memory_space<vmem>>, vector<8x288xf32>
    tpu.vector_store %arg22[%c0_7, %c19], %24 {strides = array<i32>} : memref<32x342xf32, #tpu.memory_space<vmem>>, vector<8x288xf32>,
    %c0_8 = arith.constant 0 : index
    %c0_9 = arith.constant 0 : index
    %26 = vector.load %arg22[%c0_8, %c0_9] : memref<32x342xf32, #tpu.memory_space<vmem>>, vector<8x288xf32>
    %c0_10 = arith.constant 0 : index
    %c1 = arith.constant 1 : index
    %27 = vector.load %arg22[%c0_10, %c1] : memref<32x342xf32, #tpu.memory_space<vmem>>, vector<8x288xf32>
    %c0_11 = arith.constant 0 : index
    %c2 = arith.constant 2 : index
    %28 = vector.load %arg22[%c0_11, %c2] : memref<32x342xf32, #tpu.memory_space<vmem>>, vector<8x288xf32>
    %c0_12 = arith.constant 0 : index
    %c18 = arith.constant 18 : index
    %29 = vector.load %arg22[%c0_12, %c18] : memref<32x342xf32, #tpu.memory_space<vmem>>, vector<8x288xf32>
    %c0_13 = arith.constant 0 : index
    %c19_14 = arith.constant 19 : index
    %30 = vector.load %arg22[%c0_13, %c19_14] : memref<32x342xf32, #tpu.memory_space<vmem>>, vector<8x288xf32>
    %c0_15 = arith.constant 0 : index
    %c20 = arith.constant 20 : index
    %31 = vector.load %arg22[%c0_15, %c20] : memref<32x342xf32, #tpu.memory_space<vmem>>, vector<8x288xf32>
    %c0_16 = arith.constant 0 : index
    %c36 = arith.constant 36 : index
    %32 = vector.load %arg22[%c0_16, %c36] : memref<32x342xf32, #tpu.memory_space<vmem>>, vector<8x288xf32>
    %c0_17 = arith.constant 0 : index
    %c37 = arith.constant 37 : index
    %33 = vector.load %arg22[%c0_17, %c37] : memref<32x342xf32, #tpu.memory_space<vmem>>, vector<8x288xf32>
    %c0_18 = arith.constant 0 : index
    %c38 = arith.constant 38 : index
    %34 = vector.load %arg22[%c0_18, %c38] : memref<32x342xf32, #tpu.memory_space<vmem>>, vector<8x288xf32>
    %35 = tpu.concatenate %26, %27, %28, %29, %30, %31, %32, %33, %34 in 0 : vector<8x288xf32>, vector<8x288xf32>, vector<8x288xf32>, vector<8x288xf32>, vector<8x288xf32>, vector<8x288xf32>, vector<8x288xf32>, vector<8x288xf32>, vector<8x288xf32> -> vector<72x288xf32>
    %c0_19 = arith.constant 0 : index
    %c0_20 = arith.constant 0 : index
    %36 = vector.load %arg2[%c0_19, %c0_20] : memref<8x72xf32, #tpu.memory_space<vmem>>, vector<8x72xf32>
    %cst_21 = arith.constant dense<0.000000e+00> : vector<8x288xf32>
    %37 = tpu.matmul %36, %35, %cst_21 {dimension_numbers = #tpu.dot_dimension_numbers<[1], [0], [0], [1], [0, 0, 1, 1], [], []>} : vector<8x72xf32>, vector<72x288xf32>, vector<8x288xf32> -> vector<8x288xf32>
    %c0_22 = arith.constant 0 : index
    %c0_23 = arith.constant 0 : index
    %38 = vector.load %arg3[%c0_22, %c0_23] : memref<8x1xf32, #tpu.memory_space<vmem>>, vector<8x1xf32>
    %39 = vector.broadcast %38 : vector<8x1xf32> to vector<8x288xf32>
    %40 = arith.addf %37, %39 : vector<8x288xf32>
    %cst_24 = arith.constant 0.000000e+00 : f32
    %41 = vector.broadcast %cst_24 : f32 to vector<8x288xf32>
    %42 = arith.cmpf oge, %40, %41 : vector<8x288xf32>
    %cst_25 = arith.constant 1.000000e-01 : f32
    %43 = vector.broadcast %cst_25 : f32 to vector<8x288xf32>
    %44 = arith.mulf %43, %40 : vector<8x288xf32>
    %45 = arith.select %42, %40, %44 : vector<8x288xi1>, vector<8x288xf32>
    %46 = vector.broadcast %20 : vector<1x288xf32> to vector<8x288xf32>
    %47 = arith.mulf %45, %46 : vector<8x288xf32>
    %c8 = arith.constant 8 : index
    %c19_26 = arith.constant 19 : index
    %48 = vector.load %arg22[%c8, %c19_26] : memref<32x342xf32, #tpu.memory_space<vmem>>, vector<8x288xf32>
    tpu.vector_store %arg22[%c8, %c19_26], %47 {strides = array<i32>} : memref<32x342xf32, #tpu.memory_space<vmem>>, vector<8x288xf32>,
    %c0_27 = arith.constant 0 : index
    %c0_28 = arith.constant 0 : index
    %49 = vector.load %arg22[%c0_27, %c0_28] : memref<32x342xf32, #tpu.memory_space<vmem>>, vector<16x288xf32>
    %c0_29 = arith.constant 0 : index
    %c1_30 = arith.constant 1 : index
    %50 = vector.load %arg22[%c0_29, %c1_30] : memref<32x342xf32, #tpu.memory_space<vmem>>, vector<16x288xf32>
    %c0_31 = arith.constant 0 : index
    %c2_32 = arith.constant 2 : index
    %51 = vector.load %arg22[%c0_31, %c2_32] : memref<32x342xf32, #tpu.memory_space<vmem>>, vector<16x288xf32>
    %c0_33 = arith.constant 0 : index
    %c18_34 = arith.constant 18 : index
    %52 = vector.load %arg22[%c0_33, %c18_34] : memref<32x342xf32, #tpu.memory_space<vmem>>, vector<16x288xf32>
    %c0_35 = arith.constant 0 : index
    %c19_36 = arith.constant 19 : index
    %53 = vector.load %arg22[%c0_35, %c19_36] : memref<32x342xf32, #tpu.memory_space<vmem>>, vector<16x288xf32>
    %c0_37 = arith.constant 0 : index
    %c20_38 = arith.constant 20 : index
    %54 = vector.load %arg22[%c0_37, %c20_38] : memref<32x342xf32, #tpu.memory_space<vmem>>, vector<16x288xf32>
    %c0_39 = arith.constant 0 : index
    %c36_40 = arith.constant 36 : index
    %55 = vector.load %arg22[%c0_39, %c36_40] : memref<32x342xf32, #tpu.memory_space<vmem>>, vector<16x288xf32>
    %c0_41 = arith.constant 0 : index
    %c37_42 = arith.constant 37 : index
    %56 = vector.load %arg22[%c0_41, %c37_42] : memref<32x342xf32, #tpu.memory_space<vmem>>, vector<16x288xf32>
    %c0_43 = arith.constant 0 : index
    %c38_44 = arith.constant 38 : index
    %57 = vector.load %arg22[%c0_43, %c38_44] : memref<32x342xf32, #tpu.memory_space<vmem>>, vector<16x288xf32>
    %58 = tpu.concatenate %49, %50, %51, %52, %53, %54, %55, %56, %57 in 0 : vector<16x288xf32>, vector<16x288xf32>, vector<16x288xf32>, vector<16x288xf32>, vector<16x288xf32>, vector<16x288xf32>, vector<16x288xf32>, vector<16x288xf32>, vector<16x288xf32> -> vector<144x288xf32>
    %c0_45 = arith.constant 0 : index
    %c0_46 = arith.constant 0 : index
    %59 = vector.load %arg4[%c0_45, %c0_46] : memref<8x144xf32, #tpu.memory_space<vmem>>, vector<8x144xf32>
    %cst_47 = arith.constant dense<0.000000e+00> : vector<8x288xf32>
    %60 = tpu.matmul %59, %58, %cst_47 {dimension_numbers = #tpu.dot_dimension_numbers<[1], [0], [0], [1], [0, 0, 1, 1], [], []>} : vector<8x144xf32>, vector<144x288xf32>, vector<8x288xf32> -> vector<8x288xf32>
    %c0_48 = arith.constant 0 : index
    %c0_49 = arith.constant 0 : index
    %61 = vector.load %arg5[%c0_48, %c0_49] : memref<8x1xf32, #tpu.memory_space<vmem>>, vector<8x1xf32>
    %62 = vector.broadcast %61 : vector<8x1xf32> to vector<8x288xf32>
    %63 = arith.addf %60, %62 : vector<8x288xf32>
    %cst_50 = arith.constant 0.000000e+00 : f32
    %64 = vector.broadcast %cst_50 : f32 to vector<8x288xf32>
    %65 = arith.cmpf oge, %63, %64 : vector<8x288xf32>
    %cst_51 = arith.constant 1.000000e-01 : f32
    %66 = vector.broadcast %cst_51 : f32 to vector<8x288xf32>
    %67 = arith.mulf %66, %63 : vector<8x288xf32>
    %68 = arith.select %65, %63, %67 : vector<8x288xi1>, vector<8x288xf32>
    %69 = vector.broadcast %20 : vector<1x288xf32> to vector<8x288xf32>
    %70 = arith.mulf %68, %69 : vector<8x288xf32>
    %c16 = arith.constant 16 : index
    %c19_52 = arith.constant 19 : index
    %71 = vector.load %arg22[%c16, %c19_52] : memref<32x342xf32, #tpu.memory_space<vmem>>, vector<8x288xf32>
    tpu.vector_store %arg22[%c16, %c19_52], %70 {strides = array<i32>} : memref<32x342xf32, #tpu.memory_space<vmem>>, vector<8x288xf32>,
    %c0_53 = arith.constant 0 : index
    %c0_54 = arith.constant 0 : index
    %72 = vector.load %arg22[%c0_53, %c0_54] : memref<32x342xf32, #tpu.memory_space<vmem>>, vector<24x288xf32>
    %c0_55 = arith.constant 0 : index
    %c1_56 = arith.constant 1 : index
    %73 = vector.load %arg22[%c0_55, %c1_56] : memref<32x342xf32, #tpu.memory_space<vmem>>, vector<24x288xf32>
    %c0_57 = arith.constant 0 : index
    %c2_58 = arith.constant 2 : index
    %74 = vector.load %arg22[%c0_57, %c2_58] : memref<32x342xf32, #tpu.memory_space<vmem>>, vector<24x288xf32>
    %c0_59 = arith.constant 0 : index
    %c18_60 = arith.constant 18 : index
    %75 = vector.load %arg22[%c0_59, %c18_60] : memref<32x342xf32, #tpu.memory_space<vmem>>, vector<24x288xf32>
    %c0_61 = arith.constant 0 : index
    %c19_62 = arith.constant 19 : index
    %76 = vector.load %arg22[%c0_61, %c19_62] : memref<32x342xf32, #tpu.memory_space<vmem>>, vector<24x288xf32>
    %c0_63 = arith.constant 0 : index
    %c20_64 = arith.constant 20 : index
    %77 = vector.load %arg22[%c0_63, %c20_64] : memref<32x342xf32, #tpu.memory_space<vmem>>, vector<24x288xf32>
    %c0_65 = arith.constant 0 : index
    %c36_66 = arith.constant 36 : index
    %78 = vector.load %arg22[%c0_65, %c36_66] : memref<32x342xf32, #tpu.memory_space<vmem>>, vector<24x288xf32>
    %c0_67 = arith.constant 0 : index
    %c37_68 = arith.constant 37 : index
    %79 = vector.load %arg22[%c0_67, %c37_68] : memref<32x342xf32, #tpu.memory_space<vmem>>, vector<24x288xf32>
    %c0_69 = arith.constant 0 : index
    %c38_70 = arith.constant 38 : index
    %80 = vector.load %arg22[%c0_69, %c38_70] : memref<32x342xf32, #tpu.memory_space<vmem>>, vector<24x288xf32>
    %81 = tpu.concatenate %72, %73, %74, %75, %76, %77, %78, %79, %80 in 0 : vector<24x288xf32>, vector<24x288xf32>, vector<24x288xf32>, vector<24x288xf32>, vector<24x288xf32>, vector<24x288xf32>, vector<24x288xf32>, vector<24x288xf32>, vector<24x288xf32> -> vector<216x288xf32>
    %c0_71 = arith.constant 0 : index
    %c0_72 = arith.constant 0 : index
    %82 = vector.load %arg6[%c0_71, %c0_72] : memref<8x216xf32, #tpu.memory_space<vmem>>, vector<8x216xf32>
    %cst_73 = arith.constant dense<0.000000e+00> : vector<8x288xf32>
    %83 = tpu.matmul %82, %81, %cst_73 {dimension_numbers = #tpu.dot_dimension_numbers<[1], [0], [0], [1], [0, 0, 1, 1], [], []>} : vector<8x216xf32>, vector<216x288xf32>, vector<8x288xf32> -> vector<8x288xf32>
    %c0_74 = arith.constant 0 : index
    %c0_75 = arith.constant 0 : index
    %84 = vector.load %arg7[%c0_74, %c0_75] : memref<8x1xf32, #tpu.memory_space<vmem>>, vector<8x1xf32>
    %85 = vector.broadcast %84 : vector<8x1xf32> to vector<8x288xf32>
    %86 = arith.addf %83, %85 : vector<8x288xf32>
    %cst_76 = arith.constant 0.000000e+00 : f32
    %87 = vector.broadcast %cst_76 : f32 to vector<8x288xf32>
    %88 = arith.cmpf oge, %86, %87 : vector<8x288xf32>
    %cst_77 = arith.constant 1.000000e-01 : f32
    %89 = vector.broadcast %cst_77 : f32 to vector<8x288xf32>
    %90 = arith.mulf %89, %86 : vector<8x288xf32>
    %91 = arith.select %88, %86, %90 : vector<8x288xi1>, vector<8x288xf32>
    %92 = vector.broadcast %20 : vector<1x288xf32> to vector<8x288xf32>
    %93 = arith.mulf %91, %92 : vector<8x288xf32>
    %c24 = arith.constant 24 : index
    %c19_78 = arith.constant 19 : index
    %94 = vector.load %arg22[%c24, %c19_78] : memref<32x342xf32, #tpu.memory_space<vmem>>, vector<8x288xf32>
    tpu.vector_store %arg22[%c24, %c19_78], %93 {strides = array<i32>} : memref<32x342xf32, #tpu.memory_space<vmem>>, vector<8x288xf32>,
    %c0_79 = arith.constant 0 : index
    %c19_80 = arith.constant 19 : index
    %95 = vector.load %arg22[%c0_79, %c19_80] : memref<32x342xf32, #tpu.memory_space<vmem>>, vector<32x288xf32>
    %96 = vector.extract_strided_slice %95 {offsets = [0, 0], sizes = [8, 288], strides = [1, 1]} : vector<32x288xf32> to vector<8x288xf32>
    %c0_81 = arith.constant 0 : index
    %c0_82 = arith.constant 0 : index
    %97 = vector.load %arg8[%c0_81, %c0_82] : memref<8x32xf32, #tpu.memory_space<vmem>>, vector<8x32xf32>
    %cst_83 = arith.constant dense<0.000000e+00> : vector<8x288xf32>
    %98 = tpu.matmul %97, %95, %cst_83 {dimension_numbers = #tpu.dot_dimension_numbers<[1], [0], [0], [1], [0, 0, 1, 1], [], []>} : vector<8x32xf32>, vector<32x288xf32>, vector<8x288xf32> -> vector<8x288xf32>
    %c0_84 = arith.constant 0 : index
    %c0_85 = arith.constant 0 : index
    %99 = vector.load %arg9[%c0_84, %c0_85] : memref<8x1xf32, #tpu.memory_space<vmem>>, vector<8x1xf32>
    %100 = vector.broadcast %99 : vector<8x1xf32> to vector<8x288xf32>
    %101 = arith.addf %98, %100 : vector<8x288xf32>
    %102 = arith.addf %101, %96 : vector<8x288xf32>
    %103 = vector.broadcast %20 : vector<1x288xf32> to vector<8x288xf32>
    %104 = arith.mulf %102, %103 : vector<8x288xf32>
    %c0_86 = arith.constant 0 : index
    %c19_87 = arith.constant 19 : index
    %105 = vector.load %arg22[%c0_86, %c19_87] : memref<32x342xf32, #tpu.memory_space<vmem>>, vector<8x288xf32>
    tpu.vector_store %arg22[%c0_86, %c19_87], %104 {strides = array<i32>} : memref<32x342xf32, #tpu.memory_space<vmem>>, vector<8x288xf32>,
    %c0_88 = arith.constant 0 : index
    %c0_89 = arith.constant 0 : index
    %106 = vector.load %arg18[%c0_88, %c0_89] : memref<8x8xf32, #tpu.memory_space<vmem>>, vector<8x8xf32>
    %cst_90 = arith.constant dense<0.000000e+00> : vector<8x288xf32>
    %107 = tpu.matmul %106, %104, %cst_90 {dimension_numbers = #tpu.dot_dimension_numbers<[1], [0], [0], [1], [0, 0, 1, 1], [], []>} : vector<8x8xf32>, vector<8x288xf32>, vector<8x288xf32> -> vector<8x288xf32>
    %c0_91 = arith.constant 0 : index
    %c0_92 = arith.constant 0 : index
    %108 = vector.load %arg22[%c0_91, %c0_92] : memref<32x342xf32, #tpu.memory_space<vmem>>, vector<8x288xf32>
    %c0_93 = arith.constant 0 : index
    %c1_94 = arith.constant 1 : index
    %109 = vector.load %arg22[%c0_93, %c1_94] : memref<32x342xf32, #tpu.memory_space<vmem>>, vector<8x288xf32>
    %c0_95 = arith.constant 0 : index
    %c2_96 = arith.constant 2 : index
    %110 = vector.load %arg22[%c0_95, %c2_96] : memref<32x342xf32, #tpu.memory_space<vmem>>, vector<8x288xf32>
    %c0_97 = arith.constant 0 : index
    %c18_98 = arith.constant 18 : index
    %111 = vector.load %arg22[%c0_97, %c18_98] : memref<32x342xf32, #tpu.memory_space<vmem>>, vector<8x288xf32>
    %c0_99 = arith.constant 0 : index
    %c19_100 = arith.constant 19 : index
    %112 = vector.load %arg22[%c0_99, %c19_100] : memref<32x342xf32, #tpu.memory_space<vmem>>, vector<8x288xf32>
    %c0_101 = arith.constant 0 : index
    %c20_102 = arith.constant 20 : index
    %113 = vector.load %arg22[%c0_101, %c20_102] : memref<32x342xf32, #tpu.memory_space<vmem>>, vector<8x288xf32>
    %c0_103 = arith.constant 0 : index
    %c36_104 = arith.constant 36 : index
    %114 = vector.load %arg22[%c0_103, %c36_104] : memref<32x342xf32, #tpu.memory_space<vmem>>, vector<8x288xf32>
    %c0_105 = arith.constant 0 : index
    %c37_106 = arith.constant 37 : index
    %115 = vector.load %arg22[%c0_105, %c37_106] : memref<32x342xf32, #tpu.memory_space<vmem>>, vector<8x288xf32>
    %c0_107 = arith.constant 0 : index
    %c38_108 = arith.constant 38 : index
    %116 = vector.load %arg22[%c0_107, %c38_108] : memref<32x342xf32, #tpu.memory_space<vmem>>, vector<8x288xf32>
    %117 = tpu.concatenate %108, %109, %110, %111, %112, %113, %114, %115, %116 in 0 : vector<8x288xf32>, vector<8x288xf32>, vector<8x288xf32>, vector<8x288xf32>, vector<8x288xf32>, vector<8x288xf32>, vector<8x288xf32>, vector<8x288xf32>, vector<8x288xf32> -> vector<72x288xf32>
    %c0_109 = arith.constant 0 : index
    %c0_110 = arith.constant 0 : index
    %118 = vector.load %arg10[%c0_109, %c0_110] : memref<8x72xf32, #tpu.memory_space<vmem>>, vector<8x72xf32>
    %cst_111 = arith.constant dense<0.000000e+00> : vector<8x288xf32>
    %119 = tpu.matmul %118, %117, %cst_111 {dimension_numbers = #tpu.dot_dimension_numbers<[1], [0], [0], [1], [0, 0, 1, 1], [], []>} : vector<8x72xf32>, vector<72x288xf32>, vector<8x288xf32> -> vector<8x288xf32>
    %c0_112 = arith.constant 0 : index
    %c0_113 = arith.constant 0 : index
    %120 = vector.load %arg11[%c0_112, %c0_113] : memref<8x1xf32, #tpu.memory_space<vmem>>, vector<8x1xf32>
    %121 = vector.broadcast %120 : vector<8x1xf32> to vector<8x288xf32>
    %122 = arith.addf %119, %121 : vector<8x288xf32>
    %cst_114 = arith.constant 0.000000e+00 : f32
    %123 = vector.broadcast %cst_114 : f32 to vector<8x288xf32>
    %124 = arith.cmpf oge, %122, %123 : vector<8x288xf32>
    %cst_115 = arith.constant 1.000000e-01 : f32
    %125 = vector.broadcast %cst_115 : f32 to vector<8x288xf32>
    %126 = arith.mulf %125, %122 : vector<8x288xf32>
    %127 = arith.select %124, %122, %126 : vector<8x288xi1>, vector<8x288xf32>
    %128 = vector.broadcast %20 : vector<1x288xf32> to vector<8x288xf32>
    %129 = arith.mulf %127, %128 : vector<8x288xf32>
    %c8_116 = arith.constant 8 : index
    %c19_117 = arith.constant 19 : index
    %130 = vector.load %arg22[%c8_116, %c19_117] : memref<32x342xf32, #tpu.memory_space<vmem>>, vector<8x288xf32>
    tpu.vector_store %arg22[%c8_116, %c19_117], %129 {strides = array<i32>} : memref<32x342xf32, #tpu.memory_space<vmem>>, vector<8x288xf32>,
    %c0_118 = arith.constant 0 : index
    %c0_119 = arith.constant 0 : index
    %131 = vector.load %arg22[%c0_118, %c0_119] : memref<32x342xf32, #tpu.memory_space<vmem>>, vector<16x288xf32>
    %c0_120 = arith.constant 0 : index
    %c1_121 = arith.constant 1 : index
    %132 = vector.load %arg22[%c0_120, %c1_121] : memref<32x342xf32, #tpu.memory_space<vmem>>, vector<16x288xf32>
    %c0_122 = arith.constant 0 : index
    %c2_123 = arith.constant 2 : index
    %133 = vector.load %arg22[%c0_122, %c2_123] : memref<32x342xf32, #tpu.memory_space<vmem>>, vector<16x288xf32>
    %c0_124 = arith.constant 0 : index
    %c18_125 = arith.constant 18 : index
    %134 = vector.load %arg22[%c0_124, %c18_125] : memref<32x342xf32, #tpu.memory_space<vmem>>, vector<16x288xf32>
    %c0_126 = arith.constant 0 : index
    %c19_127 = arith.constant 19 : index
    %135 = vector.load %arg22[%c0_126, %c19_127] : memref<32x342xf32, #tpu.memory_space<vmem>>, vector<16x288xf32>
    %c0_128 = arith.constant 0 : index
    %c20_129 = arith.constant 20 : index
    %136 = vector.load %arg22[%c0_128, %c20_129] : memref<32x342xf32, #tpu.memory_space<vmem>>, vector<16x288xf32>
    %c0_130 = arith.constant 0 : index
    %c36_131 = arith.constant 36 : index
    %137 = vector.load %arg22[%c0_130, %c36_131] : memref<32x342xf32, #tpu.memory_space<vmem>>, vector<16x288xf32>
    %c0_132 = arith.constant 0 : index
    %c37_133 = arith.constant 37 : index
    %138 = vector.load %arg22[%c0_132, %c37_133] : memref<32x342xf32, #tpu.memory_space<vmem>>, vector<16x288xf32>
    %c0_134 = arith.constant 0 : index
    %c38_135 = arith.constant 38 : index
    %139 = vector.load %arg22[%c0_134, %c38_135] : memref<32x342xf32, #tpu.memory_space<vmem>>, vector<16x288xf32>
    %140 = tpu.concatenate %131, %132, %133, %134, %135, %136, %137, %138, %139 in 0 : vector<16x288xf32>, vector<16x288xf32>, vector<16x288xf32>, vector<16x288xf32>, vector<16x288xf32>, vector<16x288xf32>, vector<16x288xf32>, vector<16x288xf32>, vector<16x288xf32> -> vector<144x288xf32>
    %c0_136 = arith.constant 0 : index
    %c0_137 = arith.constant 0 : index
    %141 = vector.load %arg12[%c0_136, %c0_137] : memref<8x144xf32, #tpu.memory_space<vmem>>, vector<8x144xf32>
    %cst_138 = arith.constant dense<0.000000e+00> : vector<8x288xf32>
    %142 = tpu.matmul %141, %140, %cst_138 {dimension_numbers = #tpu.dot_dimension_numbers<[1], [0], [0], [1], [0, 0, 1, 1], [], []>} : vector<8x144xf32>, vector<144x288xf32>, vector<8x288xf32> -> vector<8x288xf32>
    %c0_139 = arith.constant 0 : index
    %c0_140 = arith.constant 0 : index
    %143 = vector.load %arg13[%c0_139, %c0_140] : memref<8x1xf32, #tpu.memory_space<vmem>>, vector<8x1xf32>
    %144 = vector.broadcast %143 : vector<8x1xf32> to vector<8x288xf32>
    %145 = arith.addf %142, %144 : vector<8x288xf32>
    %cst_141 = arith.constant 0.000000e+00 : f32
    %146 = vector.broadcast %cst_141 : f32 to vector<8x288xf32>
    %147 = arith.cmpf oge, %145, %146 : vector<8x288xf32>
    %cst_142 = arith.constant 1.000000e-01 : f32
    %148 = vector.broadcast %cst_142 : f32 to vector<8x288xf32>
    %149 = arith.mulf %148, %145 : vector<8x288xf32>
    %150 = arith.select %147, %145, %149 : vector<8x288xi1>, vector<8x288xf32>
    %151 = vector.broadcast %20 : vector<1x288xf32> to vector<8x288xf32>
    %152 = arith.mulf %150, %151 : vector<8x288xf32>
    %c16_143 = arith.constant 16 : index
    %c19_144 = arith.constant 19 : index
    %153 = vector.load %arg22[%c16_143, %c19_144] : memref<32x342xf32, #tpu.memory_space<vmem>>, vector<8x288xf32>
    tpu.vector_store %arg22[%c16_143, %c19_144], %152 {strides = array<i32>} : memref<32x342xf32, #tpu.memory_space<vmem>>, vector<8x288xf32>,
    %c0_145 = arith.constant 0 : index
    %c0_146 = arith.constant 0 : index
    %154 = vector.load %arg22[%c0_145, %c0_146] : memref<32x342xf32, #tpu.memory_space<vmem>>, vector<24x288xf32>
    %c0_147 = arith.constant 0 : index
    %c1_148 = arith.constant 1 : index
    %155 = vector.load %arg22[%c0_147, %c1_148] : memref<32x342xf32, #tpu.memory_space<vmem>>, vector<24x288xf32>
    %c0_149 = arith.constant 0 : index
    %c2_150 = arith.constant 2 : index
    %156 = vector.load %arg22[%c0_149, %c2_150] : memref<32x342xf32, #tpu.memory_space<vmem>>, vector<24x288xf32>
    %c0_151 = arith.constant 0 : index
    %c18_152 = arith.constant 18 : index
    %157 = vector.load %arg22[%c0_151, %c18_152] : memref<32x342xf32, #tpu.memory_space<vmem>>, vector<24x288xf32>
    %c0_153 = arith.constant 0 : index
    %c19_154 = arith.constant 19 : index
    %158 = vector.load %arg22[%c0_153, %c19_154] : memref<32x342xf32, #tpu.memory_space<vmem>>, vector<24x288xf32>
    %c0_155 = arith.constant 0 : index
    %c20_156 = arith.constant 20 : index
    %159 = vector.load %arg22[%c0_155, %c20_156] : memref<32x342xf32, #tpu.memory_space<vmem>>, vector<24x288xf32>
    %c0_157 = arith.constant 0 : index
    %c36_158 = arith.constant 36 : index
    %160 = vector.load %arg22[%c0_157, %c36_158] : memref<32x342xf32, #tpu.memory_space<vmem>>, vector<24x288xf32>
    %c0_159 = arith.constant 0 : index
    %c37_160 = arith.constant 37 : index
    %161 = vector.load %arg22[%c0_159, %c37_160] : memref<32x342xf32, #tpu.memory_space<vmem>>, vector<24x288xf32>
    %c0_161 = arith.constant 0 : index
    %c38_162 = arith.constant 38 : index
    %162 = vector.load %arg22[%c0_161, %c38_162] : memref<32x342xf32, #tpu.memory_space<vmem>>, vector<24x288xf32>
    %163 = tpu.concatenate %154, %155, %156, %157, %158, %159, %160, %161, %162 in 0 : vector<24x288xf32>, vector<24x288xf32>, vector<24x288xf32>, vector<24x288xf32>, vector<24x288xf32>, vector<24x288xf32>, vector<24x288xf32>, vector<24x288xf32>, vector<24x288xf32> -> vector<216x288xf32>
    %c0_163 = arith.constant 0 : index
    %c0_164 = arith.constant 0 : index
    %164 = vector.load %arg14[%c0_163, %c0_164] : memref<8x216xf32, #tpu.memory_space<vmem>>, vector<8x216xf32>
    %cst_165 = arith.constant dense<0.000000e+00> : vector<8x288xf32>
    %165 = tpu.matmul %164, %163, %cst_165 {dimension_numbers = #tpu.dot_dimension_numbers<[1], [0], [0], [1], [0, 0, 1, 1], [], []>} : vector<8x216xf32>, vector<216x288xf32>, vector<8x288xf32> -> vector<8x288xf32>
    %c0_166 = arith.constant 0 : index
    %c0_167 = arith.constant 0 : index
    %166 = vector.load %arg15[%c0_166, %c0_167] : memref<8x1xf32, #tpu.memory_space<vmem>>, vector<8x1xf32>
    %167 = vector.broadcast %166 : vector<8x1xf32> to vector<8x288xf32>
    %168 = arith.addf %165, %167 : vector<8x288xf32>
    %cst_168 = arith.constant 0.000000e+00 : f32
    %169 = vector.broadcast %cst_168 : f32 to vector<8x288xf32>
    %170 = arith.cmpf oge, %168, %169 : vector<8x288xf32>
    %cst_169 = arith.constant 1.000000e-01 : f32
    %171 = vector.broadcast %cst_169 : f32 to vector<8x288xf32>
    %172 = arith.mulf %171, %168 : vector<8x288xf32>
    %173 = arith.select %170, %168, %172 : vector<8x288xi1>, vector<8x288xf32>
    %174 = vector.broadcast %20 : vector<1x288xf32> to vector<8x288xf32>
    %175 = arith.mulf %173, %174 : vector<8x288xf32>
    %c24_170 = arith.constant 24 : index
    %c19_171 = arith.constant 19 : index
    %176 = vector.load %arg22[%c24_170, %c19_171] : memref<32x342xf32, #tpu.memory_space<vmem>>, vector<8x288xf32>
    tpu.vector_store %arg22[%c24_170, %c19_171], %175 {strides = array<i32>} : memref<32x342xf32, #tpu.memory_space<vmem>>, vector<8x288xf32>,
    %c0_172 = arith.constant 0 : index
    %c19_173 = arith.constant 19 : index
    %177 = vector.load %arg22[%c0_172, %c19_173] : memref<32x342xf32, #tpu.memory_space<vmem>>, vector<32x288xf32>
    %178 = vector.extract_strided_slice %177 {offsets = [0, 0], sizes = [8, 288], strides = [1, 1]} : vector<32x288xf32> to vector<8x288xf32>
    %c0_174 = arith.constant 0 : index
    %c0_175 = arith.constant 0 : index
    %179 = vector.load %arg16[%c0_174, %c0_175] : memref<8x32xf32, #tpu.memory_space<vmem>>, vector<8x32xf32>
    %cst_176 = arith.constant dense<0.000000e+00> : vector<8x288xf32>
    %180 = tpu.matmul %179, %177, %cst_176 {dimension_numbers = #tpu.dot_dimension_numbers<[1], [0], [0], [1], [0, 0, 1, 1], [], []>} : vector<8x32xf32>, vector<32x288xf32>, vector<8x288xf32> -> vector<8x288xf32>
    %c0_177 = arith.constant 0 : index
    %c0_178 = arith.constant 0 : index
    %181 = vector.load %arg17[%c0_177, %c0_178] : memref<8x1xf32, #tpu.memory_space<vmem>>, vector<8x1xf32>
    %182 = vector.broadcast %181 : vector<8x1xf32> to vector<8x288xf32>
    %183 = arith.addf %180, %182 : vector<8x288xf32>
    %184 = arith.addf %183, %178 : vector<8x288xf32>
    %185 = vector.broadcast %20 : vector<1x288xf32> to vector<8x288xf32>
    %186 = arith.mulf %184, %185 : vector<8x288xf32>
    %c0_179 = arith.constant 0 : index
    %c19_180 = arith.constant 19 : index
    %187 = vector.load %arg22[%c0_179, %c19_180] : memref<32x342xf32, #tpu.memory_space<vmem>>, vector<8x288xf32>
    tpu.vector_store %arg22[%c0_179, %c19_180], %186 {strides = array<i32>} : memref<32x342xf32, #tpu.memory_space<vmem>>, vector<8x288xf32>,
    %c0_181 = arith.constant 0 : index
    %c0_182 = arith.constant 0 : index
    %188 = vector.load %arg19[%c0_181, %c0_182] : memref<8x8xf32, #tpu.memory_space<vmem>>, vector<8x8xf32>
    %cst_183 = arith.constant dense<0.000000e+00> : vector<8x288xf32>
    %189 = tpu.matmul %188, %186, %cst_183 {dimension_numbers = #tpu.dot_dimension_numbers<[1], [0], [0], [1], [0, 0, 1, 1], [], []>} : vector<8x8xf32>, vector<8x288xf32>, vector<8x288xf32> -> vector<8x288xf32>
    %190 = arith.addf %107, %189 : vector<8x288xf32>
    %c0_184 = arith.constant 0 : index
    %c0_185 = arith.constant 0 : index
    %191 = vector.load %arg20[%c0_184, %c0_185] : memref<8x1xf32, #tpu.memory_space<vmem>>, vector<8x1xf32>
    %192 = vector.broadcast %191 : vector<8x1xf32> to vector<8x288xf32>
    %193 = arith.addf %190, %192 : vector<8x288xf32>
    %c0_186 = arith.constant 0 : index
    %c0_187 = arith.constant 0 : index
    %c0_188 = arith.constant 0 : index
    %194 = vector.load %arg21[%c0_186, %c0_187, %c0_188] : memref<1x8x288xf32, #tpu.memory_space<vmem>>, vector<1x8x288xf32>
    %195 = vector.shape_cast %194 : vector<1x8x288xf32> to vector<8x288xf32>
    %196 = vector.shape_cast %193 : vector<8x288xf32> to vector<1x8x288xf32>
    tpu.vector_store %arg21[%c0_186, %c0_187, %c0_188], %196 {strides = array<i32>} : memref<1x8x288xf32, #tpu.memory_space<vmem>>, vector<1x8x288xf32>,
    return
  }
  func.func @transform_0(%arg0: i32) -> (i32, i32, i32) {
    %c0_i32 = arith.constant 0 : i32
    %c0_i32_0 = arith.constant 0 : i32
    %c0_i32_1 = arith.constant 0 : i32
    return %arg0, %c0_i32, %c0_i32_0 : i32, i32, i32
  }
  func.func @transform_1(%arg0: i32) -> (i32, i32) {
    %c0_i32 = arith.constant 0 : i32
    %c0_i32_0 = arith.constant 0 : i32
    %c0_i32_1 = arith.constant 0 : i32
    return %c0_i32, %c0_i32_0 : i32, i32
  }
  func.func @transform_2(%arg0: i32) -> (i32, i32) {
    %c0_i32 = arith.constant 0 : i32
    %c0_i32_0 = arith.constant 0 : i32
    %c0_i32_1 = arith.constant 0 : i32
    return %c0_i32, %c0_i32_0 : i32, i32
  }
  func.func @transform_3(%arg0: i32) -> (i32, i32) {
    %c0_i32 = arith.constant 0 : i32
    %c0_i32_0 = arith.constant 0 : i32
    %c0_i32_1 = arith.constant 0 : i32
    return %c0_i32, %c0_i32_0 : i32, i32
  }
  func.func @transform_4(%arg0: i32) -> (i32, i32) {
    %c0_i32 = arith.constant 0 : i32
    %c0_i32_0 = arith.constant 0 : i32
    %c0_i32_1 = arith.constant 0 : i32
    return %c0_i32, %c0_i32_0 : i32, i32
  }
  func.func @transform_5(%arg0: i32) -> (i32, i32) {
    %c0_i32 = arith.constant 0 : i32
    %c0_i32_0 = arith.constant 0 : i32
    %c0_i32_1 = arith.constant 0 : i32
    return %c0_i32, %c0_i32_0 : i32, i32
  }
  func.func @transform_6(%arg0: i32) -> (i32, i32) {
    %c0_i32 = arith.constant 0 : i32
    %c0_i32_0 = arith.constant 0 : i32
    %c0_i32_1 = arith.constant 0 : i32
    return %c0_i32, %c0_i32_0 : i32, i32
  }
  func.func @transform_7(%arg0: i32) -> (i32, i32) {
    %c0_i32 = arith.constant 0 : i32
    %c0_i32_0 = arith.constant 0 : i32
    %c0_i32_1 = arith.constant 0 : i32
    return %c0_i32, %c0_i32_0 : i32, i32
  }
  func.func @transform_8(%arg0: i32) -> (i32, i32) {
    %c0_i32 = arith.constant 0 : i32
    %c0_i32_0 = arith.constant 0 : i32
    %c0_i32_1 = arith.constant 0 : i32
    return %c0_i32, %c0_i32_0 : i32, i32
  }
  func.func @transform_9(%arg0: i32) -> (i32, i32) {
    %c0_i32 = arith.constant 0 : i32
    %c0_i32_0 = arith.constant 0 : i32
    %c0_i32_1 = arith.constant 0 : i32
    return %c0_i32, %c0_i32_0 : i32, i32
  }
  func.func @transform_10(%arg0: i32) -> (i32, i32) {
    %c0_i32 = arith.constant 0 : i32
    %c0_i32_0 = arith.constant 0 : i32
    %c0_i32_1 = arith.constant 0 : i32
    return %c0_i32, %c0_i32_0 : i32, i32
  }
  func.func @transform_11(%arg0: i32) -> (i32, i32) {
    %c0_i32 = arith.constant 0 : i32
    %c0_i32_0 = arith.constant 0 : i32
    %c0_i32_1 = arith.constant 0 : i32
    return %c0_i32, %c0_i32_0 : i32, i32
  }
  func.func @transform_12(%arg0: i32) -> (i32, i32) {
    %c0_i32 = arith.constant 0 : i32
    %c0_i32_0 = arith.constant 0 : i32
    %c0_i32_1 = arith.constant 0 : i32
    return %c0_i32, %c0_i32_0 : i32, i32
  }
  func.func @transform_13(%arg0: i32) -> (i32, i32) {
    %c0_i32 = arith.constant 0 : i32
    %c0_i32_0 = arith.constant 0 : i32
    %c0_i32_1 = arith.constant 0 : i32
    return %c0_i32, %c0_i32_0 : i32, i32
  }
  func.func @transform_14(%arg0: i32) -> (i32, i32) {
    %c0_i32 = arith.constant 0 : i32
    %c0_i32_0 = arith.constant 0 : i32
    %c0_i32_1 = arith.constant 0 : i32
    return %c0_i32, %c0_i32_0 : i32, i32
  }
  func.func @transform_15(%arg0: i32) -> (i32, i32) {
    %c0_i32 = arith.constant 0 : i32
    %c0_i32_0 = arith.constant 0 : i32
    %c0_i32_1 = arith.constant 0 : i32
    return %c0_i32, %c0_i32_0 : i32, i32
  }
  func.func @transform_16(%arg0: i32) -> (i32, i32) {
    %c0_i32 = arith.constant 0 : i32
    %c0_i32_0 = arith.constant 0 : i32
    %c0_i32_1 = arith.constant 0 : i32
    return %c0_i32, %c0_i32_0 : i32, i32
  }
  func.func @transform_17(%arg0: i32) -> (i32, i32) {
    %c0_i32 = arith.constant 0 : i32
    %c0_i32_0 = arith.constant 0 : i32
    %c0_i32_1 = arith.constant 0 : i32
    return %c0_i32, %c0_i32_0 : i32, i32
  }
  func.func @transform_18(%arg0: i32) -> (i32, i32) {
    %c0_i32 = arith.constant 0 : i32
    %c0_i32_0 = arith.constant 0 : i32
    %c0_i32_1 = arith.constant 0 : i32
    return %c0_i32, %c0_i32_0 : i32, i32
  }
  func.func @transform_19(%arg0: i32) -> (i32, i32) {
    %c0_i32 = arith.constant 0 : i32
    %c0_i32_0 = arith.constant 0 : i32
    %c0_i32_1 = arith.constant 0 : i32
    return %c0_i32, %c0_i32_0 : i32, i32
  }
  func.func @transform_20(%arg0: i32) -> (i32, i32, i32) {
    %c0_i32 = arith.constant 0 : i32
    %c0_i32_0 = arith.constant 0 : i32
    %c0_i32_1 = arith.constant 0 : i32
    return %arg0, %c0_i32, %c0_i32_0 : i32, i32, i32
  }
}

</mosaic_0001>

<bundles_post_ra>
// kernel: _lambda_.1
= control target key start
LH: loop header
LB: loop body
LE: loop exit
PB: predicated region body
PF: predicated region fallthrough
CT: control target
= control target key end

     0   :  { %s6279_s0 = inlined_call_operand.vmem [shape: f32[2,8,288], index: 0, kind: input, shape index: {}]   ;;  %s6280_s1 = inlined_call_operand.vmem [shape: f32[8,72], index: 1, kind: input, shape index: {}]   ;;  %s6281_s2 = inlined_call_operand.vmem [shape: f32[8,1], index: 2, kind: input, shape index: {}]   ;;  %s6282_s3 = inlined_call_operand.vmem [shape: f32[8,144], index: 3, kind: input, shape index: {}]   ;;  %s6283_s4 = inlined_call_operand.vmem [shape: f32[8,1], index: 4, kind: input, shape index: {}]   ;;  %s6284_s5 = inlined_call_operand.vmem [shape: f32[8,216], index: 5, kind: input, shape index: {}]   ;;  %s6285_s6 = inlined_call_operand.vmem [shape: f32[8,1], index: 6, kind: input, shape index: {}]   ;;  %s6286_s7 = inlined_call_operand.vmem [shape: f32[8,32], index: 7, kind: input, shape index: {}]   ;;  %s6287_s8 = inlined_call_operand.vmem [shape: f32[8,1], index: 8, kind: input, shape index: {}]   ;;  %s6288_s9 = inlined_call_operand.vmem [shape: f32[8,72], index: 9, kind: input, shape index: {}]   ;;  %s6289_s10 = inlined_call_operand.vmem [shape: f32[8,1], index: 10, kind: input, shape index: {}]   ;;  %s6290_s11 = inlined_call_operand.vmem [shape: f32[8,144], index: 11, kind: input, shape index: {}]   ;;  %s6291_s12 = inlined_call_operand.vmem [shape: f32[8,1], index: 12, kind: input, shape index: {}]   ;;  %s6292_s13 = inlined_call_operand.vmem [shape: f32[8,216], index: 13, kind: input, shape index: {}]   ;;  %s6293_s14 = inlined_call_operand.vmem [shape: f32[8,1], index: 14, kind: input, shape index: {}]   ;;  %s6294_s15 = inlined_call_operand.vmem [shape: f32[8,32], index: 15, kind: input, shape index: {}]   ;;  %s6295_s16 = inlined_call_operand.vmem [shape: f32[8,1], index: 16, kind: input, shape index: {}]   ;;  %s6296_s17 = inlined_call_operand.vmem [shape: f32[8,8], index: 17, kind: input, shape index: {}]   ;;  %s6297_s18 = inlined_call_operand.vmem [shape: f32[8,8], index: 18, kind: input, shape index: {}]   ;;  %s6298_s19 = inlined_call_operand.vmem [shape: f32[8,1], index: 19, kind: input, shape index: {}]   ;;  %s6299_s20 = inlined_call_operand.vmem [shape: f32[2,8,288], index: 20, kind: output, shape index: {}]  }
   0x1   :  { %6314 = sst [smem:[#allocation3_spill]] %s6279_s0 }
   0x2   :  { %6315 = sst [smem:[#allocation4_spill]] %s6280_s1  ;;  %s5144_s1 = smov 0  }
   0x3   :  { %6316 = sst [smem:[#allocation5_spill]] %s6281_s2 }
   0x4   :  { %6317 = sst [smem:[#allocation6_spill]] %s6282_s3 }
   0x5   :  { %6318 = sst [smem:[#allocation7_spill]] %s6283_s4 }
   0x6 LB: > { %s3793_s22 = sadd.s32 4294967295, %s5024_s1   ;;  %p3797_p0 = scmp.ge.s32.totalorder %s5024_s1, 1  ;;  %s5024_s1 = sphi %s5144_s1, %s30_s1  }
   0x7   : > { %p562_p1 = scmp.lt.s32.totalorder %s5024_s1, 3 }
   0x9   : > { %p563_p2 = pnand %p3797_p0, %p562_p1 }
   0xa   : > { %p620_p3 = scmp.lt.s32.totalorder (!%p563_p2), %s3793_s22, 1  ;;  %vm693_vm0 = vcmask (!%p563_p2), 703488   ;;  %v5026_v0 = vmov (!%p563_p2), 0.0   ;;  %s6319_s25 = sld [smem:[#allocation3_spill]] (!%p563_p2)  ;;  %vm722_vm1 = vcmask (!%p563_p2), 1047704   ;;  %vm716_vm2 = vcmask (!%p563_p2), 154624  }
   0xb   : > { %566 = sbr.rel (%p563_p2) target bundleno = 4242 (0x1092), region = 100  ;;  %691 = vst [vmem:[#allocation2] sm:$0xff] (!%p563_p2), %v5026_v0  ;;  %695 = vst [vmem:[#allocation2 + $0x18] sm:$0xff] (!%p563_p2), %v5026_v0  ;;  %904 = vmatprep.mubr.f32.mxu0 (!%p563_p2), %v5026_v0  ;;  %s5027_s26 = smov (!%p563_p2), 19   ;;  %vm725_vm3 = vcmask (!%p563_p2), 416768   ;;  %v5030_v10 = vmov (!%p563_p2), 0.0|0.0  }
   0xc   : > { %698 = vst [vmem:[#allocation2 + $0x30] sm:$0xff] (!%p563_p2), %v5026_v0  ;;  %701 = vst [vmem:[#allocation2 + $0x48] sm:$0xff] (!%p563_p2), %v5026_v0  ;;  %s5028_s27 = smov (!%p563_p2), 126   ;;  %s5029_s28 = smov (!%p563_p2), 127   ;;  %3949 = vmatprep.subr.bf16.mxu1 (!%p563_p2), %v5030_v10  ;;  %vm6302_vm4 = vmmov (!%p563_p2), 0   ;;  %v5037_v13 = vmov (!%p563_p2), 0  }
   0xd   : > { %694 = vst.msk [vmem:[#allocation2 + $0x10] sm:$0xff] (!%p563_p2), %vm693_vm0, %v5026_v0  ;;  %697 = vst.msk [vmem:[#allocation2 + $0x28] sm:$0xff] (!%p563_p2), %vm693_vm0, %v5026_v0  ;;  %s5031_s4 = smov (!%p563_p2), 109   ;;  %s5032_s29 = smov (!%p563_p2), 110   ;;  %3877 = vmatprep.mubr.msk.f32.mxu1 (!%p563_p2), %vm6302_vm4, %v5026_v0  ;;  %4390 = vset.pattern.permute.xlu0 (!%p563_p2), %v5037_v13  ;;  %vm739_vm5 = vcmask (!%p563_p2), 1039360   ;;  %vm763_vm6 = vcmask (!%p563_p2), 900096  }
   0xe   : > { %700 = vst.msk [vmem:[#allocation2 + $0x40] sm:$0xff] (!%p563_p2), %vm693_vm0, %v5026_v0  ;;  %703 = vst.msk [vmem:[#allocation2 + $0x58] sm:$0xff] (!%p563_p2), %vm693_vm0, %v5026_v0  ;;  %s6312_s30 = smov (!%p563_p2), 92   ;;  %s6310_s0 = smov (!%p563_p2), 108   ;;  %4511 = vset.pattern.permute.xlu1 (!%p563_p2), %v5037_v13  ;;  %vm751_vm7 = vcmask (!%p563_p2), 1031168   ;;  %vm6307_vm8 = vcmask (!%p563_p2), 883712  }
   0xf   : > { %s5035_s21 = smov (!%p563_p2), 91   ;;  %s5038_s24 = smov (!%p563_p2), 90   ;;  %vm6308_vm9 = vcmask (!%p563_p2), 891904   ;;  %vm6305_vm10 = vcmask (!%p563_p2), 744448   ;;  %vm6306_vm11 = vcmask (!%p563_p2), 752640   ;;  %vm6304_vm12 = vcmask (!%p563_p2), 736256  }
  0x10   : > { %vm6301_vm13 = vcmask (!%p563_p2), 588800  }
  0x12   : > { %s6459_s22 = smov (!%p620_p3, %s3793_s22), 1 }
  0x13   : > { %s6309_s23 = smul.u32 24, %s6459_s22 }
  0x15   : > { %s624_s3 = scalar_lea.vmem %s6319_s25, %s6309_s23  ;;  %s6325_s25 = sld [smem:[#allocation7_spill]] }
  0x16   : > { %v704_v1 = vld [vmem:[%s624_s3] sm:$0xff]  ;;  %v706_v2 = vld [vmem:[%s624_s3 + $0x10] sm:$0xff]  ;;  %v705_v3 = vld [vmem:[%s624_s3 + $0x8] sm:$0xff]  ;;  %s6320_s3 = sld [smem:[#allocation5_spill]]  ;;  %s6385_s23 = smov 108  }
  0x17   : > { %710 = vrot.lane.b32.xlu0 %v704_v1, %s5027_s26  ;;  %714 = vrot.lane.b32.xlu1 %v706_v2, %s5027_s26 }
  0x1b   : > { %712 = vrot.lane.b32.xlu0 %v705_v3, %s5027_s26 }
  0x1c   : > { %v830_v14 = vld [vmem:[%s6320_s3] sm:$0xff]  ;;  %s6321_s3 = sld [smem:[#allocation4_spill]] }
  0x89   : > { %v711_v4 = vpop.permute.xlu0 %710  ;;  %v715_v5 = vpop.permute.xlu1 %714 }
  0x8a   : > { %723 = vst.msk [vmem:[#allocation2] sm:$0xff] %vm722_vm1, %v711_v4 }
  0x8d   : > { %v713_v6 = vpop.permute.xlu0 %712 }
  0x8e   : > { %v5174_v7 = vsel %vm716_vm2, %v711_v4, %v713_v6  ;;  %v718_v8 = vsel %vm716_vm2, %v713_v6, %v715_v5 }
  0x8f   : > { %724 = vst [vmem:[#allocation2 + $0x8] sm:$0xff] %v5174_v7  ;;  %726 = vst.msk [vmem:[#allocation2 + $0x10] sm:$0xff] %vm725_vm3, %v718_v8 }
  0x91   : > { %v5179_v9 = vld [vmem:[#allocation2] sm:$0xff] }
  0x92   : > { %745 = vrot.lane.b32.xlu1 %v5179_v9, %s5028_s27  ;;  %733 = vrot.lane.b32.xlu0 %v5179_v9, %s5029_s28 }
  0x96   : > { %769 = vrot.lane.b32.xlu1 %v5179_v9, %s5031_s4  ;;  %757 = vrot.lane.b32.xlu0 %v5179_v9, %s5032_s29  ;;  %v5190_v11 = vld [vmem:[#allocation2 + $0x10] sm:$0xff] }
  0x97   : > { %v5198_v12 = vpack.i.bf16 %v5190_v11, %v5174_v7 }
  0x9a   : > { %793 = vrot.lane.b32.xlu1 %v5179_v9, %s6312_s30  ;;  %781 = vrot.lane.b32.xlu0 %v5179_v9, %s6310_s0 }
  0x9e   : > { %4366 = vrot.lane.b32.xlu0 %v5198_v12, %s5032_s29  ;;  %4356 = vrot.lane.b32.xlu1 %v5198_v12, %s5029_s28 }
  0xa2   : > { %4376 = vrot.lane.b32.xlu0 %v5198_v12, %s6310_s0  ;;  %4361 = vrot.lane.b32.xlu1 %v5198_v12, %s5028_s27 }
  0xa6   : > { %4386 = vrot.lane.b32.xlu0 %v5198_v12, %s5035_s21  ;;  %4371 = vrot.lane.b32.xlu1 %v5198_v12, %s5031_s4 }
  0xaa   : > { %805 = vrot.lane.b32.xlu0 %v5179_v9, %s5035_s21  ;;  %4381 = vrot.lane.b32.xlu1 %v5198_v12, %s6312_s30 }
  0xae   : > { %821 = vrot.lane.b32.xlu0 %v5190_v11, %s5038_s24  ;;  %819 = vrot.lane.b32.xlu1 %v5174_v7, %s5038_s24 }
  0xb2   : > { %817 = vrot.lane.b32.xlu1 %v5179_v9, %s5038_s24  ;;  %833 = vperm.xlu0 %4390, %v830_v14   ;;  %v829_v14 = vld [vmem:[%s6321_s3] sm:$0xff]  ;;  %s6324_s3 = sld [smem:[#allocation6_spill]] }
 0x104   : > { %v746_v15 = vpop.permute.xlu1 %745  ;;  %v734_v16 = vpop.permute.xlu0 %733 }
 0x108   : > { %v770_v17 = vpop.permute.xlu1 %769  ;;  %v758_v18 = vpop.permute.xlu0 %757 }
 0x10c   : > { %v5227_v19 = vpop.permute.xlu1 %793  ;;  %v782_v20 = vpop.permute.xlu0 %781 }
 0x110   : > { %v4357_v21 = vpop.permute.xlu1 %4356  ;;  %v4367_v22 = vpop.permute.xlu0 %4366 }
 0x111   : > { %v4358_v23 = vunpack.i.l.bf16 %v4357_v21  ;;  %v4359_v24 = vunpack.i.h.bf16 %v4357_v21  ;;  %v4369_v25 = vunpack.i.h.bf16 %v4367_v22  ;;  %v4368_v26 = vunpack.i.l.bf16 %v4367_v22 }
 0x113   : > { %v3950_v27 = vpack.c.bf16 %v4359_v24, %v5190_v11  ;;  %v741_v28 = vsel %vm739_vm5, %v4358_v23, %v4359_v24  ;;  %v740_v29 = vsel %vm739_vm5, %v734_v16, %v4358_v23  ;;  %v765_v38 = vsel %vm763_vm6, %v4368_v26, %v4369_v25 }
 0x114   : > { %v4362_v30 = vpop.permute.xlu1 %4361  ;;  %v4377_v31 = vpop.permute.xlu0 %4376  ;;  %v3933_v32 = vpack.c.bf16 %v741_v28, %v5174_v7  ;;  %v3935_v33 = vpack.c.bf16 %v740_v29, %v5179_v9  ;;  %v764_v42 = vsel %vm763_vm6, %v758_v18, %v4368_v26 }
 0x115   : > { %v4364_v34 = vunpack.i.h.bf16 %v4362_v30  ;;  %v4363_v35 = vunpack.i.l.bf16 %v4362_v30  ;;  %3951 = vmatpush3.bf16.msra.mxu1 %v3950_v27  ;;  %v4379_v36 = vunpack.i.h.bf16 %v4377_v31  ;;  %v4378_v37 = vunpack.i.l.bf16 %v4377_v31 }
 0x116   : > { %3934 = vmatprep.subr.bf16.mxu0 %v3933_v32  ;;  %3952 = vmatprep.subr.bf16.mxu1 %v5030_v10 }
 0x117   : > { %3936 = vmatpush1.bf16.msra.mxu0 %v3935_v33  ;;  %v3953_v39 = vpack.c.bf16 %v4369_v25, %v4364_v34  ;;  %v753_v40 = vsel %vm751_vm7, %v4363_v35, %v4364_v34  ;;  %v752_v41 = vsel %vm751_vm7, %v746_v15, %v4363_v35  ;;  %v789_v51 = vsel %vm6307_vm8, %v4378_v37, %v4379_v36 }
 0x118   : > { %v4372_v43 = vpop.permute.xlu1 %4371  ;;  %v4387_v44 = vpop.permute.xlu0 %4386  ;;  %v3937_v45 = vpack.c.bf16 %v765_v38, %v753_v40  ;;  %v3939_v46 = vpack.c.bf16 %v764_v42, %v752_v41  ;;  %v788_v55 = vsel %vm6307_vm8, %v782_v20, %v4378_v37 }
 0x119   : > { %v4374_v47 = vunpack.i.h.bf16 %v4372_v43  ;;  %v4373_v48 = vunpack.i.l.bf16 %v4372_v43  ;;  %3954 = vmatpush3.bf16.msra.mxu1 %v3953_v39  ;;  %v4389_v49 = vunpack.i.h.bf16 %v4387_v44  ;;  %v4388_v50 = vunpack.i.l.bf16 %v4387_v44 }
 0x11a   : > { %3938 = vmatprep.subr.bf16.mxu0 %v3937_v45  ;;  %3955 = vmatprep.subr.bf16.mxu1 %v5030_v10 }
 0x11b   : > { %3940 = vmatpush1.bf16.msra.mxu0 %v3939_v46  ;;  %v3956_v52 = vpack.c.bf16 %v4379_v36, %v4374_v47  ;;  %v777_v53 = vsel %vm6308_vm9, %v4373_v48, %v4374_v47  ;;  %v776_v54 = vsel %vm6308_vm9, %v770_v17, %v4373_v48  ;;  %v813_v62 = vsel %vm6305_vm10, %v4388_v50, %v4389_v49 }
 0x11c   : > { %v4382_v56 = vpop.permute.xlu1 %4381  ;;  %v806_v57 = vpop.permute.xlu0 %805  ;;  %v3941_v58 = vpack.c.bf16 %v789_v51, %v777_v53  ;;  %v3943_v59 = vpack.c.bf16 %v788_v55, %v776_v54  ;;  %v630_v17 = vlaneseq }
 0x11d   : > { %v4384_v60 = vunpack.i.h.bf16 %v4382_v56  ;;  %v4383_v61 = vunpack.i.l.bf16 %v4382_v56  ;;  %3957 = vmatpush3.bf16.msra.mxu1 %v3956_v52  ;;  %v812_v1 = vsel %vm6305_vm10, %v806_v57, %v4388_v50 }
 0x11e   : > { %3942 = vmatprep.subr.bf16.mxu0 %v3941_v58  ;;  %3958 = vmatprep.subr.bf16.mxu1 %v5030_v10  ;;  %v631_v18 = vand.u32 127, %v630_v17 }
 0x11f   : > { %v800_v63 = vsel %vm6306_vm11, %v5227_v19, %v4383_v61  ;;  %3944 = vmatpush1.bf16.msra.mxu0 %v3943_v59  ;;  %v3959_v2 = vpack.c.bf16 %v4389_v49, %v4384_v60  ;;  %v801_v3 = vsel %vm6306_vm11, %v4383_v61, %v4384_v60 }
 0x120   : > { %v3947_v4 = vpack.c.bf16 %v812_v1, %v800_v63  ;;  %v820_v5 = vpop.permute.xlu1 %819  ;;  %v822_v6 = vpop.permute.xlu0 %821  ;;  %v3945_v8 = vpack.c.bf16 %v813_v62, %v801_v3  ;;  %v633_v19 = vadd.s32 256, %v631_v18  ;;  %v632_v24 = vadd.s32 128, %v631_v18 }
 0x121   : > { %3960 = vmatpush3.bf16.msra.mxu1 %v3959_v2  ;;  %v825_v13 = vsel %vm6304_vm12, %v820_v5, %v822_v6  ;;  %v5262_v22 = vmul.u32.u64.low 3817748708, %v631_v18  ;;  %v5263_v23 = vmul.u32.u64.high 3817748708, %v631_v18, %v5262_v22 }
 0x122   : > { %3946 = vmatprep.subr.bf16.mxu0 %v3945_v8  ;;  %3875 = vmatprep.subr.mxu1 %v5026_v0  ;;  %v5259_v20 = vmul.u32.u64.low 3817748708, %v633_v19  ;;  %v5260_v21 = vmul.u32.u64.high 3817748708, %v633_v19, %v5259_v20  ;;  %v5265_v25 = vmul.u32.u64.low 3817748708, %v632_v24  ;;  %v5266_v26 = vmul.u32.u64.high 3817748708, %v632_v24, %v5265_v25 }
 0x123   : > { %3948 = vmatpush1.bf16.msra.mxu0 %v3947_v4  ;;  %v640_v28 = vshrl.u32 %v5263_v23, 4 }
 0x124   : > { %v818_v15 = vpop.permute.xlu1 %817  ;;  %856 = vmatprep.subr.mxu0 %v825_v13  ;;  %v662_v27 = vshrl.u32 %v5260_v21, 4  ;;  %v651_v31 = vshrl.u32 %v5266_v26, 4 }
 0x125   : > { %3876 = vmatpush3.msra.mxu1 %v822_v6  ;;  %v824_v16 = vsel %vm6304_vm12, %v818_v15, %v820_v5  ;;  %v641_v30 = vmul.u32 18, %v640_v28  ;;  %v1200_v15 = vld [vmem:[%s6325_s25] sm:$0xff]  ;;  %s6418_s25 = smov 92  }
 0x126   : > { %3878 = vmatmul.mubr.msk.f32.vlgmr.msra.gmra.mrb[0].mxu1 %vm6301_vm13, %v829_v14  ;;  %3997 = vmatprep.subr.bf16.mxu1 %v5030_v10  ;;  %v663_v29 = vmul.u32 18, %v662_v27  ;;  %v652_v34 = vmul.u32 18, %v651_v31 }
 0x127   : > { %857 = vmatpush1.msra.mxu0 %v824_v16  ;;  %v642_v33 = vsub.s32 %v631_v18, %v641_v30 }
 0x128   : > { %3803 = vmatmul.mubr.msk.f32.vlgmr.msra.gmra.mrb[0].mxu0 %vm6301_vm13, %v829_v14  ;;  %v664_v32 = vsub.s32 %v633_v19, %v663_v29  ;;  %v653_v36 = vsub.s32 %v632_v24, %v652_v34 }
 0x129   : > { %vm667_vm13 = vcmp.ne.s32.totalorder %v642_v33, 0  ;;  %vm670_vm4 = vcmp.lt.s32.totalorder %v642_v33, 0  ;;  %v676_v37 = vadd.s32 18, %v642_v33 }
 0x12a   : > { %vm669_vm14 = vcmp.ne.s32.totalorder %v664_v32, 0  ;;  %vm672_vm15 = vcmp.lt.s32.totalorder %v664_v32, 0  ;;  %v678_v35 = vadd.s32 18, %v664_v32  ;;  %vm673_vm12 = vmand %vm670_vm4, %vm667_vm13  ;;  %vm668_vm10 = vcmp.ne.s32.totalorder %v653_v36, 0 }
 0x12b   : > { %vm675_vm0 = vmand %vm672_vm15, %vm669_vm14  ;;  %vm671_vm11 = vcmp.lt.s32.totalorder %v653_v36, 0  ;;  %v679_v40 = vsel %vm673_vm12, %v676_v37, %v642_v33  ;;  %v677_v41 = vadd.s32 18, %v653_v36 }
 0x12c   : > { %v681_v38 = vsel %vm675_vm0, %v678_v35, %v664_v32  ;;  %vm5271_vm9 = vmand %vm671_vm11, %vm668_vm10  ;;  %vm682_vm14 = vcmp.lt.s32.totalorder %v679_v40, 16  ;;  %vm6326_vm11 = vcmask 891904  }
 0x12d   : > { %vm684_vm8 = vcmp.lt.s32.totalorder %v681_v38, 16  ;;  %v680_v51 = vsel %vm5271_vm9, %v677_v41, %v653_v36  ;;  %v5281_v55 = vsel %vm682_vm14, 1.0, %v5026_v0  ;;  %vm1206_vm9 = vcmask 130048   ;;  %vm6327_vm12 = vmmov %vm6326_vm11 }
 0x12e   : > { %v5276_v47 = vsel %vm684_vm8, 1.0, %v5026_v0  ;;  %vm683_vm8 = vcmp.lt.s32.totalorder %v680_v51, 16  ;;  %vm6328_vm13 = vmmov %vm6326_vm11  ;;  %vm6330_vm14 = vcmask 883712  }
 0x12f   : > { %v5287_v60 = vsel %vm683_vm8, 1.0, %v5026_v0  ;;  %vm6329_vm0 = vmmov %vm6326_vm11  ;;  %vm6334_vm8 = vcmask 752640  }
 0x131   : > { %v834_v39 = vpop.permute.xlu0 %833 }
 0x1f9   : > { %v977_v42 = vpop.f32.mrb[0].mxu1 }
 0x1fa   : > { %v978_v44 = vadd.f32 %v977_v42, %v834_v39  ;;  %v3879_v45 = vpop.f32.mrb[1].mxu1 }
 0x1fb   : > { %v906_v46 = vpop.f32.mrb[0].mxu0 }
 0x1fc   : > { %vm983_vm15 = vcmp.ge.f32.partialorder %v978_v44, 0.0  ;;  %v986_v48 = vmul.f32 0.1, %v978_v44  ;;  %v907_v49 = vadd.f32 %v906_v46, %v834_v39  ;;  %v908_v50 = vpop.f32.mrb[1].mxu0 }
 0x1fd   : > { %v909_v52 = vadd.f32 %v908_v50, %v834_v39 }
 0x1fe   : > { %vm981_vm4 = vcmp.ge.f32.partialorder %v907_v49, 0.0  ;;  %v984_v53 = vmul.f32 0.1, %v907_v49  ;;  %v989_v54 = vsel %vm983_vm15, %v978_v44, %v986_v48  ;;  %vm6331_vm15 = vmmov %vm6330_vm14 }
 0x1ff   : > { %vm982_vm10 = vcmp.ge.f32.partialorder %v909_v52, 0.0  ;;  %v985_v56 = vmul.f32 0.1, %v909_v52  ;;  %v992_v57 = vmul.f32 %v5276_v47, %v989_v54 }
 0x200   : > { %v987_v58 = vsel %vm981_vm4, %v907_v49, %v984_v53  ;;  %vm6332_vm4 = vmmov %vm6330_vm14 }
 0x201   : > { %1000 = vrot.lane.b32.xlu0 %v992_v57, %s5027_s26  ;;  %v990_v59 = vmul.f32 %v5281_v55, %v987_v58  ;;  %v988_v61 = vsel %vm982_vm10, %v909_v52, %v985_v56  ;;  %vm6333_vm10 = vmmov %vm6332_vm4 }
 0x202   : > { %v991_v62 = vmul.f32 %v5287_v60, %v988_v61 }
 0x203   : > { %996 = vrot.lane.b32.xlu1 %v990_v59, %s5027_s26 }
 0x205   : > { %4397 = vrot.lane.b32.xlu0 %v5198_v12, %s5028_s27 }
 0x207   : > { %998 = vrot.lane.b32.xlu1 %v991_v62, %s5027_s26 }
 0x209   : > { %4407 = vrot.lane.b32.xlu0 %v5198_v12, %s5031_s4 }
 0x20b   : > { %4392 = vrot.lane.b32.xlu1 %v5198_v12, %s5029_s28 }
 0x20f   : > { %4402 = vrot.lane.b32.xlu1 %v5198_v12, %s5032_s29 }
 0x273   : > { %v1001_v63 = vpop.permute.xlu0 %1000 }
 0x275   : > { %v997_v0 = vpop.permute.xlu1 %996 }
 0x276   : > { %1007 = vst.msk [vmem:[#allocation2 + $0x18] sm:$0xff] %vm722_vm1, %v997_v0 }
 0x277   : > { %v4398_v16 = vpop.permute.xlu0 %4397 }
 0x278   : > { %v4400_v39 = vunpack.i.h.bf16 %v4398_v16  ;;  %v4399_v40 = vunpack.i.l.bf16 %v4398_v16 }
 0x279   : > { %v999_v1 = vpop.permute.xlu1 %998 }
 0x27a   : > { %v5302_v2 = vsel %vm716_vm2, %v997_v0, %v999_v1  ;;  %v1003_v3 = vsel %vm716_vm2, %v999_v1, %v1001_v63  ;;  %v1057_v52 = vsel %vm751_vm7, %v4399_v40, %v4400_v39 }
 0x27b   : > { %1008 = vst [vmem:[#allocation2 + $0x20] sm:$0xff] %v5302_v2  ;;  %1009 = vst.msk [vmem:[#allocation2 + $0x28] sm:$0xff] %vm725_vm3, %v1003_v3  ;;  %v5309_v4 = vpack.c.bf16 %v5302_v2, %v5174_v7  ;;  %v5383_v18 = vpop.permute.xlu0 %4407 }
 0x27d   : > { %v5311_v5 = vld [vmem:[#allocation2 + $0x18] sm:$0xff]  ;;  %3962 = vmatprep.subr.bf16.mxu0 %v5309_v4  ;;  %v4393_v17 = vpop.permute.xlu1 %4392 }
 0x27e   : > { %v5316_v6 = vpack.i.bf16 %v5311_v5, %v5179_v9  ;;  %v5320_v8 = vpack.c.bf16 %v5311_v5, %v5179_v9  ;;  %v4395_v22 = vunpack.i.h.bf16 %v4393_v17  ;;  %v4394_v23 = vunpack.i.l.bf16 %v4393_v17 }
 0x280   : > { %4417 = vrot.lane.b32.xlu0 %v5316_v6, %s5028_s27  ;;  %4412 = vrot.lane.b32.xlu1 %v5316_v6, %s5029_s28  ;;  %v1035_v30 = vsel %vm739_vm5, %v4394_v23, %v4395_v22 }
 0x281   : > { %3964 = vmatpush1.bf16.msra.mxu0 %v5320_v8  ;;  %v4403_v19 = vpop.permute.xlu1 %4402 }
 0x282   : > { %v5327_v7 = vld [vmem:[#allocation2 + $0x28] sm:$0xff]  ;;  %v4405_v42 = vunpack.i.h.bf16 %v4403_v19  ;;  %v4404_v44 = vunpack.i.l.bf16 %v4403_v19 }
 0x283   : > { %v5331_v13 = vpack.c.bf16 %v5327_v7, %v5190_v11  ;;  %v5335_v14 = vpack.i.bf16 %v5327_v7, %v5302_v2  ;;  %v1199_v11 = vld [vmem:[%s6324_s3 + $0x8] sm:$0xff] }
 0x284   : > { %4422 = vrot.lane.b32.xlu1 %v5316_v6, %s5032_s29  ;;  %3806 = vmatprep.mubr.msk.f32.mxu1 %vm1206_vm9, %v1199_v11  ;;  %v1079_v1 = vsel %vm763_vm6, %v4404_v44, %v4405_v42 }
 0x285   : > { %3999 = vmatpush1.bf16.msra.mxu1 %v5331_v13  ;;  %4427 = vrot.lane.b32.xlu0 %v5335_v14, %s5029_s28 }
 0x286   : > { %4000 = vmatprep.subr.bf16.mxu1 %v5030_v10  ;;  %3805 = vmatprep.mubr.msk.f32.mxu0 %vm1206_vm9, %v1199_v11  ;;  %v4410_v11 = vunpack.i.h.bf16 %v5383_v18 }
 0x288   : > { %4437 = vrot.lane.b32.xlu1 %v5198_v12, %s6310_s0 }
 0x289   : > { %4432 = vrot.lane.b32.xlu0 %v5316_v6, %s5031_s4 }
 0x28c   : > { %4442 = vrot.lane.b32.xlu1 %v5335_v14, %s5028_s27 }
 0x28d   : > { %4452 = vrot.lane.b32.xlu0 %v5335_v14, %s5032_s29 }
 0x290   : > { %4447 = vrot.lane.b32.xlu1 %v5316_v6, %s6310_s0 }
 0x291   : > { %4457 = vrot.lane.b32.xlu0 %v5198_v12, %s6312_s30 }
 0x294   : > { %4462 = vrot.lane.b32.xlu1 %v5335_v14, %s5031_s4 }
 0x295   : > { %4467 = vrot.lane.b32.xlu0 %v5335_v14, %s6310_s0 }
 0x298   : > { %4477 = vrot.lane.b32.xlu1 %v5198_v12, %s5035_s21 }
 0x299   : > { %4472 = vrot.lane.b32.xlu0 %v5316_v6, %s6312_s30 }
 0x29c   : > { %4482 = vrot.lane.b32.xlu1 %v5335_v14, %s6312_s30 }
 0x29d   : > { %4492 = vrot.lane.b32.xlu0 %v5335_v14, %s5035_s21 }
 0x2a0   : > { %4487 = vrot.lane.b32.xlu1 %v5316_v6, %s5035_s21 }
 0x2a1   : > { %4497 = vrot.lane.b32.xlu0 %v5198_v12, %s5038_s24 }
 0x2a4   : > { %4502 = vrot.lane.b32.xlu1 %v5335_v14, %s5038_s24 }
 0x2a5   : > { %4507 = vrot.lane.b32.xlu0 %v5316_v6, %s5038_s24 }
 0x2a8   : > { %1203 = vperm.xlu1 %4511, %v1200_v15   ;;  %v4409_v15 = vunpack.i.l.bf16 %v5383_v18 }
 0x2f2   : > { %v4418_v20 = vpop.permute.xlu0 %4417  ;;  %v4413_v21 = vpop.permute.xlu1 %4412 }
 0x2f3   : > { %v4414_v24 = vunpack.i.l.bf16 %v4413_v21  ;;  %v4415_v27 = vunpack.i.h.bf16 %v4413_v21  ;;  %v4419_v41 = vunpack.i.l.bf16 %v4418_v20  ;;  %v4420_v45 = vunpack.i.h.bf16 %v4418_v20 }
 0x2f5   : > { %v1034_v31 = vsel %vm739_vm5, %v4414_v24, %v4394_v23  ;;  %v1056_v53 = vsel %vm751_vm7, %v4419_v41, %v4399_v40 }
 0x2f6   : > { %v4423_v25 = vpop.permute.xlu1 %4422 }
 0x2f7   : > { %v4428_v26 = vpop.permute.xlu0 %4427  ;;  %v4425_v58 = vunpack.i.h.bf16 %v4423_v25  ;;  %v4424_v59 = vunpack.i.l.bf16 %v4423_v25 }
 0x2f8   : > { %v4430_v28 = vunpack.i.h.bf16 %v4428_v26  ;;  %v4429_v29 = vunpack.i.l.bf16 %v4428_v26 }
 0x2f9   : > { %v1078_v21 = vsel %vm763_vm6, %v4424_v59, %v4404_v44 }
 0x2fa   : > { %v1036_v32 = vsel %vm739_vm5, %v4415_v27, %v4429_v29  ;;  %v4001_v33 = vpack.c.bf16 %v4430_v28, %v4395_v22  ;;  %v5388_v34 = vpop.permute.xlu1 %4437  ;;  %v1037_v35 = vsel %vm739_vm5, %v4429_v29, %v4430_v28 }
 0x2fb   : > { %v4433_v36 = vpop.permute.xlu0 %4432  ;;  %v3965_v37 = vpack.c.bf16 %v1037_v35, %v1035_v30  ;;  %v3967_v38 = vpack.c.bf16 %v1036_v32, %v1034_v31  ;;  %v4440_v22 = vunpack.i.h.bf16 %v5388_v34  ;;  %v4439_v23 = vunpack.i.l.bf16 %v5388_v34 }
 0x2fc   : > { %4002 = vmatpush1.bf16.msra.mxu1 %v4001_v33  ;;  %v4434_v19 = vunpack.i.l.bf16 %v4433_v36  ;;  %v4435_v25 = vunpack.i.h.bf16 %v4433_v36  ;;  %v1101_v31 = vsel %vm6326_vm11, %v4409_v15, %v4410_v11  ;;  %vm6335_vm11 = vmmov %vm6334_vm8 }
 0x2fd   : > { %3966 = vmatprep.subr.bf16.mxu0 %v3965_v37  ;;  %4003 = vmatprep.subr.bf16.mxu1 %v5030_v10 }
 0x2fe   : > { %v4443_v43 = vpop.permute.xlu1 %4442  ;;  %3968 = vmatpush1.bf16.msra.mxu0 %v3967_v38  ;;  %v1100_v32 = vsel %vm6327_vm12, %v4434_v19, %v4409_v15  ;;  %vm6336_vm12 = vmmov %vm6334_vm8 }
 0x2ff   : > { %v4445_v46 = vunpack.i.h.bf16 %v4443_v43  ;;  %v4444_v48 = vunpack.i.l.bf16 %v4443_v43  ;;  %v4453_v49 = vpop.permute.xlu0 %4452 }
 0x300   : > { %v4455_v50 = vunpack.i.h.bf16 %v4453_v49  ;;  %v4454_v51 = vunpack.i.l.bf16 %v4453_v49 }
 0x301   : > { %v4004_v54 = vpack.c.bf16 %v4445_v46, %v4400_v39  ;;  %v1058_v56 = vsel %vm751_vm7, %v4420_v45, %v4444_v48  ;;  %v1059_v57 = vsel %vm751_vm7, %v4444_v48, %v4445_v46 }
 0x302   : > { %v4448_v61 = vpop.permute.xlu1 %4447  ;;  %v3969_v62 = vpack.c.bf16 %v1059_v57, %v1057_v52  ;;  %v3971_v0 = vpack.c.bf16 %v1058_v56, %v1056_v53  ;;  %v1081_v3 = vsel %vm763_vm6, %v4454_v51, %v4455_v50  ;;  %v1080_v16 = vsel %vm763_vm6, %v4425_v58, %v4454_v51 }
 0x303   : > { %v5396_v63 = vpop.permute.xlu0 %4457  ;;  %4005 = vmatpush1.bf16.msra.mxu1 %v4004_v54  ;;  %v3973_v17 = vpack.c.bf16 %v1081_v3, %v1079_v1  ;;  %v4007_v20 = vpack.c.bf16 %v4455_v50, %v4405_v42  ;;  %v3975_v28 = vpack.c.bf16 %v1080_v16, %v1078_v21  ;;  %v4450_v36 = vunpack.i.h.bf16 %v4448_v61 }
 0x304   : > { %3970 = vmatprep.subr.bf16.mxu0 %v3969_v62  ;;  %4006 = vmatprep.subr.bf16.mxu1 %v5030_v10  ;;  %v4449_v37 = vunpack.i.l.bf16 %v4448_v61  ;;  %v1123_v42 = vsel %vm6330_vm14, %v4439_v23, %v4440_v22  ;;  %v4460_v44 = vunpack.i.h.bf16 %v5396_v63  ;;  %v4459_v45 = vunpack.i.l.bf16 %v5396_v63 }
 0x305   : > { %3972 = vmatpush1.bf16.msra.mxu0 %v3971_v0 }
 0x306   : > { %v4463_v24 = vpop.permute.xlu1 %4462  ;;  %3974 = vmatprep.subr.bf16.mxu0 %v3973_v17  ;;  %v1122_v51 = vsel %vm6333_vm10, %v4449_v37, %v4439_v23  ;;  %v1145_v63 = vsel %vm6334_vm8, %v4459_v45, %v4460_v44  ;;  %vm6342_vm10 = vcmask 736256  }
 0x307   : > { %v4465_v26 = vunpack.i.h.bf16 %v4463_v24  ;;  %v4464_v18 = vunpack.i.l.bf16 %v4463_v24  ;;  %v4468_v27 = vpop.permute.xlu0 %4467  ;;  %4008 = vmatpush1.bf16.msra.mxu1 %v4007_v20 }
 0x308   : > { %v4470_v29 = vunpack.i.h.bf16 %v4468_v27  ;;  %v4469_v30 = vunpack.i.l.bf16 %v4468_v27  ;;  %4009 = vmatprep.subr.bf16.mxu1 %v5030_v10 }
 0x309   : > { %v4010_v33 = vpack.c.bf16 %v4465_v26, %v4410_v11  ;;  %v1102_v35 = vsel %vm6328_vm13, %v4435_v25, %v4464_v18  ;;  %3976 = vmatpush1.bf16.msra.mxu0 %v3975_v28  ;;  %v1103_v34 = vsel %vm6329_vm0, %v4464_v18, %v4465_v26  ;;  %vm6337_vm13 = vmmov %vm6334_vm8  ;;  %vm6338_vm0 = vcmask 744448  }
 0x30a   : > { %v4478_v38 = vpop.permute.xlu1 %4477  ;;  %v3977_v39 = vpack.c.bf16 %v1103_v34, %v1101_v31  ;;  %v3979_v40 = vpack.c.bf16 %v1102_v35, %v1100_v32  ;;  %v1125_v43 = vsel %vm6331_vm15, %v4469_v30, %v4470_v29  ;;  %v1124_v46 = vsel %vm6332_vm4, %v4450_v36, %v4469_v30  ;;  %vm6339_vm14 = vmmov %vm6338_vm0 }
 0x30b   : > { %v4473_v41 = vpop.permute.xlu0 %4472  ;;  %4011 = vmatpush1.bf16.msra.mxu1 %v4010_v33  ;;  %v3981_v48 = vpack.c.bf16 %v1125_v43, %v1123_v42  ;;  %v4013_v49 = vpack.c.bf16 %v4470_v29, %v4440_v22  ;;  %v4480_v52 = vunpack.i.h.bf16 %v4478_v38  ;;  %v4479_v53 = vunpack.i.l.bf16 %v4478_v38  ;;  %vm6340_vm15 = vmmov %vm6338_vm0 }
 0x30c   : > { %3978 = vmatprep.subr.bf16.mxu0 %v3977_v39  ;;  %4012 = vmatprep.subr.bf16.mxu1 %v5030_v10  ;;  %v4474_v50 = vunpack.i.l.bf16 %v4473_v41  ;;  %v4475_v56 = vunpack.i.h.bf16 %v4473_v41  ;;  %v3983_v61 = vpack.c.bf16 %v1124_v46, %v1122_v51  ;;  %vm6341_vm4 = vmmov %vm6338_vm0 }
 0x30d   : > { %3980 = vmatpush1.bf16.msra.mxu0 %v3979_v40  ;;  %v1167_v20 = vsel %vm6338_vm0, %v4479_v53, %v4480_v52  ;;  %vm6343_vm8 = vmmov %vm6342_vm10 }
 0x30e   : > { %v4483_v54 = vpop.permute.xlu1 %4482  ;;  %3982 = vmatprep.subr.bf16.mxu0 %v3981_v48  ;;  %v1144_v1 = vsel %vm6335_vm11, %v4474_v50, %v4459_v45  ;;  %vm6344_vm11 = vmmov %vm6343_vm8 }
 0x30f   : > { %v4485_v57 = vunpack.i.h.bf16 %v4483_v54  ;;  %v4484_v58 = vunpack.i.l.bf16 %v4483_v54  ;;  %v4493_v59 = vpop.permute.xlu0 %4492  ;;  %4014 = vmatpush1.bf16.msra.mxu1 %v4013_v49 }
 0x310   : > { %v4495_v62 = vunpack.i.h.bf16 %v4493_v59  ;;  %v4494_v0 = vunpack.i.l.bf16 %v4493_v59  ;;  %4015 = vmatprep.subr.bf16.mxu1 %v5030_v10 }
 0x311   : > { %v4016_v3 = vpack.c.bf16 %v4485_v57, %v4460_v44  ;;  %v1146_v11 = vsel %vm6336_vm12, %v4475_v56, %v4484_v58  ;;  %3984 = vmatpush1.bf16.msra.mxu0 %v3983_v61  ;;  %v1147_v15 = vsel %vm6337_vm13, %v4484_v58, %v4485_v57  ;;  %vm6345_vm12 = vmmov %vm6343_vm8  ;;  %v1198_v44 = vld [vmem:[%s6324_s3] sm:$0xff] }
 0x312   : > { %v4488_v16 = vpop.permute.xlu1 %4487  ;;  %v3985_v17 = vpack.c.bf16 %v1147_v15, %v1145_v63  ;;  %v3987_v19 = vpack.c.bf16 %v1146_v11, %v1144_v1  ;;  %v1169_v21 = vsel %vm6339_vm14, %v4494_v0, %v4495_v62  ;;  %v4019_v26 = vpack.c.bf16 %v4495_v62, %v4480_v52 }
 0x313   : > { %v4490_v22 = vunpack.i.h.bf16 %v4488_v16  ;;  %v4489_v23 = vunpack.i.l.bf16 %v4488_v16  ;;  %v4498_v24 = vpop.permute.xlu0 %4497  ;;  %4017 = vmatpush1.bf16.msra.mxu1 %v4016_v3  ;;  %v3989_v25 = vpack.c.bf16 %v1169_v21, %v1167_v20  ;;  %v4517_v62 = vpack.i.bf16 %v5302_v2, %v5179_v9 }
 0x314   : > { %3986 = vmatprep.subr.bf16.mxu0 %v3985_v17  ;;  %4018 = vmatprep.subr.bf16.mxu1 %v5030_v10  ;;  %v4500_v28 = vunpack.i.h.bf16 %v4498_v24  ;;  %v4499_v29 = vunpack.i.l.bf16 %v4498_v24 }
 0x315   : > { %v1168_v18 = vsel %vm6340_vm15, %v4490_v22, %v4494_v0  ;;  %v1166_v27 = vsel %vm6341_vm4, %v4489_v23, %v4479_v53  ;;  %3988 = vmatpush1.bf16.msra.mxu0 %v3987_v19  ;;  %vm1670_vm15 = vcmask 719872   ;;  %vm6346_vm4 = vcmask 891904  }
 0x316   : > { %v4503_v30 = vpop.permute.xlu1 %4502  ;;  %3990 = vmatprep.subr.bf16.mxu0 %v3989_v25  ;;  %v3991_v31 = vpack.c.bf16 %v1168_v18, %v1166_v27  ;;  %v1189_v38 = vsel %vm6342_vm10, %v4499_v29, %v4500_v28  ;;  %vm6347_vm10 = vmmov %vm6346_vm4 }
 0x317   : > { %v4505_v32 = vunpack.i.h.bf16 %v4503_v30  ;;  %v4504_v33 = vunpack.i.l.bf16 %v4503_v30  ;;  %v4508_v35 = vpop.permute.xlu0 %4507  ;;  %4020 = vmatpush1.bf16.msra.mxu1 %v4019_v26 }
 0x318   : > { %v4510_v34 = vunpack.i.h.bf16 %v4508_v35  ;;  %v4509_v36 = vunpack.i.l.bf16 %v4508_v35  ;;  %4021 = vmatprep.subr.bf16.mxu1 %v5030_v10 }
 0x319   : > { %v4022_v37 = vpack.c.bf16 %v4505_v32, %v4500_v28  ;;  %3992 = vmatpush1.bf16.msra.mxu0 %v3991_v31  ;;  %v1191_v39 = vsel %vm6343_vm8, %v4504_v33, %v4505_v32  ;;  %vm6348_vm8 = vmmov %vm6346_vm4 }
 0x31a   : > { %v1188_v40 = vsel %vm6344_vm11, %v4509_v36, %v4499_v29  ;;  %v1190_v41 = vsel %vm6345_vm12, %v4510_v34, %v4504_v33  ;;  %v3993_v42 = vpack.c.bf16 %v1191_v39, %v1189_v38  ;;  %vm6349_vm11 = vmmov %vm6346_vm4  ;;  %vm6350_vm12 = vcmask 883712  }
 0x31b   : > { %4023 = vmatpush1.bf16.msra.mxu1 %v4022_v37  ;;  %v3995_v43 = vpack.c.bf16 %v1190_v41, %v1188_v40 }
 0x31c   : > { %3994 = vmatprep.subr.bf16.mxu0 %v3993_v42  ;;  %4076 = vmatprep.subr.bf16.mxu1 %v5030_v10 }
 0x31d   : > { %3996 = vmatpush1.bf16.msra.mxu0 %v3995_v43 }
 0x31e   : > { %1346 = vmatmul.mubr.f32.vlgmr.msra.gmra.mrb[2].mxu1 %v1198_v44  ;;  %4025 = vmatprep.subr.bf16.mxu0 %v5309_v4 }
 0x31f   : > { %4078 = vmatpush1.bf16.msra.mxu1 %v5331_v13 }
 0x320   : > { %1275 = vmatmul.mubr.f32.vlgmr.msra.gmra.mrb[2].mxu0 %v1198_v44  ;;  %4079 = vmatprep.subr.bf16.mxu1 %v5030_v10 }
 0x321   : > { %4027 = vmatpush1.bf16.msra.mxu0 %v5320_v8 }
 0x327   : > { %v1204_v45 = vpop.permute.xlu1 %1203 }
 0x3f1   : > { %v1347_v46 = vpop.f32.mrb[2].mxu1 }
 0x3f2   : > { %v1348_v48 = vadd.f32 %v1347_v46, %v1204_v45  ;;  %v1349_v49 = vpop.f32.mrb[3].mxu1 }
 0x3f3   : > { %v1276_v50 = vpop.f32.mrb[2].mxu0 }
 0x3f4   : > { %v1277_v51 = vadd.f32 %v1276_v50, %v1204_v45  ;;  %v1278_v52 = vpop.f32.mrb[3].mxu0  ;;  %v1356_v54 = vmul.f32 0.1, %v1348_v48  ;;  %vm1353_vm0 = vcmp.ge.f32.partialorder %v1348_v48, 0.0 }
 0x3f5   : > { %v1279_v53 = vadd.f32 %v1278_v52, %v1204_v45 }
 0x3f6   : > { %vm1351_vm13 = vcmp.ge.f32.partialorder %v1277_v51, 0.0  ;;  %v1354_v56 = vmul.f32 0.1, %v1277_v51  ;;  %v1359_v59 = vsel %vm1353_vm0, %v1348_v48, %v1356_v54  ;;  %vm6352_vm0 = vmmov %vm6346_vm4 }
 0x3f7   : > { %vm1352_vm14 = vcmp.ge.f32.partialorder %v1279_v53, 0.0  ;;  %v1355_v4 = vmul.f32 0.1, %v1279_v53  ;;  %v1362_v61 = vmul.f32 %v5276_v47, %v1359_v59 }
 0x3f8   : > { %v1357_v13 = vsel %vm1351_vm13, %v1277_v51, %v1354_v56  ;;  %vm6351_vm13 = vmmov %vm6350_vm12 }
 0x3f9   : > { %v1360_v57 = vmul.f32 %v5281_v55, %v1357_v13  ;;  %v1358_v58 = vsel %vm1352_vm14, %v1279_v53, %v1355_v4  ;;  %vm6353_vm14 = vmmov %vm6352_vm0 }
 0x3fa   : > { %v1361_v8 = vmul.f32 %v5287_v60, %v1358_v58 }
 0x3fb   : > { %1366 = vrot.lane.b32.xlu0 %v1360_v57, %s5027_s26 }
 0x3fc   : > { %1368 = vrot.lane.b32.xlu1 %v1361_v8, %s5027_s26 }
 0x3ff   : > { %1370 = vrot.lane.b32.xlu0 %v1362_v61, %s5027_s26 }
 0x400   : > { %4513 = vrot.lane.b32.xlu1 %v5198_v12, %s5029_s28 }
 0x403   : > { %4518 = vrot.lane.b32.xlu0 %v4517_v62, %s5029_s28 }
 0x404   : > { %4528 = vrot.lane.b32.xlu1 %v5335_v14, %s5028_s27 }
 0x407   : > { %4523 = vrot.lane.b32.xlu0 %v5198_v12, %s5028_s27 }
 0x408   : > { %4553 = vrot.lane.b32.xlu1 %v5335_v14, %s5031_s4 }
 0x40b   : > { %4533 = vrot.lane.b32.xlu0 %v5316_v6, %s5028_s27 }
 0x40f   : > { %4538 = vrot.lane.b32.xlu0 %v5198_v12, %s5032_s29 }
 0x413   : > { %4543 = vrot.lane.b32.xlu0 %v4517_v62, %s5032_s29 }
 0x417   : > { %4548 = vrot.lane.b32.xlu0 %v5198_v12, %s5031_s4 }
 0x41b   : > { %4558 = vrot.lane.b32.xlu0 %v5316_v6, %s5031_s4 }
 0x46d   : > { %v1367_v9 = vpop.permute.xlu0 %1366 }
 0x46e   : > { %1377 = vst.msk [vmem:[#allocation2 + $0x30] sm:$0xff] %vm722_vm1, %v1367_v9  ;;  %v1369_v2 = vpop.permute.xlu1 %1368 }
 0x46f   : > { %v5472_v15 = vsel %vm716_vm2, %v1367_v9, %v1369_v2 }
 0x470   : > { %v4562_v18 = vpack.i.bf16 %v5472_v15, %v5327_v7  ;;  %v1663_v7 = vld [vmem:[%s6284_s5 + $0x8] sm:$0xff] }
 0x471   : > { %v1371_v0 = vpop.permute.xlu0 %1370  ;;  %3808 = vmatprep.mubr.msk.f32.mxu1 %vm1670_vm15, %v1663_v7  ;;  %3807 = vmatprep.mubr.msk.f32.mxu0 %vm1670_vm15, %v1663_v7 }
 0x472   : > { %v1373_v63 = vsel %vm716_vm2, %v1369_v2, %v1371_v0  ;;  %v4514_v1 = vpop.permute.xlu1 %4513 }
 0x473   : > { %1379 = vst.msk [vmem:[#allocation2 + $0x40] sm:$0xff] %vm725_vm3, %v1373_v63  ;;  %v4516_v3 = vunpack.i.h.bf16 %v4514_v1  ;;  %v4515_v11 = vunpack.i.l.bf16 %v4514_v1 }
 0x475   : > { %v5474_v16 = vpop.permute.xlu0 %4518  ;;  %v5476_v17 = vld [vmem:[#allocation2 + $0x30] sm:$0xff]  ;;  %v1417_v19 = vsel %vm739_vm5, %v4515_v11, %v4516_v3 }
 0x476   : > { %v4520_v20 = vunpack.i.l.bf16 %v5474_v16  ;;  %1410 = vrot.lane.b32.xlu1 %v5476_v17, %s5029_s28  ;;  %v4028_v21 = vpack.c.bf16 %v1417_v19, %v5472_v15  ;;  %v4529_v29 = vpop.permute.xlu1 %4528  ;;  %v4521_v41 = vunpack.i.h.bf16 %v5474_v16 }
 0x477   : > { %v4531_v42 = vunpack.i.h.bf16 %v4529_v29  ;;  %v4530_v44 = vunpack.i.l.bf16 %v4529_v29 }
 0x478   : > { %v1416_v22 = vsel %vm739_vm5, %v4520_v20, %v4515_v11  ;;  %4029 = vmatprep.subr.bf16.mxu0 %v4028_v21 }
 0x479   : > { %v4030_v23 = vpack.c.bf16 %v1416_v22, %v5476_v17  ;;  %v1452_v59 = vsel %vm751_vm7, %v4530_v44, %v4531_v42 }
 0x47a   : > { %v5485_v24 = vld [vmem:[#allocation2 + $0x40] sm:$0xff]  ;;  %1443 = vrot.lane.b32.xlu1 %v5476_v17, %s5028_s27  ;;  %v5554_v31 = vpop.permute.xlu1 %4553 }
 0x47b   : > { %v4080_v25 = vpack.c.bf16 %v4516_v3, %v5485_v24  ;;  %4031 = vmatpush1.bf16.msra.mxu0 %v4030_v23  ;;  %v4567_v26 = vpack.i.bf16 %v5311_v5, %v5485_v24  ;;  %v4582_v5 = vpack.i.bf16 %v5485_v24, %v5472_v15  ;;  %v4556_v21 = vunpack.i.h.bf16 %v5554_v31 }
 0x47c   : > { %v4555_v29 = vunpack.i.l.bf16 %v5554_v31 }
 0x47d   : > { %4568 = vrot.lane.b32.xlu0 %v4567_v26, %s5029_s28  ;;  %4081 = vmatpush1.bf16.msra.mxu1 %v4080_v25 }
 0x47e   : > { %1476 = vrot.lane.b32.xlu1 %v5476_v17, %s5032_s29  ;;  %4082 = vmatprep.subr.bf16.mxu1 %v5030_v10 }
 0x481   : > { %4573 = vrot.lane.b32.xlu0 %v5198_v12, %s6310_s0 }
 0x482   : > { %4563 = vrot.lane.b32.xlu1 %v4562_v18, %s5029_s28 }
 0x485   : > { %4578 = vrot.lane.b32.xlu0 %v4517_v62, %s6310_s0 }
 0x486   : > { %1509 = vrot.lane.b32.xlu1 %v5476_v17, %s5031_s4 }
 0x489   : > { %4593 = vrot.lane.b32.xlu0 %v4567_v26, %s5032_s29 }
 0x48a   : > { %1542 = vrot.lane.b32.xlu1 %v5476_v17, %s6310_s0 }
 0x48d   : > { %4598 = vrot.lane.b32.xlu0 %v5198_v12, %s6312_s30 }
 0x48e   : > { %4583 = vrot.lane.b32.xlu1 %v4582_v5, %s5028_s27 }
 0x491   : > { %4608 = vrot.lane.b32.xlu0 %v5316_v6, %s6312_s30 }
 0x492   : > { %4588 = vrot.lane.b32.xlu1 %v4562_v18, %s5032_s29 }
 0x495   : > { %4623 = vrot.lane.b32.xlu0 %v4567_v26, %s6310_s0 }
 0x496   : > { %4603 = vrot.lane.b32.xlu1 %v5335_v14, %s6312_s30 }
 0x499   : > { %4628 = vrot.lane.b32.xlu0 %v5198_v12, %s5035_s21 }
 0x49a   : > { %4613 = vrot.lane.b32.xlu1 %v4582_v5, %s5031_s4 }
 0x49d   : > { %4633 = vrot.lane.b32.xlu0 %v4517_v62, %s5035_s21 }
 0x49e   : > { %4618 = vrot.lane.b32.xlu1 %v4562_v18, %s6310_s0 }
 0x4a1   : > { %4648 = vrot.lane.b32.xlu0 %v4567_v26, %s5035_s21 }
 0x4a2   : > { %1575 = vrot.lane.b32.xlu1 %v5476_v17, %s6312_s30 }
 0x4a5   : > { %4653 = vrot.lane.b32.xlu0 %v5198_v12, %s5038_s24  ;;  %v1664_v12 = vld [vmem:[%s6285_s6] sm:$0xff] }
 0x4a6   : > { %1608 = vrot.lane.b32.xlu1 %v5476_v17, %s5035_s21 }
 0x4a9   : > { %4663 = vrot.lane.b32.xlu0 %v5316_v6, %s5038_s24  ;;  %v4524_v6 = vpop.permute.xlu0 %4523 }
 0x4aa   : > { %4638 = vrot.lane.b32.xlu1 %v4582_v5, %s6312_s30  ;;  %v4526_v37 = vunpack.i.h.bf16 %v4524_v6  ;;  %v4525_v38 = vunpack.i.l.bf16 %v4524_v6 }
 0x4ac   : > { %v1450_v52 = vsel %vm751_vm7, %v4525_v38, %v4526_v37  ;;  %v4086_v2 = vpack.c.bf16 %v4531_v42, %v4526_v37 }
 0x4ad   : > { %1645 = vrot.lane.b32.xlu0 %v5485_v24, %s5038_s24  ;;  %v4534_v27 = vpop.permute.xlu0 %4533  ;;  %v4036_v9 = vpack.c.bf16 %v1452_v59, %v1450_v52 }
 0x4ae   : > { %4643 = vrot.lane.b32.xlu1 %v4562_v18, %s5035_s21  ;;  %v4536_v49 = vunpack.i.h.bf16 %v4534_v27  ;;  %v4535_v50 = vunpack.i.l.bf16 %v4534_v27 }
 0x4b0   : > { %v1451_v61 = vsel %vm751_vm7, %v4536_v49, %v4530_v44  ;;  %v1449_v62 = vsel %vm751_vm7, %v4535_v50, %v4525_v38 }
 0x4b1   : > { %1667 = vperm.xlu0 %4390, %v1664_v12   ;;  %v5550_v28 = vpop.permute.xlu0 %4538  ;;  %v4038_v1 = vpack.c.bf16 %v1451_v61, %v1449_v62 }
 0x4b2   : > { %4658 = vrot.lane.b32.xlu1 %v5335_v14, %s5038_s24  ;;  %v4541_v3 = vunpack.i.h.bf16 %v5550_v28  ;;  %v4540_v11 = vunpack.i.l.bf16 %v5550_v28 }
 0x4b4   : > { %v1483_v5 = vsel %vm763_vm6, %v4540_v11, %v4541_v3 }
 0x4b5   : > { %v5552_v30 = vpop.permute.xlu0 %4543 }
 0x4b6   : > { %1643 = vrot.lane.b32.xlu1 %v5472_v15, %s5038_s24  ;;  %v4545_v16 = vunpack.i.l.bf16 %v5552_v30 }
 0x4b8   : > { %v1482_v7 = vsel %vm763_vm6, %v4545_v16, %v4540_v11 }
 0x4b9   : > { %v5556_v32 = vpop.permute.xlu0 %4548 }
 0x4ba   : > { %1641 = vrot.lane.b32.xlu1 %v5476_v17, %s5038_s24  ;;  %v4551_v25 = vunpack.i.h.bf16 %v5556_v32  ;;  %v4550_v26 = vunpack.i.l.bf16 %v5556_v32 }
 0x4bc   : > { %v1516_v31 = vsel %vm6346_vm4, %v4550_v26, %v4551_v25  ;;  %vm6354_vm4 = vmmov %vm6350_vm12 }
 0x4bd   : > { %v5558_v35 = vpop.permute.xlu0 %4558 }
 0x4be   : > { %v4561_v42 = vunpack.i.h.bf16 %v5558_v35 }
 0x4e8   : > { %v1411_v33 = vpop.permute.xlu1 %1410 }
 0x4ec   : > { %v1444_v14 = vpop.permute.xlu1 %1443 }
 0x4ef   : > { %v4569_v34 = vpop.permute.xlu0 %4568 }
 0x4f0   : > { %v5560_v36 = vpop.permute.xlu1 %1476  ;;  %v4571_v39 = vunpack.i.h.bf16 %v4569_v34  ;;  %v4570_v45 = vunpack.i.l.bf16 %v4569_v34 }
 0x4f2   : > { %v1418_v51 = vsel %vm739_vm5, %v4571_v39, %v4521_v41 }
 0x4f3   : > { %v5562_v40 = vpop.permute.xlu0 %4573 }
 0x4f4   : > { %v4564_v43 = vpop.permute.xlu1 %4563 }
 0x4f5   : > { %v4566_v46 = vunpack.i.h.bf16 %v4564_v43  ;;  %v4565_v48 = vunpack.i.l.bf16 %v4564_v43 }
 0x4f7   : > { %v1420_v53 = vsel %vm739_vm5, %v1411_v33, %v4566_v46  ;;  %v4083_v54 = vpack.c.bf16 %v4570_v45, %v4565_v48  ;;  %v5568_v56 = vpop.permute.xlu0 %4578  ;;  %v1419_v4 = vsel %vm739_vm5, %v4521_v41, %v4565_v48  ;;  %v1421_v13 = vsel %vm739_vm5, %v4566_v46, %v4570_v45 }
 0x4f8   : > { %v5572_v57 = vpop.permute.xlu1 %1509  ;;  %v4032_v58 = vpack.c.bf16 %v1421_v13, %v1419_v4  ;;  %v4034_v8 = vpack.c.bf16 %v1420_v53, %v1418_v51  ;;  %v4546_v33 = vunpack.i.h.bf16 %v5552_v30  ;;  %v1518_v51 = vsel %vm6347_vm10, %v4555_v29, %v4556_v21 }
 0x4f9   : > { %4084 = vmatpush1.bf16.msra.mxu1 %v4083_v54  ;;  %v4048_v52 = vpack.c.bf16 %v1518_v51, %v1516_v31  ;;  %v1517_v53 = vsel %vm6348_vm8, %v4561_v42, %v4555_v29  ;;  %v4575_v4 = vunpack.i.l.bf16 %v5562_v40  ;;  %v4095_v13 = vpack.c.bf16 %v4556_v21, %v4551_v25  ;;  %vm6356_vm8 = vmmov %vm6354_vm4 }
 0x4fa   : > { %4033 = vmatprep.subr.bf16.mxu0 %v4032_v58  ;;  %4085 = vmatprep.subr.bf16.mxu1 %v5030_v10  ;;  %v4580_v58 = vunpack.i.l.bf16 %v5568_v56  ;;  %vm6355_vm10 = vcmask 752640  }
 0x4fb   : > { %v4594_v0 = vpop.permute.xlu0 %4593  ;;  %4035 = vmatpush1.bf16.msra.mxu0 %v4034_v8 }
 0x4fc   : > { %v5578_v63 = vpop.permute.xlu1 %1542  ;;  %4037 = vmatprep.subr.bf16.mxu0 %v4036_v9  ;;  %v4596_v18 = vunpack.i.h.bf16 %v4594_v0  ;;  %v4595_v32 = vunpack.i.l.bf16 %v4594_v0 }
 0x4fd   : > { %4087 = vmatpush1.bf16.msra.mxu1 %v4086_v2 }
 0x4fe   : > { %4088 = vmatprep.subr.bf16.mxu1 %v5030_v10  ;;  %v1484_v43 = vsel %vm763_vm6, %v4596_v18, %v4546_v33 }
 0x4ff   : > { %v5584_v19 = vpop.permute.xlu0 %4598  ;;  %4039 = vmatpush1.bf16.msra.mxu0 %v4038_v1 }
 0x500   : > { %v4584_v20 = vpop.permute.xlu1 %4583 }
 0x501   : > { %v4586_v22 = vunpack.i.h.bf16 %v4584_v20  ;;  %v4585_v23 = vunpack.i.l.bf16 %v4584_v20 }
 0x503   : > { %v1453_v12 = vsel %vm751_vm7, %v1444_v14, %v4585_v23  ;;  %v4089_v6 = vpack.c.bf16 %v4541_v3, %v4586_v22  ;;  %v5592_v27 = vpop.permute.xlu0 %4608  ;;  %v1454_v28 = vsel %vm751_vm7, %v4585_v23, %v4586_v22  ;;  %v4560_v14 = vunpack.i.l.bf16 %v5558_v35 }
 0x504   : > { %v4589_v34 = vpop.permute.xlu1 %4588  ;;  %v4040_v37 = vpack.c.bf16 %v1483_v5, %v1454_v28  ;;  %v4042_v38 = vpack.c.bf16 %v1482_v7, %v1453_v12  ;;  %v1548_v3 = vsel %vm6351_vm13, %v4580_v58, %v4575_v4  ;;  %v4581_v22 = vunpack.i.h.bf16 %v5568_v56  ;;  %vm6359_vm13 = vmmov %vm6355_vm10 }
 0x505   : > { %v4591_v39 = vunpack.i.h.bf16 %v4589_v34  ;;  %v4590_v41 = vunpack.i.l.bf16 %v4589_v34  ;;  %4090 = vmatpush1.bf16.msra.mxu1 %v4089_v6  ;;  %v1515_v54 = vsel %vm6349_vm11, %v4560_v14, %v4550_v26  ;;  %v4601_v23 = vunpack.i.h.bf16 %v5584_v19  ;;  %vm6357_vm11 = vmmov %vm6354_vm4 }
 0x506   : > { %4041 = vmatprep.subr.bf16.mxu0 %v4040_v37  ;;  %4091 = vmatprep.subr.bf16.mxu1 %v5030_v10  ;;  %v4050_v9 = vpack.c.bf16 %v1517_v53, %v1515_v54  ;;  %v4600_v5 = vunpack.i.l.bf16 %v5584_v19  ;;  %v4611_v37 = vunpack.i.h.bf16 %v5592_v27 }
 0x507   : > { %v1486_v30 = vsel %vm763_vm6, %v5560_v36, %v4591_v39  ;;  %v4092_v44 = vpack.c.bf16 %v4595_v32, %v4590_v41  ;;  %v4624_v45 = vpop.permute.xlu0 %4623  ;;  %4043 = vmatpush1.bf16.msra.mxu0 %v4042_v38  ;;  %v1485_v46 = vsel %vm763_vm6, %v4546_v33, %v4590_v41  ;;  %v1487_v48 = vsel %vm763_vm6, %v4591_v39, %v4595_v32 }
 0x508   : > { %v5606_v49 = vpop.permute.xlu1 %4603  ;;  %v4044_v35 = vpack.c.bf16 %v1487_v48, %v1485_v46  ;;  %v4046_v50 = vpack.c.bf16 %v1486_v30, %v1484_v43  ;;  %v4576_v36 = vunpack.i.h.bf16 %v5562_v40  ;;  %v4626_v2 = vunpack.i.h.bf16 %v4624_v45 }
 0x509   : > { %4093 = vmatpush1.bf16.msra.mxu1 %v4092_v44  ;;  %v4606_v0 = vunpack.i.h.bf16 %v5606_v49  ;;  %v4605_v40 = vunpack.i.l.bf16 %v5606_v49  ;;  %v4625_v7 = vunpack.i.l.bf16 %v4624_v45  ;;  %v4610_v38 = vunpack.i.l.bf16 %v5592_v27 }
 0x50a   : > { %4045 = vmatprep.subr.bf16.mxu0 %v4044_v35  ;;  %4094 = vmatprep.subr.bf16.mxu1 %v5030_v10  ;;  %v1549_v1 = vsel %vm6350_vm12, %v4575_v4, %v4576_v36  ;;  %vm6358_vm12 = vmmov %vm6354_vm4  ;;  %v1582_v42 = vsel %vm6359_vm13, %v4600_v5, %v4601_v23 }
 0x50b   : > { %v5615_v8 = vpop.permute.xlu0 %4628  ;;  %4047 = vmatpush1.bf16.msra.mxu0 %v4046_v50  ;;  %v1584_v28 = vsel %vm6355_vm10, %v4605_v40, %v4606_v0  ;;  %v4104_v43 = vpack.c.bf16 %v4606_v0, %v4601_v23 }
 0x50c   : > { %v4614_v59 = vpop.permute.xlu1 %4613  ;;  %4049 = vmatprep.subr.bf16.mxu0 %v4048_v52  ;;  %v4631_v45 = vunpack.i.h.bf16 %v5615_v8  ;;  %v4630_v46 = vunpack.i.l.bf16 %v5615_v8 }
 0x50d   : > { %v4616_v61 = vunpack.i.h.bf16 %v4614_v59  ;;  %v4615_v62 = vunpack.i.l.bf16 %v4614_v59  ;;  %4096 = vmatpush1.bf16.msra.mxu1 %v4095_v13 }
 0x50e   : > { %4097 = vmatprep.subr.bf16.mxu1 %v5030_v10 }
 0x50f   : > { %v1519_v11 = vsel %vm6352_vm0, %v5572_v57, %v4615_v62  ;;  %v4098_v16 = vpack.c.bf16 %v4576_v36, %v4616_v61  ;;  %v5624_v20 = vpop.permute.xlu0 %4633  ;;  %4051 = vmatpush1.bf16.msra.mxu0 %v4050_v9  ;;  %v1520_v21 = vsel %vm6353_vm14, %v4615_v62, %v4616_v61  ;;  %v1550_v57 = vsel %vm6354_vm4, %v4626_v2, %v4581_v22  ;;  %vm6360_vm0 = vmmov %vm6355_vm10 }
 0x510   : > { %v4619_v25 = vpop.permute.xlu1 %4618  ;;  %v4052_v26 = vpack.c.bf16 %v1549_v1, %v1520_v21  ;;  %v4054_v18 = vpack.c.bf16 %v1548_v3, %v1519_v11  ;;  %v1583_v14 = vsel %vm6360_vm0, %v4611_v37, %v4605_v40  ;;  %vm6361_vm14 = vmmov %vm6360_vm0  ;;  %v4635_v48 = vunpack.i.l.bf16 %v5624_v20 }
 0x511   : > { %v4621_v12 = vunpack.i.h.bf16 %v4619_v25  ;;  %v4620_v6 = vunpack.i.l.bf16 %v4619_v25  ;;  %4099 = vmatpush1.bf16.msra.mxu1 %v4098_v16  ;;  %v1581_v31 = vsel %vm6361_vm14, %v4610_v38, %v4600_v5  ;;  %vm6362_vm4 = vcmask 744448   ;;  %v1662_v38 = vld [vmem:[%s6284_s5] sm:$0xff] }
 0x512   : > { %4053 = vmatprep.subr.bf16.mxu0 %v4052_v26  ;;  %4100 = vmatprep.subr.bf16.mxu1 %v5030_v10  ;;  %v4062_v27 = vpack.c.bf16 %v1583_v14, %v1581_v31  ;;  %v1615_v52 = vsel %vm6362_vm4, %v4630_v46, %v4631_v45  ;;  %vm6363_vm10 = vmmov %vm6362_vm4  ;;  %v4636_v58 = vunpack.i.h.bf16 %v5624_v20 }
 0x513   : > { %v1552_v56 = vsel %vm6356_vm8, %v5578_v63, %v4621_v12  ;;  %v4101_v29 = vpack.c.bf16 %v4625_v7, %v4620_v6  ;;  %v4649_v33 = vpop.permute.xlu0 %4648  ;;  %4055 = vmatpush1.bf16.msra.mxu0 %v4054_v18  ;;  %v1551_v34 = vsel %vm6357_vm11, %v4581_v22, %v4620_v6  ;;  %v1553_v19 = vsel %vm6358_vm12, %v4621_v12, %v4625_v7  ;;  %vm6364_vm8 = vmmov %vm6360_vm0 }
 0x514   : > { %v1576_v32 = vpop.permute.xlu1 %1575  ;;  %v4056_v39 = vpack.c.bf16 %v1553_v19, %v1551_v34  ;;  %v4058_v41 = vpack.c.bf16 %v1552_v56, %v1550_v57  ;;  %v4060_v63 = vpack.c.bf16 %v1584_v28, %v1582_v42  ;;  %v4651_v51 = vunpack.i.h.bf16 %v4649_v33  ;;  %vm6365_vm11 = vmmov %vm6360_vm0  ;;  %v5662_v19 = vld [vmem:[#allocation2 + $0x48] sm:$0xff] }
 0x515   : > { %4102 = vmatpush1.bf16.msra.mxu1 %v4101_v29  ;;  %v1614_v53 = vsel %vm6363_vm10, %v4635_v48, %v4630_v46  ;;  %v4650_v62 = vunpack.i.l.bf16 %v4649_v33  ;;  %vm6366_vm12 = vmmov %vm6362_vm4 }
 0x516   : > { %4057 = vmatprep.subr.bf16.mxu0 %v4056_v39  ;;  %4103 = vmatprep.subr.bf16.mxu1 %v5030_v10  ;;  %v1616_v0 = vsel %vm6366_vm12, %v4651_v51, %v4636_v58  ;;  %vm6367_vm13 = vmmov %vm6362_vm4 }
 0x517   : > { %4059 = vmatpush1.bf16.msra.mxu0 %v4058_v41  ;;  %v4654_v44 = vpop.permute.xlu0 %4653  ;;  %vm6368_vm0 = vmmov %vm6362_vm4  ;;  %vm6370_vm4 = vcmask 736256  }
 0x518   : > { %v1609_v30 = vpop.permute.xlu1 %1608  ;;  %4061 = vmatprep.subr.bf16.mxu0 %v4060_v63  ;;  %v4656_v40 = vunpack.i.h.bf16 %v4654_v44  ;;  %v4655_v1 = vunpack.i.l.bf16 %v4654_v44  ;;  %vm6369_vm14 = vmmov %vm6368_vm0 }
 0x519   : > { %4105 = vmatpush1.bf16.msra.mxu1 %v4104_v43  ;;  %vm6371_vm10 = vmmov %vm6370_vm4 }
 0x51a   : > { %4106 = vmatprep.subr.bf16.mxu1 %v5030_v10  ;;  %v1648_v7 = vsel %vm6370_vm4, %v4655_v1, %v4656_v40  ;;  %vm6374_vm12 = vmmov %vm6370_vm4 }
 0x51b   : > { %4063 = vmatpush1.bf16.msra.mxu0 %v4062_v27  ;;  %v4664_v54 = vpop.permute.xlu0 %4663 }
 0x51c   : > { %v4639_v49 = vpop.permute.xlu1 %4638  ;;  %v4665_v3 = vunpack.i.l.bf16 %v4664_v54  ;;  %v4666_v26 = vunpack.i.h.bf16 %v4664_v54  ;;  %v1848_v54 = vld [vmem:[#allocation2 + $0x20] sm:$0xff] }
 0x51d   : > { %v4641_v35 = vunpack.i.h.bf16 %v4639_v49  ;;  %v4640_v50 = vunpack.i.l.bf16 %v4639_v49 }
 0x51e   : > { %v1647_v12 = vsel %vm6371_vm10, %v4665_v3, %v4655_v1 }
 0x51f   : > { %v1585_v36 = vsel %vm6364_vm8, %v1576_v32, %v4640_v50  ;;  %v4107_v4 = vpack.c.bf16 %v4631_v45, %v4641_v35  ;;  %v1586_v13 = vsel %vm6365_vm11, %v4640_v50, %v4641_v35  ;;  %vm6372_vm8 = vmmov %vm6370_vm4  ;;  %v1646_v34 = vpop.permute.xlu0 %1645 }
 0x520   : > { %v4644_v8 = vpop.permute.xlu1 %4643  ;;  %v4064_v59 = vpack.c.bf16 %v1615_v52, %v1586_v13  ;;  %v4066_v61 = vpack.c.bf16 %v1614_v53, %v1585_v36  ;;  %vm6373_vm11 = vmmov %vm6370_vm4  ;;  %v1845_v53 = vld [vmem:[#allocation2 + $0x8] sm:$0xff] }
 0x521   : > { %v4646_v9 = vunpack.i.h.bf16 %v4644_v8  ;;  %v4645_v2 = vunpack.i.l.bf16 %v4644_v8  ;;  %4108 = vmatpush1.bf16.msra.mxu1 %v4107_v4  ;;  %v1849_v36 = vld [vmem:[#allocation2 + $0x28] sm:$0xff]  ;;  %v1846_v4 = vld [vmem:[#allocation2 + $0x10] sm:$0xff]  ;;  %v1844_v8 = vld [vmem:[#allocation2] sm:$0xff] }
 0x522   : > { %4065 = vmatprep.subr.bf16.mxu0 %v4064_v59  ;;  %4109 = vmatprep.subr.bf16.mxu1 %v5030_v10  ;;  %v4667_v13 = vpack.i.bf16 %v1849_v36, %v1848_v54 }
 0x523   : > { %v1618_v11 = vsel %vm6367_vm13, %v1609_v30, %v4646_v9  ;;  %v4110_v16 = vpack.c.bf16 %v4650_v62, %v4645_v2  ;;  %4067 = vmatpush1.bf16.msra.mxu0 %v4066_v61  ;;  %v1617_v20 = vsel %vm6368_vm0, %v4636_v58, %v4645_v2  ;;  %v1619_v21 = vsel %vm6369_vm14, %v4646_v9, %v4650_v62  ;;  %vm6375_vm13 = vmmov %vm6370_vm4  ;;  %v1847_v58 = vld [vmem:[#allocation2 + $0x18] sm:$0xff] }
 0x524   : > { %v4659_v22 = vpop.permute.xlu1 %4658  ;;  %v4068_v23 = vpack.c.bf16 %v1619_v21, %v1617_v20  ;;  %v4070_v25 = vpack.c.bf16 %v1618_v11, %v1616_v0  ;;  %vm6376_vm0 = vmmov 0   ;;  %v4672_v59 = vpack.i.bf16 %v5472_v15, %v1847_v58 }
 0x525   : > { %v4661_v18 = vunpack.i.h.bf16 %v4659_v22  ;;  %v4660_v5 = vunpack.i.l.bf16 %v4659_v22  ;;  %4111 = vmatpush1.bf16.msra.mxu1 %v4110_v16 }
 0x526   : > { %4069 = vmatprep.subr.bf16.mxu0 %v4068_v23  ;;  %4112 = vmatprep.subr.bf16.mxu1 %v5030_v10 }
 0x527   : > { %v1649_v6 = vsel %vm6372_vm8, %v4666_v26, %v4660_v5  ;;  %v4113_v57 = vpack.c.bf16 %v4661_v18, %v4656_v40  ;;  %4071 = vmatpush1.bf16.msra.mxu0 %v4070_v25  ;;  %v1650_v28 = vsel %vm6373_vm11, %v4660_v5, %v4661_v18  ;;  %vm6377_vm8 = vcmask 891904  }
 0x528   : > { %v1644_v56 = vpop.permute.xlu1 %1643  ;;  %v4072_v29 = vpack.c.bf16 %v1650_v28, %v1648_v7  ;;  %v4074_v33 = vpack.c.bf16 %v1649_v6, %v1647_v12  ;;  %vm6378_vm11 = vmmov %vm6377_vm8  ;;  %v1857_v28 = vld [vmem:[%s6287_s8] sm:$0xff] }
 0x529   : > { %4114 = vmatpush1.bf16.msra.mxu1 %v4113_v57  ;;  %v1652_v37 = vsel %vm6374_vm12, %v1644_v56, %v1646_v34  ;;  %vm6379_vm12 = vmmov %vm6377_vm8 }
 0x52a   : > { %4073 = vmatprep.subr.bf16.mxu0 %v4072_v29  ;;  %1797 = vmatprep.subr.mxu1 %v5662_v19 }
 0x52b   : > { %4075 = vmatpush1.bf16.msra.mxu0 %v4074_v33 }
 0x52c   : > { %v1642_v32 = vpop.permute.xlu1 %1641  ;;  %1726 = vmatprep.subr.mxu0 %v1652_v37 }
 0x52d   : > { %v1651_v39 = vsel %vm6375_vm13, %v1642_v32, %v1644_v56  ;;  %1798 = vmatpush1.msra.mxu1 %v1646_v34  ;;  %vm6380_vm13 = vmmov %vm6377_vm8 }
 0x52e   : > { %1810 = vmatmul.mubr.f32.vlgmr.msra.gmra.mrb[4].mxu1 %v1662_v38  ;;  %4123 = vmatprep.subr.bf16.mxu1 %v5030_v10 }
 0x52f   : > { %1727 = vmatpush1.msra.mxu0 %v1651_v39  ;;  %3888 = vmatprep.mubr.msk.f32.mxu1 %vm6376_vm0, %v5662_v19 }
 0x530   : > { %1739 = vmatmul.mubr.f32.vlgmr.msra.gmra.mrb[4].mxu0 %v1662_v38  ;;  %v1668_v41 = vpop.permute.xlu0 %1667 }
 0x531   : > { %1987 = vmatprep.mubr.f32.mxu0 %v5662_v19 }
 0x601   : > { %v1811_v42 = vpop.f32.mrb[4].mxu1 }
 0x602   : > { %v1812_v14 = vadd.f32 %v1811_v42, %v1668_v41  ;;  %v1813_v63 = vpop.f32.mrb[5].mxu1 }
 0x603   : > { %v1740_v43 = vpop.f32.mrb[4].mxu0 }
 0x604   : > { %v1741_v31 = vadd.f32 %v1740_v43, %v1668_v41  ;;  %v1742_v30 = vpop.f32.mrb[5].mxu0  ;;  %v1820_v27 = vmul.f32 0.1, %v1812_v14  ;;  %vm1817_vm4 = vcmp.ge.f32.partialorder %v1812_v14, 0.0 }
 0x605   : > { %v1743_v44 = vadd.f32 %v1742_v30, %v1668_v41  ;;  %v1856_v30 = vld [vmem:[%s6286_s7] sm:$0xff] }
 0x606   : > { %vm1815_vm14 = vcmp.ge.f32.partialorder %v1741_v31, 0.0  ;;  %v1818_v45 = vmul.f32 0.1, %v1741_v31  ;;  %v1823_v51 = vsel %vm1817_vm4, %v1812_v14, %v1820_v27  ;;  %vm6382_vm4 = vmmov %vm6377_vm8 }
 0x607   : > { %vm1816_vm10 = vcmp.ge.f32.partialorder %v1743_v44, 0.0  ;;  %v1819_v46 = vmul.f32 0.1, %v1743_v44  ;;  %v1826_v52 = vmul.f32 %v5276_v47, %v1823_v51 }
 0x608   : > { %v1821_v48 = vsel %vm1815_vm14, %v1741_v31, %v1818_v45  ;;  %vm6381_vm14 = vmmov %vm6377_vm8 }
 0x609   : > { %v1824_v49 = vmul.f32 %v5281_v55, %v1821_v48  ;;  %v1822_v35 = vsel %vm1816_vm10, %v1743_v44, %v1819_v46  ;;  %vm6383_vm10 = vmmov %vm6382_vm4 }
 0x60a   : > { %v1825_v50 = vmul.f32 %v5287_v60, %v1822_v35 }
 0x60b   : > { %1830 = vrot.lane.b32.xlu1 %v1824_v49, %s5027_s26 }
 0x60c   : > { %1832 = vrot.lane.b32.xlu0 %v1825_v50, %s5027_s26 }
 0x60f   : > { %1834 = vrot.lane.b32.xlu1 %v1826_v52, %s5027_s26 }
 0x610   : > { %1877 = vrot.lane.b32.xlu0 %v1845_v53, %s5031_s4 }
 0x613   : > { %1879 = vrot.lane.b32.xlu1 %v1846_v4, %s5031_s4 }
 0x614   : > { %4668 = vrot.lane.b32.xlu0 %v4667_v13, %s5031_s4 }
 0x617   : > { %1875 = vrot.lane.b32.xlu1 %v1844_v8, %s5031_s4 }
 0x618   : > { %4673 = vrot.lane.b32.xlu0 %v4672_v59, %s5031_s4 }
 0x67d   : > { %v1831_v61 = vpop.permute.xlu1 %1830 }
 0x67e   : > { %1841 = vst.msk [vmem:[#allocation2 + $0x48] sm:$0xff] %vm722_vm1, %v1831_v61  ;;  %v1833_v62 = vpop.permute.xlu0 %1832 }
 0x67f   : > { %v1836_v9 = vsel %vm716_vm2, %v1831_v61, %v1833_v62 }
 0x680   : > { %v4677_v2 = vpack.i.bf16 %v1836_v9, %v5485_v24 }
 0x681   : > { %v1835_v0 = vpop.permute.xlu1 %1834 }
 0x682   : > { %v1837_v40 = vsel %vm716_vm2, %v1833_v62, %v1835_v0  ;;  %v1878_v1 = vpop.permute.xlu0 %1877  ;;  %4678 = vrot.lane.b32.xlu1 %v4677_v2, %s5031_s4  ;;  %v2183_v0 = vld [vmem:[%s6289_s10] sm:$0xff] }
 0x683   : > { %1843 = vst.msk [vmem:[#allocation2 + $0x58] sm:$0xff] %vm725_vm3, %v1837_v40 }
 0x685   : > { %v1880_v15 = vpop.permute.xlu1 %1879  ;;  %v1853_v3 = vld [vmem:[#allocation2 + $0x48] sm:$0xff] }
 0x686   : > { %v4669_v11 = vpop.permute.xlu0 %4668  ;;  %1893 = vrot.lane.b32.xlu1 %v1853_v3, %s5031_s4  ;;  %v1900_v22 = vsel %vm6377_vm8, %v1878_v1, %v1880_v15  ;;  %vm6384_vm8 = vmmov %vm6382_vm4 }
 0x687   : > { %v4671_v16 = vunpack.i.h.bf16 %v4669_v11  ;;  %v4670_v20 = vunpack.i.l.bf16 %v4669_v11 }
 0x689   : > { %v4124_v21 = vpack.c.bf16 %v4671_v16, %v1880_v15  ;;  %v1902_v24 = vsel %vm6378_vm11, %v4670_v20, %v4671_v16  ;;  %v1876_v23 = vpop.permute.xlu1 %1875  ;;  %vm1919_vm11 = vcmask 261120  }
 0x68a   : > { %v4674_v25 = vpop.permute.xlu0 %4673  ;;  %v4115_v26 = vpack.c.bf16 %v1902_v24, %v1900_v22  ;;  %v1855_v18 = vld [vmem:[#allocation2 + $0x58] sm:$0xff]  ;;  %v1899_v12 = vsel %vm6379_vm12, %v1876_v23, %v1878_v1  ;;  %vm6386_vm12 = vcmask 883712  }
 0x68b   : > { %v4675_v5 = vunpack.i.l.bf16 %v4674_v25  ;;  %4125 = vmatpush3.bf16.msra.mxu1 %v4124_v21  ;;  %v4682_v7 = vpack.i.bf16 %v5476_v17, %v1855_v18  ;;  %v4676_v33 = vunpack.i.h.bf16 %v4674_v25 }
 0x68c   : > { %4116 = vmatprep.subr.bf16.mxu0 %v4115_v26  ;;  %4126 = vmatprep.subr.bf16.mxu1 %v5030_v10 }
 0x68d   : > { %v1901_v6 = vsel %vm6380_vm13, %v4675_v5, %v4670_v20  ;;  %4683 = vrot.lane.b32.xlu0 %v4682_v7, %s5031_s4  ;;  %vm6387_vm13 = vmmov %vm6382_vm4 }
 0x68e   : > { %v4117_v57 = vpack.c.bf16 %v1901_v6, %v1899_v12 }
 0x690   : > { %4118 = vmatpush1.bf16.msra.mxu0 %v4117_v57 }
 0x691   : > { %1860 = vperm.xlu0 %4390, %v1857_v28  }
 0x6f4   : > { %v4679_v56 = vpop.permute.xlu1 %4678 }
 0x6f5   : > { %v4680_v29 = vunpack.i.l.bf16 %v4679_v56  ;;  %v4681_v37 = vunpack.i.h.bf16 %v4679_v56 }
 0x6f7   : > { %v1904_v39 = vsel %vm6381_vm14, %v4676_v33, %v4680_v29  ;;  %vm6388_vm14 = vmmov %vm6382_vm4 }
 0x6f8   : > { %v1894_v34 = vpop.permute.xlu1 %1893 }
 0x6f9   : > { %v1905_v14 = vsel %vm6383_vm10, %v1894_v34, %v4681_v37  ;;  %vm6390_vm10 = vcmask 744448  }
 0x6ff   : > { %v4684_v17 = vpop.permute.xlu0 %4683 }
 0x700   : > { %v4686_v38 = vunpack.i.h.bf16 %v4684_v17  ;;  %v4685_v32 = vunpack.i.l.bf16 %v4684_v17 }
 0x702   : > { %v4127_v41 = vpack.c.bf16 %v4685_v32, %v4680_v29  ;;  %v1903_v42 = vsel %vm6382_vm4, %v4686_v38, %v4676_v33  ;;  %v1906_v63 = vsel %vm6384_vm8, %v4681_v37, %v4685_v32  ;;  %vm6389_vm4 = vmmov %vm6386_vm12  ;;  %vm6391_vm8 = vcmask 752640  }
 0x703   : > { %v4121_v43 = vpack.c.bf16 %v1905_v14, %v1903_v42  ;;  %v4119_v31 = vpack.c.bf16 %v1906_v63, %v1904_v39 }
 0x704   : > { %4128 = vmatpush3.bf16.msra.mxu1 %v4127_v41 }
 0x705   : > { %4120 = vmatprep.subr.bf16.mxu0 %v4119_v31  ;;  %4145 = vmatprep.subr.bf16.mxu1 %v5030_v10 }
 0x706   : > { %4122 = vmatpush1.bf16.msra.mxu0 %v4121_v43 }
 0x707   : > { %3889 = vmatmul.mubr.msk.f32.vlgmr.msra.gmra.mrb[6].mxu1 %vm1919_vm11, %v1856_v30 }
 0x708   : > { %3909 = vmatprep.mubr.msk.f32.mxu1 %vm6376_vm0, %v5662_v19 }
 0x709   : > { %3809 = vmatmul.mubr.msk.f32.vlgmr.msra.gmra.mrb[6].mxu0 %vm1919_vm11, %v1856_v30 }
 0x70a   : > { %2256 = vmatprep.mubr.f32.mxu0 %v5662_v19 }
 0x710   : > { %v1861_v45 = vpop.permute.xlu0 %1860 }
 0x7da   : > { %v2060_v44 = vpop.f32.mrb[6].mxu1 }
 0x7db   : > { %v3890_v27 = vpop.f32.mrb[7].mxu1  ;;  %v2061_v48 = vadd.f32 %v2060_v44, %v1861_v45 }
 0x7dc   : > { %v1989_v46 = vpop.f32.mrb[6].mxu0 }
 0x7dd   : > { %v1990_v49 = vadd.f32 %v1989_v46, %v1861_v45  ;;  %v1991_v35 = vpop.f32.mrb[7].mxu0  ;;  %v2066_v53 = vadd.f32 %v2061_v48, %v1880_v15 }
 0x7de   : > { %v1992_v50 = vadd.f32 %v1991_v35, %v1861_v45 }
 0x7df   : > { %v2064_v51 = vadd.f32 %v1990_v49, %v1899_v12  ;;  %v5727_v4 = vmul.f32 %v5276_v47, %v2066_v53 }
 0x7e0   : > { %v2065_v52 = vadd.f32 %v1992_v50, %v1900_v22 }
 0x7e1   : > { %v5717_v54 = vmul.f32 %v5281_v55, %v2064_v51 }
 0x7e2   : > { %v5720_v36 = vmul.f32 %v5287_v60, %v2065_v52 }
 0x7e3   : > { %2073 = vrot.lane.b32.xlu1 %v5717_v54, %s5027_s26 }
 0x7e4   : > { %2075 = vrot.lane.b32.xlu0 %v5720_v36, %s5027_s26 }
 0x7e7   : > { %2077 = vrot.lane.b32.xlu1 %v5727_v4, %s5027_s26 }
 0x855   : > { %v2074_v13 = vpop.permute.xlu1 %2073 }
 0x856   : > { %2084 = vst.msk [vmem:[#allocation2] sm:$0xff] %vm722_vm1, %v2074_v13  ;;  %v2076_v58 = vpop.permute.xlu0 %2075 }
 0x857   : > { %v5733_v8 = vsel %vm716_vm2, %v2074_v13, %v2076_v58 }
 0x858   : > { %2085 = vst [vmem:[#allocation2 + $0x8] sm:$0xff] %v5733_v8 }
 0x859   : > { %v2078_v59 = vpop.permute.xlu1 %2077 }
 0x85a   : > { %v2080_v61 = vsel %vm716_vm2, %v2076_v58, %v2078_v59 }
 0x85b   : > { %2086 = vst.msk [vmem:[#allocation2 + $0x10] sm:$0xff] %vm725_vm3, %v2080_v61 }
 0x85d   : > { %v5738_v62 = vld [vmem:[#allocation2] sm:$0xff] }
 0x85e   : > { %2105 = vrot.lane.b32.xlu0 %v5738_v62, %s5028_s27  ;;  %2094 = vrot.lane.b32.xlu1 %v5738_v62, %s5029_s28 }
 0x862   : > { %2127 = vrot.lane.b32.xlu0 %v5738_v62, %s5031_s4  ;;  %2116 = vrot.lane.b32.xlu1 %v5738_v62, %s5032_s29  ;;  %v5748_v9 = vld [vmem:[#allocation2 + $0x10] sm:$0xff] }
 0x863   : > { %v5756_v2 = vpack.i.bf16 %v5748_v9, %v5733_v8 }
 0x866   : > { %2149 = vrot.lane.b32.xlu0 %v5738_v62, %s6312_s30  ;;  %2138 = vrot.lane.b32.xlu1 %v5738_v62, %s6385_s23 }
 0x86a   : > { %4698 = vrot.lane.b32.xlu1 %v5756_v2, %s5032_s29  ;;  %4688 = vrot.lane.b32.xlu0 %v5756_v2, %s5029_s28 }
 0x86e   : > { %4708 = vrot.lane.b32.xlu1 %v5756_v2, %s6385_s23  ;;  %4693 = vrot.lane.b32.xlu0 %v5756_v2, %s5028_s27 }
 0x872   : > { %4718 = vrot.lane.b32.xlu1 %v5756_v2, %s5035_s21  ;;  %4703 = vrot.lane.b32.xlu0 %v5756_v2, %s5031_s4 }
 0x876   : > { %2160 = vrot.lane.b32.xlu1 %v5738_v62, %s5035_s21  ;;  %4713 = vrot.lane.b32.xlu0 %v5756_v2, %s6312_s30 }
 0x87a   : > { %2175 = vrot.lane.b32.xlu1 %v5748_v9, %s5038_s24  ;;  %2173 = vrot.lane.b32.xlu0 %v5733_v8, %s5038_s24 }
 0x87e   : > { %2186 = vperm.xlu1 %4511, %v2183_v0   ;;  %2171 = vrot.lane.b32.xlu0 %v5738_v62, %s5038_s24 }
 0x8d0   : > { %v2106_v40 = vpop.permute.xlu0 %2105  ;;  %v2095_v1 = vpop.permute.xlu1 %2094 }
 0x8d4   : > { %v2128_v15 = vpop.permute.xlu0 %2127  ;;  %v2117_v3 = vpop.permute.xlu1 %2116 }
 0x8d8   : > { %v2150_v11 = vpop.permute.xlu0 %2149  ;;  %v2139_v16 = vpop.permute.xlu1 %2138 }
 0x8dc   : > { %v4689_v20 = vpop.permute.xlu0 %4688  ;;  %v4699_v21 = vpop.permute.xlu1 %4698 }
 0x8dd   : > { %v4691_v22 = vunpack.i.h.bf16 %v4689_v20  ;;  %v4690_v24 = vunpack.i.l.bf16 %v4689_v20  ;;  %v4701_v23 = vunpack.i.h.bf16 %v4699_v21  ;;  %v4700_v25 = vunpack.i.l.bf16 %v4699_v21 }
 0x8df   : > { %v4146_v26 = vpack.c.bf16 %v4691_v22, %v5748_v9  ;;  %v2100_v18 = vsel %vm739_vm5, %v2095_v1, %v4690_v24  ;;  %v2101_v5 = vsel %vm739_vm5, %v4690_v24, %v4691_v22  ;;  %v2122_v29 = vsel %vm763_vm6, %v2117_v3, %v4700_v25 }
 0x8e0   : > { %v4694_v7 = vpop.permute.xlu0 %4693  ;;  %v4709_v12 = vpop.permute.xlu1 %4708  ;;  %v4129_v6 = vpack.c.bf16 %v2101_v5, %v5733_v8  ;;  %v4131_v57 = vpack.c.bf16 %v2100_v18, %v5738_v62  ;;  %v2123_v17 = vsel %vm763_vm6, %v4700_v25, %v4701_v23 }
 0x8e1   : > { %v4696_v28 = vunpack.i.h.bf16 %v4694_v7  ;;  %v4695_v56 = vunpack.i.l.bf16 %v4694_v7  ;;  %4147 = vmatpush3.bf16.msra.mxu1 %v4146_v26  ;;  %v4710_v33 = vunpack.i.l.bf16 %v4709_v12  ;;  %v4711_v38 = vunpack.i.h.bf16 %v4709_v12 }
 0x8e2   : > { %4130 = vmatprep.subr.bf16.mxu0 %v4129_v6  ;;  %4148 = vmatprep.subr.bf16.mxu1 %v5030_v10 }
 0x8e3   : > { %v2111_v34 = vsel %vm751_vm7, %v2106_v40, %v4695_v56  ;;  %v4149_v37 = vpack.c.bf16 %v4701_v23, %v4696_v28  ;;  %4132 = vmatpush1.bf16.msra.mxu0 %v4131_v57  ;;  %v2112_v32 = vsel %vm751_vm7, %v4695_v56, %v4696_v28  ;;  %v2144_v31 = vsel %vm6386_vm12, %v2139_v16, %v4710_v33  ;;  %vm6392_vm12 = vmmov %vm6390_vm10 }
 0x8e4   : > { %v4704_v39 = vpop.permute.xlu0 %4703  ;;  %v4719_v41 = vpop.permute.xlu1 %4718  ;;  %v4133_v42 = vpack.c.bf16 %v2123_v17, %v2112_v32  ;;  %v4135_v14 = vpack.c.bf16 %v2122_v29, %v2111_v34  ;;  %v2145_v48 = vsel %vm6389_vm4, %v4710_v33, %v4711_v38 }
 0x8e5   : > { %v4706_v63 = vunpack.i.h.bf16 %v4704_v39  ;;  %v4705_v43 = vunpack.i.l.bf16 %v4704_v39  ;;  %4150 = vmatpush3.bf16.msra.mxu1 %v4149_v37  ;;  %v4721_v30 = vunpack.i.h.bf16 %v4719_v41  ;;  %v4720_v44 = vunpack.i.l.bf16 %v4719_v41 }
 0x8e6   : > { %4134 = vmatprep.subr.bf16.mxu0 %v4133_v42  ;;  %4151 = vmatprep.subr.bf16.mxu1 %v5030_v10 }
 0x8e7   : > { %v2133_v27 = vsel %vm6387_vm13, %v2128_v15, %v4705_v43  ;;  %v4152_v45 = vpack.c.bf16 %v4711_v38, %v4706_v63  ;;  %4136 = vmatpush1.bf16.msra.mxu0 %v4135_v14  ;;  %v2134_v46 = vsel %vm6388_vm14, %v4705_v43, %v4706_v63  ;;  %v2167_v13 = vsel %vm6390_vm10, %v4720_v44, %v4721_v30  ;;  %vm6393_vm13 = vmmov %vm6391_vm8 }
 0x8e8   : > { %v4139_v49 = vpack.c.bf16 %v2144_v31, %v2133_v27  ;;  %v4714_v35 = vpop.permute.xlu0 %4713  ;;  %v2161_v50 = vpop.permute.xlu1 %2160  ;;  %v4137_v51 = vpack.c.bf16 %v2145_v48, %v2134_v46  ;;  %vm6394_vm14 = vcmask 736256   ;;  %vm6396_vm10 = vcmask 588800  }
 0x8e9   : > { %v4716_v52 = vunpack.i.h.bf16 %v4714_v35  ;;  %v4715_v53 = vunpack.i.l.bf16 %v4714_v35  ;;  %4153 = vmatpush3.bf16.msra.mxu1 %v4152_v45  ;;  %v2166_v61 = vsel %vm6392_vm12, %v2161_v50, %v4720_v44  ;;  %vm6395_vm4 = vmmov %vm6394_vm14  ;;  %v2552_v44 = vld [vmem:[%s6291_s12] sm:$0xff] }
 0x8ea   : > { %4138 = vmatprep.subr.bf16.mxu0 %v4137_v51  ;;  %4154 = vmatprep.subr.bf16.mxu1 %v5030_v10 }
 0x8eb   : > { %v4155_v58 = vpack.c.bf16 %v4721_v30, %v4716_v52  ;;  %v2155_v59 = vsel %vm6391_vm8, %v2150_v11, %v4715_v53  ;;  %4140 = vmatpush1.bf16.msra.mxu0 %v4139_v49  ;;  %v2156_v0 = vsel %vm6393_vm13, %v4715_v53, %v4716_v52  ;;  %v2182_v11 = vld [vmem:[%s6288_s9] sm:$0xff]  ;;  %vm6397_vm8 = vmmov %vm6396_vm10 }
 0x8ec   : > { %v4143_v40 = vpack.c.bf16 %v2166_v61, %v2155_v59  ;;  %v2174_v1 = vpop.permute.xlu0 %2173  ;;  %v2176_v15 = vpop.permute.xlu1 %2175  ;;  %v4141_v3 = vpack.c.bf16 %v2167_v13, %v2156_v0 }
 0x8ed   : > { %4156 = vmatpush3.bf16.msra.mxu1 %v4155_v58  ;;  %v2178_v16 = vsel %vm6394_vm14, %v2174_v1, %v2176_v15 }
 0x8ee   : > { %4142 = vmatprep.subr.bf16.mxu0 %v4141_v3  ;;  %3907 = vmatprep.subr.mxu1 %v5662_v19 }
 0x8ef   : > { %4144 = vmatpush1.bf16.msra.mxu0 %v4143_v40 }
 0x8f0   : > { %v2172_v20 = vpop.permute.xlu0 %2171  ;;  %2208 = vmatprep.subr.mxu0 %v2178_v16 }
 0x8f1   : > { %v2177_v21 = vsel %vm6395_vm4, %v2172_v20, %v2174_v1  ;;  %3908 = vmatpush3.msra.mxu1 %v2176_v15 }
 0x8f2   : > { %3910 = vmatmul.mubr.msk.f32.vlgmr.msra.gmra.mrb[8].mxu1 %vm6396_vm10, %v2182_v11  ;;  %4193 = vmatprep.subr.bf16.mxu1 %v5030_v10 }
 0x8f3   : > { %2209 = vmatpush1.msra.mxu0 %v2177_v21 }
 0x8f4   : > { %3811 = vmatmul.mubr.msk.f32.vlgmr.msra.gmra.mrb[8].mxu0 %vm6397_vm8, %v2182_v11 }
 0x8fd   : > { %v2187_v22 = vpop.permute.xlu1 %2186 }
 0x9c5   : > { %v2329_v24 = vpop.f32.mrb[8].mxu1 }
 0x9c6   : > { %v2330_v23 = vadd.f32 %v2329_v24, %v2187_v22  ;;  %v3911_v25 = vpop.f32.mrb[9].mxu1 }
 0x9c7   : > { %v2258_v26 = vpop.f32.mrb[8].mxu0 }
 0x9c8   : > { %v2259_v18 = vadd.f32 %v2258_v26, %v2187_v22  ;;  %v2260_v5 = vpop.f32.mrb[9].mxu0  ;;  %v2338_v12 = vmul.f32 0.1, %v2330_v23  ;;  %vm2335_vm13 = vcmp.ge.f32.partialorder %v2330_v23, 0.0 }
 0x9c9   : > { %v2261_v7 = vadd.f32 %v2260_v5, %v2187_v22 }
 0x9ca   : > { %vm2333_vm12 = vcmp.ge.f32.partialorder %v2259_v18, 0.0  ;;  %v2336_v6 = vmul.f32 0.1, %v2259_v18  ;;  %v2341_v33 = vsel %vm2335_vm13, %v2330_v23, %v2338_v12 }
 0x9cb   : > { %vm2334_vm14 = vcmp.ge.f32.partialorder %v2261_v7, 0.0  ;;  %v2337_v57 = vmul.f32 0.1, %v2261_v7  ;;  %v2344_v34 = vmul.f32 %v5276_v47, %v2341_v33 }
 0x9cc   : > { %v2339_v28 = vsel %vm2333_vm12, %v2259_v18, %v2336_v6  ;;  %vm6402_vm12 = vcmask 883712  }
 0x9cd   : > { %v2342_v56 = vmul.f32 %v5281_v55, %v2339_v28  ;;  %v2340_v29 = vsel %vm2334_vm14, %v2261_v7, %v2337_v57  ;;  %vm6403_vm13 = vmmov %vm6402_vm12 }
 0x9ce   : > { %v2343_v17 = vmul.f32 %v5287_v60, %v2340_v29  ;;  %vm6404_vm14 = vmmov %vm6402_vm12 }
 0x9cf   : > { %2348 = vrot.lane.b32.xlu0 %v2342_v56, %s5027_s26 }
 0x9d0   : > { %2350 = vrot.lane.b32.xlu1 %v2343_v17, %s5027_s26 }
 0x9d3   : > { %2352 = vrot.lane.b32.xlu0 %v2344_v34, %s5027_s26 }
 0x9d4   : > { %4723 = vrot.lane.b32.xlu1 %v5756_v2, %s5029_s28 }
 0x9d7   : > { %4728 = vrot.lane.b32.xlu0 %v5756_v2, %s5028_s27 }
 0x9d8   : > { %4733 = vrot.lane.b32.xlu1 %v5756_v2, %s5032_s29 }
 0x9db   : > { %4738 = vrot.lane.b32.xlu0 %v5756_v2, %s5031_s4 }
 0xa41   : > { %v2349_v37 = vpop.permute.xlu0 %2348 }
 0xa42   : > { %2359 = vst.msk [vmem:[#allocation2 + $0x18] sm:$0xff] %vm722_vm1, %v2349_v37  ;;  %v2351_v38 = vpop.permute.xlu1 %2350 }
 0xa43   : > { %v5828_v32 = vsel %vm716_vm2, %v2349_v37, %v2351_v38 }
 0xa44   : > { %2360 = vst [vmem:[#allocation2 + $0x20] sm:$0xff] %v5828_v32  ;;  %v5833_v39 = vpack.c.bf16 %v5828_v32, %v5733_v8 }
 0xa45   : > { %v2353_v41 = vpop.permute.xlu0 %2352 }
 0xa46   : > { %v2355_v42 = vsel %vm716_vm2, %v2351_v38, %v2353_v41  ;;  %4158 = vmatprep.subr.bf16.mxu0 %v5833_v39  ;;  %v4724_v27 = vpop.permute.xlu1 %4723 }
 0xa47   : > { %2361 = vst.msk [vmem:[#allocation2 + $0x28] sm:$0xff] %vm725_vm3, %v2355_v42  ;;  %v4726_v50 = vunpack.i.h.bf16 %v4724_v27  ;;  %v4725_v51 = vunpack.i.l.bf16 %v4724_v27 }
 0xa49   : > { %v5838_v14 = vld [vmem:[#allocation2 + $0x18] sm:$0xff]  ;;  %v4729_v45 = vpop.permute.xlu0 %4728  ;;  %v2387_v0 = vsel %vm739_vm5, %v4725_v51, %v4726_v50 }
 0xa4a   : > { %v5842_v63 = vpack.i.bf16 %v5838_v14, %v5738_v62  ;;  %v5846_v43 = vpack.c.bf16 %v5838_v14, %v5738_v62  ;;  %v4734_v46 = vpop.permute.xlu1 %4733  ;;  %v4731_v22 = vunpack.i.h.bf16 %v4729_v45  ;;  %v4730_v24 = vunpack.i.l.bf16 %v4729_v45 }
 0xa4b   : > { %v4736_v25 = vunpack.i.h.bf16 %v4734_v46  ;;  %v4735_v18 = vunpack.i.l.bf16 %v4734_v46 }
 0xa4c   : > { %4748 = vrot.lane.b32.xlu0 %v5842_v63, %s5028_s27  ;;  %4743 = vrot.lane.b32.xlu1 %v5842_v63, %s5029_s28  ;;  %v2409_v56 = vsel %vm751_vm7, %v4730_v24, %v4731_v22 }
 0xa4d   : > { %4160 = vmatpush1.bf16.msra.mxu0 %v5846_v43  ;;  %v5909_v48 = vpop.permute.xlu0 %4738  ;;  %v2431_v27 = vsel %vm763_vm6, %v4735_v18, %v4736_v25 }
 0xa4e   : > { %v5853_v8 = vld [vmem:[#allocation2 + $0x28] sm:$0xff]  ;;  %v4741_v46 = vunpack.i.h.bf16 %v5909_v48 }
 0xa4f   : > { %v5857_v31 = vpack.i.bf16 %v5853_v8, %v5828_v32  ;;  %v5861_v30 = vpack.c.bf16 %v5853_v8, %v5748_v9  ;;  %v2551_v9 = vld [vmem:[%s6290_s11 + $0x8] sm:$0xff] }
 0xa50   : > { %4753 = vrot.lane.b32.xlu1 %v5842_v63, %s5032_s29  ;;  %3814 = vmatprep.mubr.msk.f32.mxu1 %vm1206_vm9, %v2551_v9 }
 0xa51   : > { %4758 = vrot.lane.b32.xlu0 %v5857_v31, %s5029_s28  ;;  %4195 = vmatpush1.bf16.msra.mxu1 %v5861_v30 }
 0xa52   : > { %4196 = vmatprep.subr.bf16.mxu1 %v5030_v10  ;;  %3813 = vmatprep.mubr.msk.f32.mxu0 %vm1206_vm9, %v2551_v9  ;;  %vm6398_vm9 = vcmask 891904  }
 0xa53   : > { %vm6399_vm4 = vmmov %vm6398_vm9 }
 0xa54   : > { %4768 = vrot.lane.b32.xlu1 %v5756_v2, %s6385_s23  ;;  %vm6400_vm10 = vmmov %vm6399_vm4 }
 0xa55   : > { %4763 = vrot.lane.b32.xlu0 %v5842_v63, %s5031_s4  ;;  %vm6401_vm8 = vmmov %vm6399_vm4 }
 0xa58   : > { %4773 = vrot.lane.b32.xlu1 %v5857_v31, %s5028_s27 }
 0xa59   : > { %4783 = vrot.lane.b32.xlu0 %v5857_v31, %s5032_s29 }
 0xa5c   : > { %4778 = vrot.lane.b32.xlu1 %v5842_v63, %s6385_s23 }
 0xa5d   : > { %4788 = vrot.lane.b32.xlu0 %v5756_v2, %s6312_s30 }
 0xa60   : > { %4793 = vrot.lane.b32.xlu1 %v5857_v31, %s5031_s4 }
 0xa61   : > { %4798 = vrot.lane.b32.xlu0 %v5857_v31, %s6385_s23 }
 0xa64   : > { %4808 = vrot.lane.b32.xlu1 %v5756_v2, %s5035_s21 }
 0xa65   : > { %4803 = vrot.lane.b32.xlu0 %v5842_v63, %s6312_s30 }
 0xa68   : > { %4813 = vrot.lane.b32.xlu1 %v5857_v31, %s6312_s30 }
 0xa69   : > { %4823 = vrot.lane.b32.xlu0 %v5857_v31, %s5035_s21 }
 0xa6c   : > { %4818 = vrot.lane.b32.xlu1 %v5842_v63, %s5035_s21 }
 0xa6d   : > { %4828 = vrot.lane.b32.xlu0 %v5756_v2, %s5038_s24 }
 0xa70   : > { %4833 = vrot.lane.b32.xlu1 %v5857_v31, %s5038_s24 }
 0xa71   : > { %4838 = vrot.lane.b32.xlu0 %v5842_v63, %s5038_s24 }
 0xa74   : > { %2555 = vperm.xlu1 %4511, %v2552_v44  }
 0xabe   : > { %v4744_v49 = vpop.permute.xlu1 %4743  ;;  %v4749_v35 = vpop.permute.xlu0 %4748 }
 0xabf   : > { %v4745_v52 = vunpack.i.l.bf16 %v4744_v49  ;;  %v4746_v58 = vunpack.i.h.bf16 %v4744_v49  ;;  %v4750_v23 = vunpack.i.l.bf16 %v4749_v35  ;;  %v4751_v5 = vunpack.i.h.bf16 %v4749_v35 }
 0xac0   : > { %v4740_v49 = vunpack.i.l.bf16 %v5909_v48 }
 0xac1   : > { %v2386_v40 = vsel %vm739_vm5, %v4745_v52, %v4725_v51  ;;  %v2408_v29 = vsel %vm751_vm7, %v4750_v23, %v4730_v24 }
 0xac2   : > { %v4754_v53 = vpop.permute.xlu1 %4753 }
 0xac3   : > { %v4759_v13 = vpop.permute.xlu0 %4758  ;;  %v4756_v37 = vunpack.i.h.bf16 %v4754_v53  ;;  %v4755_v38 = vunpack.i.l.bf16 %v4754_v53 }
 0xac4   : > { %v4761_v59 = vunpack.i.h.bf16 %v4759_v13  ;;  %v4760_v61 = vunpack.i.l.bf16 %v4759_v13 }
 0xac5   : > { %v2430_v53 = vsel %vm763_vm6, %v4755_v38, %v4735_v18 }
 0xac6   : > { %v4197_v1 = vpack.c.bf16 %v4761_v59, %v4726_v50  ;;  %v2388_v15 = vsel %vm739_vm5, %v4746_v58, %v4760_v61  ;;  %v5914_v3 = vpop.permute.xlu1 %4768  ;;  %v2389_v16 = vsel %vm739_vm5, %v4760_v61, %v4761_v59 }
 0xac7   : > { %v4163_v11 = vpack.c.bf16 %v2388_v15, %v2386_v40  ;;  %v4764_v20 = vpop.permute.xlu0 %4763  ;;  %v4161_v21 = vpack.c.bf16 %v2389_v16, %v2387_v0  ;;  %v4771_v13 = vunpack.i.h.bf16 %v5914_v3  ;;  %v4770_v58 = vunpack.i.l.bf16 %v5914_v3 }
 0xac8   : > { %4198 = vmatpush1.bf16.msra.mxu1 %v4197_v1  ;;  %v4765_v51 = vunpack.i.l.bf16 %v4764_v20  ;;  %v4766_v61 = vunpack.i.h.bf16 %v4764_v20 }
 0xac9   : > { %4162 = vmatprep.subr.bf16.mxu0 %v4161_v21  ;;  %4199 = vmatprep.subr.bf16.mxu1 %v5030_v10 }
 0xaca   : > { %v4774_v26 = vpop.permute.xlu1 %4773  ;;  %4164 = vmatpush1.bf16.msra.mxu0 %v4163_v11  ;;  %v2453_v11 = vsel %vm6398_vm9, %v4740_v49, %v4741_v46  ;;  %v2452_v21 = vsel %vm6399_vm4, %v4765_v51, %v4740_v49  ;;  %vm6405_vm9 = vmmov %vm6402_vm12  ;;  %vm6406_vm4 = vcmask 752640  }
 0xacb   : > { %v4776_v7 = vunpack.i.h.bf16 %v4774_v26  ;;  %v4775_v12 = vunpack.i.l.bf16 %v4774_v26  ;;  %v4784_v6 = vpop.permute.xlu0 %4783 }
 0xacc   : > { %v4786_v57 = vunpack.i.h.bf16 %v4784_v6  ;;  %v4785_v28 = vunpack.i.l.bf16 %v4784_v6 }
 0xacd   : > { %v2410_v33 = vsel %vm751_vm7, %v4751_v5, %v4775_v12  ;;  %v4200_v17 = vpack.c.bf16 %v4776_v7, %v4731_v22  ;;  %v2411_v34 = vsel %vm751_vm7, %v4775_v12, %v4776_v7  ;;  %v2475_v7 = vsel %vm6402_vm12, %v4770_v58, %v4771_v13  ;;  %vm6409_vm12 = vmmov %vm6406_vm4 }
 0xace   : > { %v4167_v41 = vpack.c.bf16 %v2410_v33, %v2408_v29  ;;  %v4779_v42 = vpop.permute.xlu1 %4778  ;;  %v4165_v9 = vpack.c.bf16 %v2411_v34, %v2409_v56  ;;  %v2433_v45 = vsel %vm763_vm6, %v4785_v28, %v4786_v57  ;;  %v2432_v35 = vsel %vm763_vm6, %v4756_v37, %v4785_v28 }
 0xacf   : > { %v5922_v44 = vpop.permute.xlu0 %4788  ;;  %4201 = vmatpush1.bf16.msra.mxu1 %v4200_v17  ;;  %v4169_v50 = vpack.c.bf16 %v2433_v45, %v2431_v27  ;;  %v4203_v52 = vpack.c.bf16 %v4786_v57, %v4736_v25  ;;  %v4171_v0 = vpack.c.bf16 %v2432_v35, %v2430_v53  ;;  %v4781_v20 = vunpack.i.h.bf16 %v4779_v42 }
 0xad0   : > { %4166 = vmatprep.subr.bf16.mxu0 %v4165_v9  ;;  %4202 = vmatprep.subr.bf16.mxu1 %v5030_v10  ;;  %v4780_v23 = vunpack.i.l.bf16 %v4779_v42  ;;  %v4791_v6 = vunpack.i.h.bf16 %v5922_v44  ;;  %v4790_v57 = vunpack.i.l.bf16 %v5922_v44 }
 0xad1   : > { %4168 = vmatpush1.bf16.msra.mxu0 %v4167_v41 }
 0xad2   : > { %v4794_v59 = vpop.permute.xlu1 %4793  ;;  %4170 = vmatprep.subr.bf16.mxu0 %v4169_v50  ;;  %v2474_v17 = vsel %vm6405_vm9, %v4780_v23, %v4770_v58  ;;  %v2497_v49 = vsel %vm6406_vm4, %v4790_v57, %v4791_v6 }
 0xad3   : > { %v4796_v48 = vunpack.i.h.bf16 %v4794_v59  ;;  %v4795_v40 = vunpack.i.l.bf16 %v4794_v59  ;;  %v4799_v1 = vpop.permute.xlu0 %4798  ;;  %4204 = vmatpush1.bf16.msra.mxu1 %v4203_v52 }
 0xad4   : > { %v4801_v15 = vunpack.i.h.bf16 %v4799_v1  ;;  %v4800_v16 = vunpack.i.l.bf16 %v4799_v1  ;;  %4205 = vmatprep.subr.bf16.mxu1 %v5030_v10 }
 0xad5   : > { %v2454_v22 = vsel %vm6400_vm10, %v4766_v61, %v4795_v40  ;;  %v4206_v24 = vpack.c.bf16 %v4796_v48, %v4741_v46  ;;  %4172 = vmatpush1.bf16.msra.mxu0 %v4171_v0  ;;  %v2455_v3 = vsel %vm6401_vm8, %v4795_v40, %v4796_v48  ;;  %vm6407_vm10 = vmmov %vm6406_vm4 }
 0xad6   : > { %v4175_v25 = vpack.c.bf16 %v2454_v22, %v2452_v21  ;;  %v4809_v26 = vpop.permute.xlu1 %4808  ;;  %v4173_v18 = vpack.c.bf16 %v2455_v3, %v2453_v11  ;;  %v2477_v12 = vsel %vm6403_vm13, %v4800_v16, %v4801_v15  ;;  %v2476_v28 = vsel %vm6404_vm14, %v4781_v20, %v4800_v16  ;;  %vm6408_vm8 = vmmov %vm6406_vm4 }
 0xad7   : > { %v4804_v5 = vpop.permute.xlu0 %4803  ;;  %4207 = vmatpush1.bf16.msra.mxu1 %v4206_v24  ;;  %v4177_v56 = vpack.c.bf16 %v2477_v12, %v2475_v7  ;;  %v4209_v29 = vpack.c.bf16 %v4801_v15, %v4771_v13  ;;  %v4811_v34 = vunpack.i.h.bf16 %v4809_v26  ;;  %v4810_v37 = vunpack.i.l.bf16 %v4809_v26 }
 0xad8   : > { %4174 = vmatprep.subr.bf16.mxu0 %v4173_v18  ;;  %4208 = vmatprep.subr.bf16.mxu1 %v5030_v10  ;;  %v4805_v33 = vunpack.i.l.bf16 %v4804_v5  ;;  %v4179_v41 = vpack.c.bf16 %v2476_v28, %v2474_v17  ;;  %v4806_v42 = vunpack.i.h.bf16 %v4804_v5  ;;  %vm6410_vm13 = vcmask 744448  }
 0xad9   : > { %4176 = vmatpush1.bf16.msra.mxu0 %v4175_v25  ;;  %v2519_v59 = vsel %vm6410_vm13, %v4810_v37, %v4811_v34  ;;  %vm6411_vm14 = vmmov %vm6410_vm13 }
 0xada   : > { %v4814_v38 = vpop.permute.xlu1 %4813  ;;  %4178 = vmatprep.subr.bf16.mxu0 %v4177_v56  ;;  %v2496_v35 = vsel %vm6407_vm10, %v4805_v33, %v4790_v57  ;;  %vm6412_vm9 = vmmov %vm6410_vm13  ;;  %vm6414_vm10 = vcmask 736256  }
 0xadb   : > { %v4816_v9 = vunpack.i.h.bf16 %v4814_v38  ;;  %v4815_v27 = vunpack.i.l.bf16 %v4814_v38  ;;  %v4824_v44 = vpop.permute.xlu0 %4823  ;;  %4210 = vmatpush1.bf16.msra.mxu1 %v4209_v29  ;;  %vm6413_vm4 = vmmov %vm6412_vm9  ;;  %v2550_v29 = vld [vmem:[%s6290_s11] sm:$0xff] }
 0xadc   : > { %v4826_v45 = vunpack.i.h.bf16 %v4824_v44  ;;  %v4825_v46 = vunpack.i.l.bf16 %v4824_v44  ;;  %4211 = vmatprep.subr.bf16.mxu1 %v5030_v10 }
 0xadd   : > { %v2498_v50 = vsel %vm6408_vm8, %v4806_v42, %v4815_v27  ;;  %v4212_v51 = vpack.c.bf16 %v4816_v9, %v4791_v6  ;;  %4180 = vmatpush1.bf16.msra.mxu0 %v4179_v41  ;;  %v2499_v52 = vsel %vm6409_vm12, %v4815_v27, %v4816_v9  ;;  %vm6415_vm8 = vmmov %vm6414_vm10 }
 0xade   : > { %v4183_v53 = vpack.c.bf16 %v2498_v50, %v2496_v35  ;;  %v4819_v13 = vpop.permute.xlu1 %4818  ;;  %v4181_v58 = vpack.c.bf16 %v2499_v52, %v2497_v49  ;;  %v2521_v61 = vsel %vm6411_vm14, %v4825_v46, %v4826_v45  ;;  %v4215_v15 = vpack.c.bf16 %v4826_v45, %v4811_v34  ;;  %vm6416_vm12 = vmmov %vm6415_vm8 }
 0xadf   : > { %v4821_v0 = vunpack.i.h.bf16 %v4819_v13  ;;  %v4820_v48 = vunpack.i.l.bf16 %v4819_v13  ;;  %v4829_v40 = vpop.permute.xlu0 %4828  ;;  %4213 = vmatpush1.bf16.msra.mxu1 %v4212_v51  ;;  %v4185_v1 = vpack.c.bf16 %v2521_v61, %v2519_v59  ;;  %vm6417_vm13 = vmmov %vm6415_vm8  ;;  %v4847_v50 = vpack.i.bf16 %v5828_v32, %v5738_v62 }
 0xae0   : > { %4182 = vmatprep.subr.bf16.mxu0 %v4181_v58  ;;  %4214 = vmatprep.subr.bf16.mxu1 %v5030_v10  ;;  %v4831_v21 = vunpack.i.h.bf16 %v4829_v40  ;;  %v4830_v22 = vunpack.i.l.bf16 %v4829_v40 }
 0xae1   : > { %v2518_v16 = vsel %vm6412_vm9, %v4820_v48, %v4810_v37  ;;  %v2520_v11 = vsel %vm6413_vm4, %v4821_v0, %v4825_v46  ;;  %4184 = vmatpush1.bf16.msra.mxu0 %v4183_v53 }
 0xae2   : > { %v4187_v24 = vpack.c.bf16 %v2520_v11, %v2518_v16  ;;  %v4834_v3 = vpop.permute.xlu1 %4833  ;;  %4186 = vmatprep.subr.bf16.mxu0 %v4185_v1  ;;  %v2541_v7 = vsel %vm6414_vm10, %v4830_v22, %v4831_v21 }
 0xae3   : > { %v4836_v20 = vunpack.i.h.bf16 %v4834_v3  ;;  %v4835_v23 = vunpack.i.l.bf16 %v4834_v3  ;;  %v4839_v25 = vpop.permute.xlu0 %4838  ;;  %4216 = vmatpush1.bf16.msra.mxu1 %v4215_v15 }
 0xae4   : > { %v4841_v26 = vunpack.i.h.bf16 %v4839_v25  ;;  %v4840_v18 = vunpack.i.l.bf16 %v4839_v25  ;;  %4217 = vmatprep.subr.bf16.mxu1 %v5030_v10 }
 0xae5   : > { %v4218_v5 = vpack.c.bf16 %v4836_v20, %v4831_v21  ;;  %4188 = vmatpush1.bf16.msra.mxu0 %v4187_v24  ;;  %v2543_v12 = vsel %vm6415_vm8, %v4835_v23, %v4836_v20 }
 0xae6   : > { %v2542_v6 = vsel %vm6416_vm12, %v4841_v26, %v4835_v23  ;;  %v2540_v57 = vsel %vm6417_vm13, %v4840_v18, %v4830_v22  ;;  %v4189_v28 = vpack.c.bf16 %v2543_v12, %v2541_v7 }
 0xae7   : > { %v4191_v56 = vpack.c.bf16 %v2542_v6, %v2540_v57  ;;  %4219 = vmatpush1.bf16.msra.mxu1 %v4218_v5 }
 0xae8   : > { %4190 = vmatprep.subr.bf16.mxu0 %v4189_v28  ;;  %4272 = vmatprep.subr.bf16.mxu1 %v5030_v10 }
 0xae9   : > { %4192 = vmatpush1.bf16.msra.mxu0 %v4191_v56 }
 0xaea   : > { %2697 = vmatmul.mubr.f32.vlgmr.msra.gmra.mrb[10].mxu1 %v2550_v29  ;;  %4221 = vmatprep.subr.bf16.mxu0 %v5833_v39 }
 0xaeb   : > { %4274 = vmatpush1.bf16.msra.mxu1 %v5861_v30 }
 0xaec   : > { %2626 = vmatmul.mubr.f32.vlgmr.msra.gmra.mrb[10].mxu0 %v2550_v29  ;;  %4275 = vmatprep.subr.bf16.mxu1 %v5030_v10 }
 0xaed   : > { %4223 = vmatpush1.bf16.msra.mxu0 %v5846_v43 }
 0xaf3   : > { %v2556_v33 = vpop.permute.xlu1 %2555 }
 0xbbd   : > { %v2698_v17 = vpop.f32.mrb[10].mxu1 }
 0xbbe   : > { %v2699_v34 = vadd.f32 %v2698_v17, %v2556_v33  ;;  %v2700_v37 = vpop.f32.mrb[11].mxu1 }
 0xbbf   : > { %v2627_v38 = vpop.f32.mrb[10].mxu0 }
 0xbc0   : > { %v2628_v41 = vadd.f32 %v2627_v38, %v2556_v33  ;;  %v2629_v42 = vpop.f32.mrb[11].mxu0  ;;  %v2707_v27 = vmul.f32 0.1, %v2699_v34  ;;  %vm2704_vm9 = vcmp.ge.f32.partialorder %v2699_v34, 0.0 }
 0xbc1   : > { %v2630_v9 = vadd.f32 %v2629_v42, %v2556_v33 }
 0xbc2   : > { %vm2702_vm14 = vcmp.ge.f32.partialorder %v2628_v41, 0.0  ;;  %v2705_v44 = vmul.f32 0.1, %v2628_v41  ;;  %v2710_v49 = vsel %vm2704_vm9, %v2699_v34, %v2707_v27  ;;  %vm6428_vm9 = vcmask 752640  }
 0xbc3   : > { %vm2703_vm4 = vcmp.ge.f32.partialorder %v2630_v9, 0.0  ;;  %v2706_v39 = vmul.f32 0.1, %v2630_v9  ;;  %v2713_v35 = vmul.f32 %v5276_v47, %v2710_v49 }
 0xbc4   : > { %v2708_v30 = vsel %vm2702_vm14, %v2628_v41, %v2705_v44 }
 0xbc5   : > { %v2711_v45 = vmul.f32 %v5281_v55, %v2708_v30  ;;  %v2709_v46 = vsel %vm2703_vm4, %v2630_v9, %v2706_v39 }
 0xbc6   : > { %v2712_v43 = vmul.f32 %v5287_v60, %v2709_v46 }
 0xbc7   : > { %2717 = vrot.lane.b32.xlu0 %v2711_v45, %s5027_s26 }
 0xbc8   : > { %2719 = vrot.lane.b32.xlu1 %v2712_v43, %s5027_s26 }
 0xbcb   : > { %2721 = vrot.lane.b32.xlu0 %v2713_v35, %s5027_s26 }
 0xbcc   : > { %4843 = vrot.lane.b32.xlu1 %v5756_v2, %s5029_s28 }
 0xbcf   : > { %4848 = vrot.lane.b32.xlu0 %v4847_v50, %s5029_s28 }
 0xbd0   : > { %4858 = vrot.lane.b32.xlu1 %v5857_v31, %s5028_s27 }
 0xbd3   : > { %4853 = vrot.lane.b32.xlu0 %v5756_v2, %s5028_s27 }
 0xbd4   : > { %4883 = vrot.lane.b32.xlu1 %v5857_v31, %s5031_s4 }
 0xbd7   : > { %4863 = vrot.lane.b32.xlu0 %v5842_v63, %s5028_s27 }
 0xbdb   : > { %4868 = vrot.lane.b32.xlu0 %v5756_v2, %s5032_s29 }
 0xbdf   : > { %4873 = vrot.lane.b32.xlu0 %v4847_v50, %s5032_s29 }
 0xbe3   : > { %4878 = vrot.lane.b32.xlu0 %v5756_v2, %s5031_s4 }
 0xbe7   : > { %4888 = vrot.lane.b32.xlu0 %v5842_v63, %s5031_s4 }
 0xc39   : > { %v2718_v62 = vpop.permute.xlu0 %2717 }
 0xc3a   : > { %2728 = vst.msk [vmem:[#allocation2 + $0x30] sm:$0xff] %vm722_vm1, %v2718_v62  ;;  %v2720_v32 = vpop.permute.xlu1 %2719 }
 0xc3b   : > { %v5996_v51 = vsel %vm716_vm2, %v2718_v62, %v2720_v32 }
 0xc3c   : > { %v4892_v24 = vpack.i.bf16 %v5996_v51, %v5853_v8  ;;  %v3014_v8 = vld [vmem:[%s6292_s13 + $0x8] sm:$0xff] }
 0xc3d   : > { %v2722_v52 = vpop.permute.xlu0 %2721  ;;  %3816 = vmatprep.mubr.msk.f32.mxu1 %vm1670_vm15, %v3014_v8  ;;  %3815 = vmatprep.mubr.msk.f32.mxu0 %vm1670_vm15, %v3014_v8 }
 0xc3e   : > { %v2724_v53 = vsel %vm716_vm2, %v2720_v32, %v2722_v52  ;;  %v4844_v13 = vpop.permute.xlu1 %4843 }
 0xc3f   : > { %2730 = vst.msk [vmem:[#allocation2 + $0x40] sm:$0xff] %vm725_vm3, %v2724_v53  ;;  %v4846_v58 = vunpack.i.h.bf16 %v4844_v13  ;;  %v4845_v59 = vunpack.i.l.bf16 %v4844_v13 }
 0xc41   : > { %v6000_v61 = vld [vmem:[#allocation2 + $0x30] sm:$0xff]  ;;  %v6002_v0 = vpop.permute.xlu0 %4848  ;;  %v2768_v48 = vsel %vm739_vm5, %v4845_v59, %v4846_v58 }
 0xc42   : > { %v4850_v40 = vunpack.i.l.bf16 %v6002_v0  ;;  %2761 = vrot.lane.b32.xlu1 %v6000_v61, %s5029_s28  ;;  %v4224_v1 = vpack.c.bf16 %v2768_v48, %v5996_v51  ;;  %v4859_v23 = vpop.permute.xlu1 %4858  ;;  %v4851_v33 = vunpack.i.h.bf16 %v6002_v0 }
 0xc43   : > { %v4861_v17 = vunpack.i.h.bf16 %v4859_v23  ;;  %v4860_v37 = vunpack.i.l.bf16 %v4859_v23 }
 0xc44   : > { %v2767_v15 = vsel %vm739_vm5, %v4850_v40, %v4845_v59  ;;  %4225 = vmatprep.subr.bf16.mxu0 %v4224_v1 }
 0xc45   : > { %v4226_v16 = vpack.c.bf16 %v2767_v15, %v6000_v61  ;;  %v2803_v32 = vsel %vm751_vm7, %v4860_v37, %v4861_v17 }
 0xc46   : > { %v6011_v11 = vld [vmem:[#allocation2 + $0x40] sm:$0xff]  ;;  %2794 = vrot.lane.b32.xlu1 %v6000_v61, %s5028_s27  ;;  %v6080_v26 = vpop.permute.xlu1 %4883 }
 0xc47   : > { %v4276_v21 = vpack.c.bf16 %v4846_v58, %v6011_v11  ;;  %4227 = vmatpush1.bf16.msra.mxu0 %v4226_v16  ;;  %v4897_v22 = vpack.i.bf16 %v5838_v14, %v6011_v11  ;;  %v4912_v14 = vpack.i.bf16 %v6011_v11, %v5996_v51 }
 0xc49   : > { %4898 = vrot.lane.b32.xlu0 %v4897_v22, %s5029_s28  ;;  %4277 = vmatpush1.bf16.msra.mxu1 %v4276_v21 }
 0xc4a   : > { %2827 = vrot.lane.b32.xlu1 %v6000_v61, %s5032_s29  ;;  %4278 = vmatprep.subr.bf16.mxu1 %v5030_v10 }
 0xc4d   : > { %4903 = vrot.lane.b32.xlu0 %v5756_v2, %s6385_s23 }
 0xc4e   : > { %4893 = vrot.lane.b32.xlu1 %v4892_v24, %s5029_s28 }
 0xc51   : > { %4908 = vrot.lane.b32.xlu0 %v4847_v50, %s6385_s23 }
 0xc52   : > { %2860 = vrot.lane.b32.xlu1 %v6000_v61, %s5031_s4 }
 0xc55   : > { %4923 = vrot.lane.b32.xlu0 %v4897_v22, %s5032_s29 }
 0xc56   : > { %2893 = vrot.lane.b32.xlu1 %v6000_v61, %s6385_s23 }
 0xc59   : > { %4928 = vrot.lane.b32.xlu0 %v5756_v2, %s6418_s25 }
 0xc5a   : > { %4913 = vrot.lane.b32.xlu1 %v4912_v14, %s5028_s27 }
 0xc5d   : > { %4938 = vrot.lane.b32.xlu0 %v5842_v63, %s6418_s25 }
 0xc5e   : > { %4918 = vrot.lane.b32.xlu1 %v4892_v24, %s5032_s29 }
 0xc61   : > { %4953 = vrot.lane.b32.xlu0 %v4897_v22, %s6385_s23 }
 0xc62   : > { %4933 = vrot.lane.b32.xlu1 %v5857_v31, %s6418_s25 }
 0xc65   : > { %4958 = vrot.lane.b32.xlu0 %v5756_v2, %s5035_s21 }
 0xc66   : > { %4943 = vrot.lane.b32.xlu1 %v4912_v14, %s5031_s4 }
 0xc69   : > { %4963 = vrot.lane.b32.xlu0 %v4847_v50, %s5035_s21 }
 0xc6a   : > { %4948 = vrot.lane.b32.xlu1 %v4892_v24, %s6385_s23 }
 0xc6d   : > { %4978 = vrot.lane.b32.xlu0 %v4897_v22, %s5035_s21  ;;  %v4886_v22 = vunpack.i.h.bf16 %v6080_v26 }
 0xc6e   : > { %2926 = vrot.lane.b32.xlu1 %v6000_v61, %s6418_s25 }
 0xc71   : > { %4983 = vrot.lane.b32.xlu0 %v5756_v2, %s5038_s24  ;;  %v3015_v2 = vld [vmem:[%s6293_s14] sm:$0xff] }
 0xc72   : > { %2959 = vrot.lane.b32.xlu1 %v6000_v61, %s5035_s21 }
 0xc75   : > { %4993 = vrot.lane.b32.xlu0 %v5842_v63, %s5038_s24  ;;  %v4854_v63 = vpop.permute.xlu0 %4853 }
 0xc76   : > { %4968 = vrot.lane.b32.xlu1 %v4912_v14, %s6418_s25  ;;  %v4856_v57 = vunpack.i.h.bf16 %v4854_v63  ;;  %v4855_v28 = vunpack.i.l.bf16 %v4854_v63 }
 0xc78   : > { %v2801_v39 = vsel %vm751_vm7, %v4855_v28, %v4856_v57  ;;  %v4282_v58 = vpack.c.bf16 %v4861_v17, %v4856_v57 }
 0xc79   : > { %2996 = vrot.lane.b32.xlu0 %v6011_v11, %s5038_s24  ;;  %v4864_v3 = vpop.permute.xlu0 %4863  ;;  %v4232_v13 = vpack.c.bf16 %v2803_v32, %v2801_v39 }
 0xc7a   : > { %4973 = vrot.lane.b32.xlu1 %v4892_v24, %s5035_s21  ;;  %v4866_v9 = vunpack.i.h.bf16 %v4864_v3  ;;  %v4865_v27 = vunpack.i.l.bf16 %v4864_v3 }
 0xc7c   : > { %v2802_v52 = vsel %vm751_vm7, %v4866_v9, %v4860_v37  ;;  %v2800_v53 = vsel %vm751_vm7, %v4865_v27, %v4855_v28  ;;  %v4885_v28 = vunpack.i.l.bf16 %v6080_v26 }
 0xc7d   : > { %3018 = vperm.xlu0 %4390, %v3015_v2   ;;  %v6076_v20 = vpop.permute.xlu0 %4868  ;;  %v4234_v48 = vpack.c.bf16 %v2802_v52, %v2800_v53 }
 0xc7e   : > { %4988 = vrot.lane.b32.xlu1 %v5857_v31, %s5038_s24  ;;  %v4871_v40 = vunpack.i.h.bf16 %v6076_v20  ;;  %v4870_v1 = vunpack.i.l.bf16 %v6076_v20 }
 0xc80   : > { %v2834_v3 = vsel %vm763_vm6, %v4870_v1, %v4871_v40 }
 0xc81   : > { %v6078_v25 = vpop.permute.xlu0 %4873 }
 0xc82   : > { %2994 = vrot.lane.b32.xlu1 %v5996_v51, %s5038_s24  ;;  %v4875_v15 = vunpack.i.l.bf16 %v6078_v25 }
 0xc84   : > { %v2833_v20 = vsel %vm763_vm6, %v4875_v15, %v4870_v1 }
 0xc85   : > { %v6082_v18 = vpop.permute.xlu0 %4878 }
 0xc86   : > { %2992 = vrot.lane.b32.xlu1 %v6000_v61, %s5038_s24  ;;  %v4881_v8 = vunpack.i.h.bf16 %v6082_v18  ;;  %v4880_v2 = vunpack.i.l.bf16 %v6082_v18 }
 0xc88   : > { %v4291_v52 = vpack.c.bf16 %v4886_v22, %v4881_v8 }
 0xc89   : > { %v6084_v7 = vpop.permute.xlu0 %4888 }
 0xcb4   : > { %v2762_v5 = vpop.permute.xlu1 %2761 }
 0xcb8   : > { %v2795_v31 = vpop.permute.xlu1 %2794 }
 0xcbb   : > { %v4899_v12 = vpop.permute.xlu0 %4898 }
 0xcbc   : > { %v6086_v6 = vpop.permute.xlu1 %2827  ;;  %v4901_v56 = vunpack.i.h.bf16 %v4899_v12  ;;  %v4900_v38 = vunpack.i.l.bf16 %v4899_v12 }
 0xcbe   : > { %v2769_v44 = vsel %vm739_vm5, %v4901_v56, %v4851_v33  ;;  %v4876_v56 = vunpack.i.h.bf16 %v6078_v25 }
 0xcbf   : > { %v6088_v29 = vpop.permute.xlu0 %4903 }
 0xcc0   : > { %v4894_v34 = vpop.permute.xlu1 %4893  ;;  %v4905_v32 = vunpack.i.l.bf16 %v6088_v29 }
 0xcc1   : > { %v4896_v41 = vunpack.i.h.bf16 %v4894_v34  ;;  %v4895_v42 = vunpack.i.l.bf16 %v4894_v34 }
 0xcc3   : > { %v2771_v30 = vsel %vm739_vm5, %v2762_v5, %v4896_v41  ;;  %v4279_v45 = vpack.c.bf16 %v4900_v38, %v4895_v42  ;;  %v6094_v46 = vpop.permute.xlu0 %4908  ;;  %v2770_v49 = vsel %vm739_vm5, %v4851_v33, %v4895_v42  ;;  %v2772_v43 = vsel %vm739_vm5, %v4896_v41, %v4900_v38 }
 0xcc4   : > { %v4230_v35 = vpack.c.bf16 %v2771_v30, %v2769_v44  ;;  %v6098_v50 = vpop.permute.xlu1 %2860  ;;  %v4228_v62 = vpack.c.bf16 %v2772_v43, %v2770_v49  ;;  %v4891_v41 = vunpack.i.h.bf16 %v6084_v7  ;;  %vm6419_vm5 = vcmask 891904  }
 0xcc5   : > { %4280 = vmatpush1.bf16.msra.mxu1 %v4279_v45  ;;  %v2867_v26 = vsel %vm6419_vm5, %v4880_v2, %v4881_v8  ;;  %vm6421_vm15 = vmmov %vm6419_vm5  ;;  %v4910_v53 = vunpack.i.l.bf16 %v6094_v46 }
 0xcc6   : > { %4229 = vmatprep.subr.bf16.mxu0 %v4228_v62  ;;  %4281 = vmatprep.subr.bf16.mxu1 %v5030_v10  ;;  %vm6422_vm10 = vmmov %vm6419_vm5 }
 0xcc7   : > { %v4924_v59 = vpop.permute.xlu0 %4923  ;;  %4231 = vmatpush1.bf16.msra.mxu0 %v4230_v35  ;;  %v2868_v35 = vsel %vm6421_vm15, %v4891_v41, %v4885_v28  ;;  %vm6425_vm12 = vmmov %vm6419_vm5 }
 0xcc8   : > { %v6104_v0 = vpop.permute.xlu1 %2893  ;;  %4233 = vmatprep.subr.bf16.mxu0 %v4232_v13  ;;  %v4926_v63 = vunpack.i.h.bf16 %v4924_v59  ;;  %v4925_v18 = vunpack.i.l.bf16 %v4924_v59  ;;  %vm6426_vm13 = vmmov %vm6419_vm5 }
 0xcc9   : > { %4283 = vmatpush1.bf16.msra.mxu1 %v4282_v58  ;;  %vm6432_vm15 = vmmov %vm6428_vm9 }
 0xcca   : > { %4284 = vmatprep.subr.bf16.mxu1 %v5030_v10  ;;  %v2835_v42 = vsel %vm763_vm6, %v4926_v63, %v4876_v56  ;;  %v4911_v63 = vunpack.i.h.bf16 %v6094_v46 }
 0xccb   : > { %v6110_v16 = vpop.permute.xlu0 %4928  ;;  %4235 = vmatpush1.bf16.msra.mxu0 %v4234_v48 }
 0xccc   : > { %v4914_v21 = vpop.permute.xlu1 %4913 }
 0xccd   : > { %v4916_v24 = vunpack.i.h.bf16 %v4914_v21  ;;  %v4915_v14 = vunpack.i.l.bf16 %v4914_v21 }
 0xccf   : > { %v2804_v23 = vsel %vm751_vm7, %v2795_v31, %v4915_v14  ;;  %v4285_v5 = vpack.c.bf16 %v4871_v40, %v4916_v24  ;;  %v6118_v12 = vpop.permute.xlu0 %4938  ;;  %v2805_v57 = vsel %vm751_vm7, %v4915_v14, %v4916_v24  ;;  %v4890_v31 = vunpack.i.l.bf16 %v6084_v7  ;;  %vm6420_vm7 = vmmov %vm6419_vm5 }
 0xcd0   : > { %v4238_v33 = vpack.c.bf16 %v2833_v20, %v2804_v23  ;;  %v4919_v17 = vpop.permute.xlu1 %4918  ;;  %v4236_v34 = vpack.c.bf16 %v2834_v3, %v2805_v57  ;;  %v2869_v49 = vsel %vm6420_vm7, %v4885_v28, %v4886_v22  ;;  %v4931_v3 = vunpack.i.h.bf16 %v6110_v16 }
 0xcd1   : > { %v4921_v37 = vunpack.i.h.bf16 %v4919_v17  ;;  %v4920_v38 = vunpack.i.l.bf16 %v4919_v17  ;;  %4286 = vmatpush1.bf16.msra.mxu1 %v4285_v5  ;;  %v4244_v43 = vpack.c.bf16 %v2869_v49, %v2867_v26  ;;  %v2866_v62 = vsel %vm6422_vm10, %v4890_v31, %v4880_v2  ;;  %vm6433_vm10 = vmmov %vm6428_vm9 }
 0xcd2   : > { %4237 = vmatprep.subr.bf16.mxu0 %v4236_v34  ;;  %4287 = vmatprep.subr.bf16.mxu1 %v5030_v10  ;;  %v4246_v59 = vpack.c.bf16 %v2868_v35, %v2866_v62  ;;  %v4930_v57 = vunpack.i.l.bf16 %v6110_v16  ;;  %v4940_v41 = vunpack.i.l.bf16 %v6118_v12 }
 0xcd3   : > { %v2837_v25 = vsel %vm763_vm6, %v6086_v6, %v4921_v37  ;;  %v4288_v9 = vpack.c.bf16 %v4925_v18, %v4920_v38  ;;  %v4954_v27 = vpop.permute.xlu0 %4953  ;;  %4239 = vmatpush1.bf16.msra.mxu0 %v4238_v33  ;;  %v2836_v44 = vsel %vm763_vm6, %v4876_v56, %v4920_v38  ;;  %v2838_v39 = vsel %vm763_vm6, %v4921_v37, %v4925_v18 }
 0xcd4   : > { %v4242_v30 = vpack.c.bf16 %v2837_v25, %v2835_v42  ;;  %v6132_v45 = vpop.permute.xlu1 %4933  ;;  %v4240_v7 = vpack.c.bf16 %v2838_v39, %v2836_v44  ;;  %v4906_v6 = vunpack.i.h.bf16 %v6088_v29  ;;  %v4956_v1 = vunpack.i.h.bf16 %v4954_v27 }
 0xcd5   : > { %4289 = vmatpush1.bf16.msra.mxu1 %v4288_v9  ;;  %v4936_v15 = vunpack.i.h.bf16 %v6132_v45  ;;  %v4935_v29 = vunpack.i.l.bf16 %v6132_v45  ;;  %vm6423_vm6 = vcmask 883712   ;;  %v4955_v28 = vunpack.i.l.bf16 %v4954_v27 }
 0xcd6   : > { %4241 = vmatprep.subr.bf16.mxu0 %v4240_v7  ;;  %4290 = vmatprep.subr.bf16.mxu1 %v5030_v10  ;;  %v2900_v21 = vsel %vm6423_vm6, %v4905_v32, %v4906_v6  ;;  %vm6424_vm8 = vmmov %vm6423_vm6  ;;  %v4941_v38 = vunpack.i.h.bf16 %v6118_v12  ;;  %v2933_v25 = vsel %vm6432_vm15, %v4930_v57, %v4931_v3  ;;  %vm6443_vm15 = vcmask 736256  }
 0xcd7   : > { %v6141_v13 = vpop.permute.xlu0 %4958  ;;  %4243 = vmatpush1.bf16.msra.mxu0 %v4242_v30  ;;  %v2899_v22 = vsel %vm6424_vm8, %v4910_v53, %v4905_v32  ;;  %vm6427_vm14 = vmmov %vm6423_vm6  ;;  %v2935_v17 = vsel %vm6428_vm9, %v4935_v29, %v4936_v15  ;;  %v4300_v27 = vpack.c.bf16 %v4936_v15, %v4931_v3  ;;  %vm6435_vm8 = vcmask 744448  }
 0xcd8   : > { %v4944_v58 = vpop.permute.xlu1 %4943  ;;  %4245 = vmatprep.subr.bf16.mxu0 %v4244_v43  ;;  %vm6429_vm4 = vmmov %vm6423_vm6  ;;  %v2934_v9 = vsel %vm6433_vm10, %v4941_v38, %v4935_v29  ;;  %v4961_v45 = vunpack.i.h.bf16 %v6141_v13  ;;  %v4960_v7 = vunpack.i.l.bf16 %v6141_v13 }
 0xcd9   : > { %v4946_v48 = vunpack.i.h.bf16 %v4944_v58  ;;  %v4945_v40 = vunpack.i.l.bf16 %v4944_v58  ;;  %4292 = vmatpush1.bf16.msra.mxu1 %v4291_v52  ;;  %vm6430_vm5 = vmmov %vm6429_vm4 }
 0xcda   : > { %4293 = vmatprep.subr.bf16.mxu1 %v5030_v10  ;;  %vm6431_vm7 = vmmov %vm6429_vm4  ;;  %v2966_v32 = vsel %vm6435_vm8, %v4960_v7, %v4961_v45 }
 0xcdb   : > { %v2870_v24 = vsel %vm6425_vm12, %v6098_v50, %v4945_v40  ;;  %v4294_v14 = vpack.c.bf16 %v4906_v6, %v4946_v48  ;;  %v6150_v8 = vpop.permute.xlu0 %4963  ;;  %4247 = vmatpush1.bf16.msra.mxu0 %v4246_v59  ;;  %v2871_v2 = vsel %vm6426_vm13, %v4945_v40, %v4946_v48  ;;  %v2901_v50 = vsel %vm6427_vm14, %v4956_v1, %v4911_v63  ;;  %vm6434_vm6 = vmmov %vm6428_vm9 }
 0xcdc   : > { %v4250_v20 = vpack.c.bf16 %v2899_v22, %v2870_v24  ;;  %v4949_v23 = vpop.permute.xlu1 %4948  ;;  %v4248_v5 = vpack.c.bf16 %v2900_v21, %v2871_v2  ;;  %v2932_v44 = vsel %vm6434_vm6, %v4940_v41, %v4930_v57  ;;  %v4965_v49 = vunpack.i.l.bf16 %v6150_v8  ;;  %vm6436_vm12 = vmmov %vm6435_vm8 }
 0xcdd   : > { %v4951_v56 = vunpack.i.h.bf16 %v4949_v23  ;;  %v4950_v33 = vunpack.i.l.bf16 %v4949_v23  ;;  %4295 = vmatpush1.bf16.msra.mxu1 %v4294_v14  ;;  %v4258_v30 = vpack.c.bf16 %v2934_v9, %v2932_v44  ;;  %vm6437_vm13 = vmmov %vm6434_vm6  ;;  %v4966_v13 = vunpack.i.h.bf16 %v6150_v8 }
 0xcde   : > { %4249 = vmatprep.subr.bf16.mxu0 %v4248_v5  ;;  %4296 = vmatprep.subr.bf16.mxu1 %v5030_v10  ;;  %v2965_v52 = vsel %vm6436_vm12, %v4965_v49, %v4960_v7  ;;  %vm6438_vm14 = vmmov %vm6434_vm6 }
 0xcdf   : > { %v2903_v46 = vsel %vm6429_vm4, %v6104_v0, %v4951_v56  ;;  %v4297_v34 = vpack.c.bf16 %v4955_v28, %v4950_v33  ;;  %v4979_v18 = vpop.permute.xlu0 %4978  ;;  %4251 = vmatpush1.bf16.msra.mxu0 %v4250_v20  ;;  %v2902_v37 = vsel %vm6430_vm5, %v4911_v63, %v4950_v33  ;;  %v2904_v16 = vsel %vm6431_vm7, %v4951_v56, %v4955_v28  ;;  %vm6439_vm9 = vmmov %vm6435_vm8 }
 0xce0   : > { %v4254_v31 = vpack.c.bf16 %v2903_v46, %v2901_v50  ;;  %v2927_v42 = vpop.permute.xlu1 %2926  ;;  %v4252_v26 = vpack.c.bf16 %v2904_v16, %v2902_v37  ;;  %v4256_v0 = vpack.c.bf16 %v2935_v17, %v2933_v25  ;;  %v4981_v6 = vunpack.i.h.bf16 %v4979_v18  ;;  %vm6440_vm4 = vmmov %vm6435_vm8 }
 0xce1   : > { %4298 = vmatpush1.bf16.msra.mxu1 %v4297_v34  ;;  %v4980_v29 = vunpack.i.l.bf16 %v4979_v18  ;;  %vm6441_vm5 = vmmov %vm6440_vm4 }
 0xce2   : > { %4253 = vmatprep.subr.bf16.mxu0 %v4252_v26  ;;  %4299 = vmatprep.subr.bf16.mxu1 %v5030_v10  ;;  %v2967_v24 = vsel %vm6439_vm9, %v4981_v6, %v4966_v13  ;;  %vm6442_vm7 = vmmov %vm6440_vm4  ;;  %v3013_v26 = vld [vmem:[%s6292_s13] sm:$0xff] }
 0xce3   : > { %4255 = vmatpush1.bf16.msra.mxu0 %v4254_v31  ;;  %v4984_v12 = vpop.permute.xlu0 %4983  ;;  %vm6444_vm10 = vmmov %vm6443_vm15 }
 0xce4   : > { %v2960_v39 = vpop.permute.xlu1 %2959  ;;  %4257 = vmatprep.subr.bf16.mxu0 %v4256_v0  ;;  %v4986_v14 = vunpack.i.h.bf16 %v4984_v12  ;;  %v4985_v2 = vunpack.i.l.bf16 %v4984_v12  ;;  %vm6445_vm6 = vmmov %vm6444_vm10 }
 0xce5   : > { %4301 = vmatpush1.bf16.msra.mxu1 %v4300_v27  ;;  %vm6446_vm8 = vmmov %vm6445_vm6 }
 0xce6   : > { %4302 = vmatprep.subr.bf16.mxu1 %v5030_v10  ;;  %v2999_v17 = vsel %vm6443_vm15, %v4985_v2, %v4986_v14  ;;  %vm6447_vm12 = vmmov %vm6445_vm6 }
 0xce7   : > { %4259 = vmatpush1.bf16.msra.mxu0 %v4258_v30  ;;  %v4994_v53 = vpop.permute.xlu0 %4993 }
 0xce8   : > { %v4969_v43 = vpop.permute.xlu1 %4968  ;;  %v4995_v63 = vunpack.i.l.bf16 %v4994_v53  ;;  %v4996_v56 = vunpack.i.h.bf16 %v4994_v53 }
 0xce9   : > { %v4971_v35 = vunpack.i.h.bf16 %v4969_v43  ;;  %v4970_v62 = vunpack.i.l.bf16 %v4969_v43 }
 0xcea   : > { %v2998_v46 = vsel %vm6444_vm10, %v4995_v63, %v4985_v2 }
 0xceb   : > { %v2936_v58 = vsel %vm6437_vm13, %v2927_v42, %v4970_v62  ;;  %v4303_v59 = vpack.c.bf16 %v4961_v45, %v4971_v35  ;;  %v2937_v48 = vsel %vm6438_vm14, %v4970_v62, %v4971_v35  ;;  %v2997_v31 = vpop.permute.xlu0 %2996  ;;  %vm6448_vm13 = vmmov %vm6445_vm6 }
 0xcec   : > { %v4262_v40 = vpack.c.bf16 %v2965_v52, %v2936_v58  ;;  %v4974_v1 = vpop.permute.xlu1 %4973  ;;  %v4260_v15 = vpack.c.bf16 %v2966_v32, %v2937_v48  ;;  %v3199_v48 = vld [vmem:[#allocation2 + $0x28] sm:$0xff] }
 0xced   : > { %v4976_v21 = vunpack.i.h.bf16 %v4974_v1  ;;  %v4975_v22 = vunpack.i.l.bf16 %v4974_v1  ;;  %4304 = vmatpush1.bf16.msra.mxu1 %v4303_v59  ;;  %v3195_v59 = vld [vmem:[#allocation2 + $0x8] sm:$0xff] }
 0xcee   : > { %4261 = vmatprep.subr.bf16.mxu0 %v4260_v15  ;;  %4305 = vmatprep.subr.bf16.mxu1 %v5030_v10  ;;  %v3197_v15 = vld [vmem:[#allocation2 + $0x18] sm:$0xff] }
 0xcef   : > { %v2969_v3 = vsel %vm6440_vm4, %v2960_v39, %v4976_v21  ;;  %v4306_v20 = vpack.c.bf16 %v4980_v29, %v4975_v22  ;;  %4263 = vmatpush1.bf16.msra.mxu0 %v4262_v40  ;;  %v2968_v8 = vsel %vm6441_vm5, %v4966_v13, %v4975_v22  ;;  %v2970_v23 = vsel %vm6442_vm7, %v4976_v21, %v4980_v29  ;;  %v3198_v13 = vld [vmem:[#allocation2 + $0x20] sm:$0xff]  ;;  %v3196_v40 = vld [vmem:[#allocation2 + $0x10] sm:$0xff] }
 0xcf0   : > { %v4266_v5 = vpack.c.bf16 %v2969_v3, %v2967_v24  ;;  %v4989_v57 = vpop.permute.xlu1 %4988  ;;  %v4264_v28 = vpack.c.bf16 %v2970_v23, %v2968_v8  ;;  %v4997_v1 = vpack.i.bf16 %v3199_v48, %v3198_v13  ;;  %v3194_v29 = vld [vmem:[#allocation2] sm:$0xff]  ;;  %v5002_v21 = vpack.i.bf16 %v5996_v51, %v3197_v15 }
 0xcf1   : > { %v4991_v33 = vunpack.i.h.bf16 %v4989_v57  ;;  %v4990_v50 = vunpack.i.l.bf16 %v4989_v57  ;;  %4307 = vmatpush1.bf16.msra.mxu1 %v4306_v20  ;;  %vm6449_vm5 = vcmask 891904  }
 0xcf2   : > { %4265 = vmatprep.subr.bf16.mxu0 %v4264_v28  ;;  %4308 = vmatprep.subr.bf16.mxu1 %v5030_v10  ;;  %v3726_v28 = vld [vmem:[%s6298_s19] sm:$0xff]  ;;  %vm6450_vm7 = vmmov %vm6449_vm5 }
 0xcf3   : > { %v3000_v34 = vsel %vm6445_vm6, %v4996_v56, %v4990_v50  ;;  %v4309_v18 = vpack.c.bf16 %v4991_v33, %v4986_v14  ;;  %4267 = vmatpush1.bf16.msra.mxu0 %v4266_v5  ;;  %v3001_v37 = vsel %vm6446_vm8, %v4990_v50, %v4991_v33  ;;  %vm6451_vm15 = vmmov %vm6449_vm5 }
 0xcf4   : > { %v4270_v16 = vpack.c.bf16 %v3000_v34, %v2998_v46  ;;  %v2995_v38 = vpop.permute.xlu1 %2994  ;;  %v4268_v41 = vpack.c.bf16 %v3001_v37, %v2999_v17  ;;  %vm6452_vm10 = vmmov %vm6449_vm5 }
 0xcf5   : > { %4310 = vmatpush1.bf16.msra.mxu1 %v4309_v18  ;;  %v3003_v42 = vsel %vm6447_vm12, %v2995_v38, %v2997_v31  ;;  %vm6453_vm6 = vmmov %vm6449_vm5 }
 0xcf6   : > { %4269 = vmatprep.subr.bf16.mxu0 %v4268_v41  ;;  %3147 = vmatprep.subr.mxu1 %v5662_v19  ;;  %vm6454_vm8 = vmmov %vm6449_vm5 }
 0xcf7   : > { %4271 = vmatpush1.bf16.msra.mxu0 %v4270_v16  ;;  %vm6455_vm12 = vmmov %vm6449_vm5 }
 0xcf8   : > { %v2993_v25 = vpop.permute.xlu1 %2992  ;;  %3076 = vmatprep.subr.mxu0 %v3003_v42 }
 0xcf9   : > { %v3002_v9 = vsel %vm6448_vm13, %v2993_v25, %v2995_v38  ;;  %3148 = vmatpush1.msra.mxu1 %v2997_v31  ;;  %v3207_v31 = vld [vmem:[%s6295_s16] sm:$0xff]  ;;  %vm6456_vm13 = vmmov %vm6449_vm5 }
 0xcfa   : > { %3160 = vmatmul.mubr.f32.vlgmr.msra.gmra.mrb[12].mxu1 %v3013_v26  ;;  %4319 = vmatprep.subr.bf16.mxu1 %v5030_v10 }
 0xcfb   : > { %3077 = vmatpush1.msra.mxu0 %v3002_v9  ;;  %3920 = vmatprep.mubr.msk.f32.mxu1 %vm6376_vm0, %v5662_v19 }
 0xcfc   : > { %3089 = vmatmul.mubr.f32.vlgmr.msra.gmra.mrb[12].mxu0 %v3013_v26  ;;  %v3019_v0 = vpop.permute.xlu0 %3018 }
 0xcfd   : > { %3336 = vmatprep.mubr.f32.mxu0 %v5662_v19 }
 0xdcd   : > { %v3161_v27 = vpop.f32.mrb[12].mxu1 }
 0xdce   : > { %v3162_v44 = vadd.f32 %v3161_v27, %v3019_v0  ;;  %v3163_v39 = vpop.f32.mrb[13].mxu1 }
 0xdcf   : > { %v3090_v30 = vpop.f32.mrb[12].mxu0 }
 0xdd0   : > { %v3091_v12 = vadd.f32 %v3090_v30, %v3019_v0  ;;  %v3092_v45 = vpop.f32.mrb[13].mxu0  ;;  %v3170_v49 = vmul.f32 0.1, %v3162_v44  ;;  %vm3167_vm9 = vcmp.ge.f32.partialorder %v3162_v44, 0.0 }
 0xdd1   : > { %v3093_v7 = vadd.f32 %v3092_v45, %v3019_v0 }
 0xdd2   : > { %vm3165_vm14 = vcmp.ge.f32.partialorder %v3091_v12, 0.0  ;;  %v3168_v43 = vmul.f32 0.1, %v3091_v12  ;;  %v3173_v52 = vsel %vm3167_vm9, %v3162_v44, %v3170_v49 }
 0xdd3   : > { %vm3166_vm4 = vcmp.ge.f32.partialorder %v3093_v7, 0.0  ;;  %v3169_v35 = vmul.f32 0.1, %v3093_v7  ;;  %v3176_v58 = vmul.f32 %v5276_v47, %v3173_v52 }
 0xdd4   : > { %v3171_v62 = vsel %vm3165_vm14, %v3091_v12, %v3168_v43  ;;  %v3206_v43 = vld [vmem:[%s6294_s15] sm:$0xff]  ;;  %vm3437_vm14 = vcmask 64512  }
 0xdd5   : > { %v3174_v6 = vmul.f32 %v5281_v55, %v3171_v62  ;;  %v3172_v32 = vsel %vm3166_vm4, %v3093_v7, %v3169_v35 }
 0xdd6   : > { %v3175_v53 = vmul.f32 %v5287_v60, %v3172_v32 }
 0xdd7   : > { %3180 = vrot.lane.b32.xlu1 %v3174_v6, %s5027_s26 }
 0xdd8   : > { %3182 = vrot.lane.b32.xlu0 %v3175_v53, %s5027_s26 }
 0xddb   : > { %3184 = vrot.lane.b32.xlu1 %v3176_v58, %s5027_s26 }
 0xddc   : > { %3227 = vrot.lane.b32.xlu0 %v3195_v59, %s5031_s4 }
 0xddf   : > { %3229 = vrot.lane.b32.xlu1 %v3196_v40, %s5031_s4 }
 0xde0   : > { %4998 = vrot.lane.b32.xlu0 %v4997_v1, %s5031_s4  ;;  %v3436_v1 = vld [vmem:[%s6297_s18] sm:$0xff] }
 0xde3   : > { %3225 = vrot.lane.b32.xlu1 %v3194_v29, %s5031_s4 }
 0xde4   : > { %5003 = vrot.lane.b32.xlu0 %v5002_v21, %s5031_s4 }
 0xe49   : > { %v3181_v22 = vpop.permute.xlu1 %3180 }
 0xe4a   : > { %3191 = vst.msk [vmem:[#allocation2 + $0x48] sm:$0xff] %vm722_vm1, %v3181_v22  ;;  %v3183_v24 = vpop.permute.xlu0 %3182 }
 0xe4b   : > { %v3186_v14 = vsel %vm716_vm2, %v3181_v22, %v3183_v24 }
 0xe4c   : > { %v5007_v2 = vpack.i.bf16 %v3186_v14, %v6011_v11 }
 0xe4d   : > { %v3185_v63 = vpop.permute.xlu1 %3184 }
 0xe4e   : > { %v3187_v3 = vsel %vm716_vm2, %v3183_v24, %v3185_v63  ;;  %v3228_v20 = vpop.permute.xlu0 %3227  ;;  %5008 = vrot.lane.b32.xlu1 %v5007_v2, %s5031_s4 }
 0xe4f   : > { %3193 = vst.msk [vmem:[#allocation2 + $0x58] sm:$0xff] %vm725_vm3, %v3187_v3 }
 0xe51   : > { %v3230_v51 = vpop.permute.xlu1 %3229  ;;  %v3203_v8 = vld [vmem:[#allocation2 + $0x48] sm:$0xff] }
 0xe52   : > { %v4999_v23 = vpop.permute.xlu0 %4998  ;;  %3243 = vrot.lane.b32.xlu1 %v3203_v8, %s5031_s4  ;;  %v3250_v11 = vsel %vm6449_vm5, %v3228_v20, %v3230_v51 }
 0xe53   : > { %v5001_v5 = vunpack.i.h.bf16 %v4999_v23  ;;  %v5000_v57 = vunpack.i.l.bf16 %v4999_v23 }
 0xe55   : > { %v4320_v56 = vpack.c.bf16 %v5001_v5, %v3230_v51  ;;  %v3252_v33 = vsel %vm6450_vm7, %v5000_v57, %v5001_v5  ;;  %v3226_v50 = vpop.permute.xlu1 %3225 }
 0xe56   : > { %v5004_v17 = vpop.permute.xlu0 %5003  ;;  %v4311_v46 = vpack.c.bf16 %v3252_v33, %v3250_v11  ;;  %v3205_v34 = vld [vmem:[#allocation2 + $0x58] sm:$0xff]  ;;  %3729 = vperm.xlu1 %4511, %v3726_v28   ;;  %v3249_v16 = vsel %vm6451_vm15, %v3226_v50, %v3228_v20 }
 0xe57   : > { %v5005_v18 = vunpack.i.l.bf16 %v5004_v17  ;;  %4321 = vmatpush3.bf16.msra.mxu1 %v4320_v56  ;;  %v5012_v37 = vpack.i.bf16 %v6000_v61, %v3205_v34  ;;  %v5006_v25 = vunpack.i.h.bf16 %v5004_v17 }
 0xe58   : > { %4312 = vmatprep.subr.bf16.mxu0 %v4311_v46  ;;  %4322 = vmatprep.subr.bf16.mxu1 %v5030_v10 }
 0xe59   : > { %v3251_v38 = vsel %vm6452_vm10, %v5005_v18, %v5000_v57  ;;  %5013 = vrot.lane.b32.xlu0 %v5012_v37, %s5031_s4 }
 0xe5a   : > { %v4313_v41 = vpack.c.bf16 %v3251_v38, %v3249_v16 }
 0xe5c   : > { %4314 = vmatpush1.bf16.msra.mxu0 %v4313_v41 }
 0xe5d   : > { %3210 = vperm.xlu0 %4390, %v3207_v31  }
 0xec0   : > { %v5009_v42 = vpop.permute.xlu1 %5008 }
 0xec1   : > { %v5010_v26 = vunpack.i.l.bf16 %v5009_v42  ;;  %v5011_v0 = vunpack.i.h.bf16 %v5009_v42 }
 0xec3   : > { %v3254_v44 = vsel %vm6453_vm6, %v5006_v25, %v5010_v26 }
 0xec4   : > { %v3244_v9 = vpop.permute.xlu1 %3243 }
 0xec5   : > { %v3255_v12 = vsel %vm6455_vm12, %v3244_v9, %v5011_v0 }
 0xecb   : > { %v5014_v61 = vpop.permute.xlu0 %5013 }
 0xecc   : > { %v5016_v10 = vunpack.i.h.bf16 %v5014_v61  ;;  %v5015_v27 = vunpack.i.l.bf16 %v5014_v61 }
 0xece   : > { %v4323_v39 = vpack.c.bf16 %v5015_v27, %v5010_v26  ;;  %v3253_v30 = vsel %vm6454_vm8, %v5016_v10, %v5006_v25  ;;  %v3256_v45 = vsel %vm6456_vm13, %v5011_v0, %v5015_v27 }
 0xecf   : > { %v4317_v7 = vpack.c.bf16 %v3255_v12, %v3253_v30  ;;  %v4315_v49 = vpack.c.bf16 %v3256_v45, %v3254_v44 }
 0xed0   : > { %4324 = vmatpush3.bf16.msra.mxu1 %v4323_v39 }
 0xed1   : > { %4316 = vmatprep.subr.bf16.mxu0 %v4315_v49  ;;  %3923 = vmatprep.subr.mxu1 %v5662_v19 }
 0xed2   : > { %4318 = vmatpush1.bf16.msra.mxu0 %v4317_v7 }
 0xed3   : > { %3921 = vmatmul.mubr.msk.f32.vlgmr.msra.gmra.mrb[14].mxu1 %vm1919_vm11, %v3206_v43 }
 0xed4   : > { %3925 = vmatprep.mubr.msk.f32.mxu1 %vm6376_vm0, %v5662_v19 }
 0xed5   : > { %3817 = vmatmul.mubr.msk.f32.vlgmr.msra.gmra.mrb[14].mxu0 %vm1919_vm11, %v3206_v43 }
 0xed6   : > { %3505 = vmatprep.mubr.f32.mxu0 %v5662_v19 }
 0xedc   : > { %v3211_v35 = vpop.permute.xlu0 %3210 }
 0xfa6   : > { %v3409_v62 = vpop.f32.mrb[14].mxu1 }
 0xfa7   : > { %v3410_v6 = vadd.f32 %v3409_v62, %v3211_v35  ;;  %v3922_v32 = vpop.f32.mrb[15].mxu1 }
 0xfa8   : > { %v3338_v52 = vpop.f32.mrb[14].mxu0 }
 0xfa9   : > { %v3415_v53 = vadd.f32 %v3410_v6, %v3230_v51  ;;  %v3339_v58 = vadd.f32 %v3338_v52, %v3211_v35  ;;  %v3340_v59 = vpop.f32.mrb[15].mxu0 }
 0xfaa   : > { %v3341_v48 = vadd.f32 %v3340_v59, %v3211_v35 }
 0xfab   : > { %v3418_v13 = vmul.f32 %v5276_v47, %v3415_v53  ;;  %v3413_v40 = vadd.f32 %v3339_v58, %v3249_v16  ;;  %v2087_v47 = vld [vmem:[%s6296_s17] sm:$0xff] }
 0xfac   : > { %v3414_v15 = vadd.f32 %v3341_v48, %v3250_v11 }
 0xfad   : > { %v3416_v29 = vmul.f32 %v5281_v55, %v3413_v40  ;;  %3924 = vmatpush3.msra.mxu1 %v3418_v13  ;;  %v3730_v55 = vpop.permute.xlu1 %3729 }
 0xfae   : > { %v3417_v21 = vmul.f32 %v5287_v60, %v3414_v15  ;;  %3926 = vmatmul.mubr.msk.f32.vlgmr.msra.gmra.mrb[16].mxu1 %vm3437_vm14, %v3436_v1  ;;  %3928 = vmatprep.subr.mxu1 %v5662_v19 }
 0xfaf   : > { %3929 = vmatpush3.msra.mxu1 %v5727_v4  ;;  %3422 = vrot.lane.b32.xlu0 %v3416_v29, %s5027_s26 }
 0xfb0   : > { %3424 = vrot.lane.b32.xlu1 %v3417_v21, %s5027_s26  ;;  %3441 = vmatprep.subr.mxu0 %v3417_v21 }
 0xfb1   : > { %3442 = vmatpush1.msra.mxu0 %v3416_v29  ;;  %3930 = vmatprep.mubr.msk.f32.mxu1 %vm6376_vm0, %v5662_v19 }
 0xfb2   : > { %3819 = vmatmul.mubr.msk.f32.vlgmr.msra.gmra.mrb[16].mxu0 %vm3437_vm14, %v3436_v1  ;;  %3585 = vmatprep.subr.mxu0 %v5720_v36 }
 0xfb3   : > { %3931 = vmatmul.mubr.msk.f32.vlgmr.msra.gmra.mrb[18].mxu1 %vm3437_vm14, %v2087_v47  ;;  %3426 = vrot.lane.b32.xlu0 %v3418_v13, %s5027_s26  ;;  %s6457_s26 = smul.u32 24, %s6459_s22 }
 0xfb4   : > { %3586 = vmatpush1.msra.mxu0 %v5717_v54  ;;  %3649 = vmatprep.mubr.f32.mxu0 %v5662_v19 }
 0xfb5   : > { %s629_s30 = scalar_lea.vmem %s6299_s20, %s6457_s26 }
 0xfba   : > { %3821 = vmatmul.mubr.msk.f32.vlgmr.msra.gmra.mrb[16].mxu0 %vm3437_vm14, %v2087_v47 }
0x1021   : > { %v3423_v60 = vpop.permute.xlu0 %3422 }
0x1022   : > { %3433 = vst.msk [vmem:[#allocation2] sm:$0xff] %vm722_vm1, %v3423_v60  ;;  %v3425_v4 = vpop.permute.xlu1 %3424 }
0x1023   : > { %v3428_v22 = vsel %vm716_vm2, %v3423_v60, %v3425_v4 }
0x1024   : > { %3434 = vst [vmem:[#allocation2 + $0x8] sm:$0xff] %v3428_v22 }
0x1025   : > { %v3427_v36 = vpop.permute.xlu0 %3426 }
0x1026   : > { %v3429_v24 = vsel %vm716_vm2, %v3425_v4, %v3427_v36 }
0x1027   : > { %3435 = vst.msk [vmem:[#allocation2 + $0x10] sm:$0xff] %vm725_vm3, %v3429_v24 }
0x1081   : > { %v3578_v14 = vpop.f32.mrb[16].mxu1 }
0x1082   : > { %v3927_v54 = vpop.f32.mrb[17].mxu1 }
0x1086   : > { %v3722_v2 = vpop.f32.mrb[18].mxu1 }
0x1087   : > { %v3723_v19 = vadd.f32 %v3722_v2, %v3578_v14  ;;  %v3932_v63 = vpop.f32.mrb[19].mxu1 }
0x1089   : > { %v3734_v3 = vadd.f32 %v3730_v55, %v3723_v19 }
0x108b   : > { %3737 = vst.msk [vmem:[%s629_s30 + $0x10] sm:$0xff] %vm1919_vm11, %v3734_v3 }
0x108d   : > { %v3651_v20 = vpop.f32.mrb[16].mxu0 }
0x108e   : > { %v3732_v51 = vadd.f32 %v3730_v55, %v3651_v20  ;;  %v3653_v8 = vpop.f32.mrb[17].mxu0 }
0x108f   : > { %v3733_v23 = vadd.f32 %v3730_v55, %v3653_v8 }
0x1090   : > { %3735 = vst [vmem:[%s629_s30] sm:$0xff] %v3732_v51 }
0x1091   : > { %3736 = vst [vmem:[%s629_s30 + $0x8] sm:$0xff] %v3733_v23 }
0x1092 PF: > { %s30_s1 = sadd.s32 1, %s5024_s1  }
0x1093   : > { %p27_p4 = scmp.ge.s32.totalorder %s30_s1, 4  }
0x1095   :  { %29 = sbr.rel (!%p27_p4) target bundleno = 6 (0x6), region = 130 }

</bundles_post_ra>
